<compile_context>
chip_gen: v5e
topology: v5e:2x2
jax: 0.10.0
libtpu: 0.0.40
codegen_flags: <defaults>
</compile_context>

<pallas_src>
import math
import functools

import jax
import jax.numpy as jnp
from jax.experimental import pallas as pl
from jax.experimental.pallas import tpu as pltpu


# --------------------------------------------------------------------------
# Helpers
# --------------------------------------------------------------------------

def _pick_tile(dim, target, align):
    """Largest multiple of `align` that divides `dim` and is <= `target`;
    falls back to the full dim (always a legal Pallas block)."""
    if dim <= target:
        return dim
    t = (target // align) * align
    while t >= align:
        if dim % t == 0:
            return t
        t -= align
    return dim


@functools.lru_cache(maxsize=None)
def _vmem_limit():
    """Scoped-VMEM limit: 3/4 of physical VMEM, capped at 100 MiB.
    (v5e/v6e -> 96 MiB, v7x -> 48 MiB; default scoped limits are much lower.)"""
    try:
        cap = int(pltpu.get_tpu_info().vmem_capacity_bytes)
    except Exception:
        cap = 128 * 1024 * 1024
    return int(min(cap * 3 // 4, 100 * 1024 * 1024))


# --------------------------------------------------------------------------
# Tiled linear (QKV projection, decoder / vocab matmul)
# --------------------------------------------------------------------------

def _linear_kernel(x_ref, w_ref, b_ref, o_ref, *, relu):
    # Full-K block: one MXU pass per (i, j) tile, no accumulator scratch.
    y = jnp.dot(x_ref[...].astype(jnp.bfloat16),
                w_ref[...].astype(jnp.bfloat16),
                preferred_element_type=jnp.float32) + b_ref[...]
    if relu:
        y = jnp.maximum(y, 0.0)
    o_ref[...] = y.astype(o_ref.dtype)


def _linear_acc_kernel(x_ref, w_ref, b_ref, o_ref, acc_ref, *, relu):
    k = pl.program_id(2)

    @pl.when(k == 0)
    def _():
        acc_ref[...] = jnp.zeros_like(acc_ref)

    acc_ref[...] += jnp.dot(x_ref[...].astype(jnp.bfloat16),
                            w_ref[...].astype(jnp.bfloat16),
                            preferred_element_type=jnp.float32)

    @pl.when(k == pl.num_programs(2) - 1)
    def _():
        y = acc_ref[...] + b_ref[...]
        if relu:
            y = jnp.maximum(y, 0.0)
        o_ref[...] = y.astype(o_ref.dtype)


def linear(x, w, b, relu=False, out_dtype=jnp.bfloat16, *,
           tm=512, tn=1024, tk=2048):
    """y = x @ w + b.   x:(M,K), w:(K,N) bf16, b:(1,N) f32 -> (M,N) out_dtype."""
    M, K = x.shape
    N = w.shape[1]
    tm = _pick_tile(M, tm, 8)
    tn = _pick_tile(N, tn, 128)
    tk = _pick_tile(K, tk, 128)
    cost = pl.CostEstimate(
        flops=2 * M * K * N,
        transcendentals=0,
        bytes_accessed=(M * K) * x.dtype.itemsize
        + (K * N) * w.dtype.itemsize
        + (M * N) * jnp.dtype(out_dtype).itemsize,
    )
    if tk == K:
        # TODO(synk): if profiling shows exposed weight DMA on v6e for huge vocab,
        # consider pipeline_mode=pl.Buffered(3) on the weight stream.
        return pl.pallas_call(
            functools.partial(_linear_kernel, relu=relu),
            out_shape=jax.ShapeDtypeStruct((M, N), out_dtype),
            grid=(M // tm, N // tn),
            in_specs=[
                pl.BlockSpec((tm, K), lambda i, j: (i, 0)),
                pl.BlockSpec((K, tn), lambda i, j: (0, j)),
                pl.BlockSpec((1, tn), lambda i, j: (0, j)),
            ],
            out_specs=pl.BlockSpec((tm, tn), lambda i, j: (i, j)),
            compiler_params=pltpu.CompilerParams(
                dimension_semantics=("parallel", "parallel"),
                vmem_limit_bytes=_vmem_limit()),
            cost_estimate=cost,
        )(x, w, b)
    return pl.pallas_call(
        functools.partial(_linear_acc_kernel, relu=relu),
        out_shape=jax.ShapeDtypeStruct((M, N), out_dtype),
        grid=(M // tm, N // tn, K // tk),
        in_specs=[
            pl.BlockSpec((tm, tk), lambda i, j, k: (i, k)),
            pl.BlockSpec((tk, tn), lambda i, j, k: (k, j)),
            pl.BlockSpec((1, tn), lambda i, j, k: (0, j)),
        ],
        out_specs=pl.BlockSpec((tm, tn), lambda i, j, k: (i, j)),
        scratch_shapes=[pltpu.VMEM((tm, tn), jnp.float32)],
        compiler_params=pltpu.CompilerParams(
            dimension_semantics=("parallel", "parallel", "arbitrary"),
            vmem_limit_bytes=_vmem_limit()),
        cost_estimate=cost,
    )(x, w, b)


# --------------------------------------------------------------------------
# Fused: out = LayerNorm(res + x @ w + b)       (out_proj + residual + LN1)
# --------------------------------------------------------------------------

def _linear_res_ln_kernel(x_ref, w_ref, b_ref, r_ref, g_ref, bb_ref, o_ref, *, eps):
    y = jnp.dot(x_ref[...].astype(jnp.bfloat16),
                w_ref[...].astype(jnp.bfloat16),
                preferred_element_type=jnp.float32)
    y = y + b_ref[...] + r_ref[...].astype(jnp.float32)
    mean = jnp.mean(y, axis=-1, keepdims=True)
    yc = y - mean
    var = jnp.mean(yc * yc, axis=-1, keepdims=True)
    inv = jax.lax.rsqrt(var + eps)
    o_ref[...] = (yc * inv * g_ref[...] + bb_ref[...]).astype(o_ref.dtype)


def linear_residual_layernorm(x, w, b, res, gamma, beta, eps=1e-5,
                              out_dtype=jnp.bfloat16, *, tm=256):
    """LayerNorm(res + x @ w + b).  x:(M,K) bf16, w:(K,E) bf16, res:(M,E) bf16."""
    M, K = x.shape
    E = w.shape[1]
    tm = _pick_tile(M, tm, 8)
    return pl.pallas_call(
        functools.partial(_linear_res_ln_kernel, eps=eps),
        out_shape=jax.ShapeDtypeStruct((M, E), out_dtype),
        grid=(M // tm,),
        in_specs=[
            pl.BlockSpec((tm, K), lambda i: (i, 0)),
            pl.BlockSpec((K, E), lambda i: (0, 0)),
            pl.BlockSpec((1, E), lambda i: (0, 0)),
            pl.BlockSpec((tm, E), lambda i: (i, 0)),
            pl.BlockSpec((1, E), lambda i: (0, 0)),
            pl.BlockSpec((1, E), lambda i: (0, 0)),
        ],
        out_specs=pl.BlockSpec((tm, E), lambda i: (i, 0)),
        compiler_params=pltpu.CompilerParams(
            dimension_semantics=("parallel",),
            vmem_limit_bytes=_vmem_limit()),
    )(x, w, b, res, gamma, beta)


# --------------------------------------------------------------------------
# Fused FFN block: out = LayerNorm(x + relu(x@W1+b1) @ W2 + b2)
# Hidden dim is tiled with a grid axis + (tm,E) f32 accumulator, so the
# (tm, nhid) hidden and the full FFN weights are never resident at once.
# --------------------------------------------------------------------------

def _ffn_res_ln_kernel(x_ref, w1_ref, b1_ref, w2_ref, b2_ref, g_ref, bb_ref,
                       o_ref, acc_ref, *, eps):
    hk = pl.program_id(1)

    @pl.when(hk == 0)
    def _():
        acc_ref[...] = jnp.zeros_like(acc_ref)

    xb = x_ref[...].astype(jnp.bfloat16)
    h = jnp.dot(xb, w1_ref[...].astype(jnp.bfloat16),
                preferred_element_type=jnp.float32) + b1_ref[...]
    h = jnp.maximum(h, 0.0)
    acc_ref[...] += jnp.dot(h.astype(jnp.bfloat16),
                            w2_ref[...].astype(jnp.bfloat16),
                            preferred_element_type=jnp.float32)

    @pl.when(hk == pl.num_programs(1) - 1)
    def _():
        y = acc_ref[...] + b2_ref[...] + x_ref[...].astype(jnp.float32)
        mean = jnp.mean(y, axis=-1, keepdims=True)
        yc = y - mean
        var = jnp.mean(yc * yc, axis=-1, keepdims=True)
        inv = jax.lax.rsqrt(var + eps)
        o_ref[...] = (yc * inv * g_ref[...] + bb_ref[...]).astype(o_ref.dtype)


def ffn_residual_layernorm(x, w1, b1, w2, b2, gamma, beta, eps=1e-5,
                           out_dtype=jnp.bfloat16, *, tm=256, th=512):
    M, E = x.shape
    H = w1.shape[1]
    tm = _pick_tile(M, tm, 8)
    th = _pick_tile(H, th, 128)
    return pl.pallas_call(
        functools.partial(_ffn_res_ln_kernel, eps=eps),
        out_shape=jax.ShapeDtypeStruct((M, E), out_dtype),
        grid=(M // tm, H // th),
        in_specs=[
            pl.BlockSpec((tm, E), lambda i, h: (i, 0)),   # x tile reused across h
            pl.BlockSpec((E, th), lambda i, h: (0, h)),
            pl.BlockSpec((1, th), lambda i, h: (0, h)),
            pl.BlockSpec((th, E), lambda i, h: (h, 0)),
            pl.BlockSpec((1, E), lambda i, h: (0, 0)),
            pl.BlockSpec((1, E), lambda i, h: (0, 0)),
            pl.BlockSpec((1, E), lambda i, h: (0, 0)),
        ],
        out_specs=pl.BlockSpec((tm, E), lambda i, h: (i, 0)),
        scratch_shapes=[pltpu.VMEM((tm, E), jnp.float32)],
        compiler_params=pltpu.CompilerParams(
            dimension_semantics=("parallel", "arbitrary"),
            vmem_limit_bytes=_vmem_limit()),
    )(x, w1, b1, w2, b2, gamma, beta)


# --------------------------------------------------------------------------
# Multi-head attention core.
#   * input: fused (B, S, 3E) qkv (bf16) -> no jnp.split HBM copy.
#   * grid (B, S//tq): query-tile axis for megacore sharding / bounded scores.
#   * scale folded into q, in-register causal mask, softmax denom on the EUP.
#   * all heads written with ONE lane-dense store per output tile.
# --------------------------------------------------------------------------

def _attn_kernel(qkv_ref, o_ref, *, nhead, scale, tq):
    _, S, E3 = qkv_ref.shape
    E = E3 // 3
    Dh = E // nhead
    qi = pl.program_id(1)
    row0 = pl.multiple_of(qi * tq, tq)

    # Causal additive bias for this query tile, built in-register.
    rows = row0 + jax.lax.broadcasted_iota(jnp.int32, (tq, S), 0)
    cols = jax.lax.broadcasted_iota(jnp.int32, (tq, S), 1)
    bias = jnp.where(cols <= rows, 0.0, -1e30).astype(jnp.float32)

    outs = []
    for h in range(nhead):        # static loop; nhead is small (spec: 2)
        q = qkv_ref[0, pl.ds(row0, tq), h * Dh:(h + 1) * Dh]          # (tq, Dh)
        k = qkv_ref[0, :, E + h * Dh:E + (h + 1) * Dh]                # (S, Dh)
        v = qkv_ref[0, :, 2 * E + h * Dh:2 * E + (h + 1) * Dh]        # (S, Dh)
        qh = (q.astype(jnp.float32) * scale).astype(jnp.bfloat16)
        # scores: contract the Dh axes directly (no explicit k.T transpose)
        s = jax.lax.dot_general(qh, k.astype(jnp.bfloat16),
                                (((1,), (1,)), ((), ())),
                                preferred_element_type=jnp.float32)
        s = s + bias
        s = s - jnp.max(s, axis=-1, keepdims=True)
        p = jnp.exp(s)
        p = p * pl.reciprocal(jnp.sum(p, axis=-1, keepdims=True), approx=True)
        outs.append(jnp.dot(p.astype(jnp.bfloat16), v.astype(jnp.bfloat16),
                            preferred_element_type=jnp.float32))
    # Single lane-dense store of all heads for this query tile.
    o_ref[0] = jnp.concatenate(outs, axis=-1).astype(o_ref.dtype)


def mha_core(qkv, nhead, out_dtype=jnp.bfloat16, *, tq=256):
    """qkv: (B, S, 3E) bf16, heads packed along E -> attention output (B, S, E)."""
    B, S, E3 = qkv.shape
    E = E3 // 3
    scale = 1.0 / math.sqrt(E // nhead)
    tq = _pick_tile(S, tq, 8)
    # TODO(synk): for long S / many heads, switch to flash-style KV tiling with an
    # online softmax so the per-head (tq, S) scores stay bounded in VMEM.
    return pl.pallas_call(
        functools.partial(_attn_kernel, nhead=nhead, scale=scale, tq=tq),
        out_shape=jax.ShapeDtypeStruct((B, S, E), out_dtype),
        grid=(B, S // tq),
        in_specs=[
            # Full (S, 3E) block, index constant across qi -> DMA'd once per batch
            # element; q rows are sliced in-kernel via pl.ds.
            pl.BlockSpec((1, S, E3), lambda b, qi: (b, 0, 0)),
        ],
        out_specs=pl.BlockSpec((1, tq, E), lambda b, qi: (b, qi, 0)),
        compiler_params=pltpu.CompilerParams(
            dimension_semantics=("parallel", "parallel"),
            vmem_limit_bytes=_vmem_limit()),
    )(qkv)


# --------------------------------------------------------------------------
# Parameters / glue (plain JAX)
# --------------------------------------------------------------------------

def make_positional_encoding(max_len, d_model):
    position = jnp.arange(max_len, dtype=jnp.float32)[:, None]
    div_term = jnp.exp(
        jnp.arange(0, d_model, 2, dtype=jnp.float32) * (-math.log(10000.0) / d_model)
    )
    pe = jnp.zeros((max_len, d_model), jnp.float32)
    pe = pe.at[:, 0::2].set(jnp.sin(position * div_term))
    pe = pe.at[:, 1::2].set(jnp.cos(position * div_term))
    return pe[:, None, :]              # (max_len, 1, d_model)


def init_params(key, ntoken, emsize, nhead, nhid, nlayers):
    del nhead
    initrange = 0.1
    keys = jax.random.split(key, 2 + nlayers)
    wdt = jnp.bfloat16                 # MXU-native weight storage, f32 accumulation
    params = {
        "emb": jax.random.uniform(keys[0], (ntoken, emsize), jnp.float32,
                                  -initrange, initrange),
        # decoder weight stored pre-transposed (E, ntoken)
        "dec_w": jax.random.uniform(keys[1], (emsize, ntoken), jnp.float32,
                                    -initrange, initrange).astype(wdt),
        "dec_b": jnp.zeros((1, ntoken), jnp.float32),
    }

    def u(kk, shape, fan_in, dtype):
        bound = 1.0 / math.sqrt(fan_in)
        return jax.random.uniform(kk, shape, jnp.float32, -bound, bound).astype(dtype)

    layers = []
    for l in range(nlayers):
        k = jax.random.split(keys[2 + l], 8)
        layers.append(dict(
            in_proj_w=u(k[0], (emsize, 3 * emsize), emsize, wdt),  # (K,N) pre-transposed
            in_proj_b=u(k[1], (1, 3 * emsize), emsize, jnp.float32),
            out_proj_w=u(k[2], (emsize, emsize), emsize, wdt),
            out_proj_b=u(k[3], (1, emsize), emsize, jnp.float32),
            ff1_w=u(k[4], (emsize, nhid), emsize, wdt),
            ff1_b=u(k[5], (1, nhid), emsize, jnp.float32),
            ff2_w=u(k[6], (nhid, emsize), nhid, wdt),
            ff2_b=u(k[7], (1, emsize), nhid, jnp.float32),
            ln1_g=jnp.ones((1, emsize), jnp.float32),
            ln1_b=jnp.zeros((1, emsize), jnp.float32),
            ln2_g=jnp.ones((1, emsize), jnp.float32),
            ln2_b=jnp.zeros((1, emsize), jnp.float32),
        ))
    params["layers"] = layers
    return params


def encoder_layer_fwd(x2d, layer, B, S, E, nhead):
    # x2d: (B*S, E) bf16, batch-first flattened; post-norm layer with ReLU FFN.
    qkv = linear(x2d, layer["in_proj_w"], layer["in_proj_b"],
                 out_dtype=jnp.bfloat16)                           # (B*S, 3E) bf16
    attn = mha_core(qkv.reshape(B, S, 3 * E), nhead)               # (B, S, E) bf16
    attn2d = attn.reshape(B * S, E)                                # free reshape

    # out_proj + residual + LayerNorm1 fused: one HBM pass.
    x2d = linear_residual_layernorm(attn2d, layer["out_proj_w"],
                                    layer["out_proj_b"], x2d,
                                    layer["ln1_g"], layer["ln1_b"])

    # ff1(ReLU) -> ff2 -> +residual -> LayerNorm2 fused; hidden dim tiled in VMEM.
    x2d = ffn_residual_layernorm(x2d, layer["ff1_w"], layer["ff1_b"],
                                 layer["ff2_w"], layer["ff2_b"],
                                 layer["ln2_g"], layer["ln2_b"])
    return x2d


def transformer_forward(params, src, pe, nhead):
    # src: (S, B) int32 token ids
    S, B = src.shape
    E = params["emb"].shape[1]
    x = params["emb"][src] * math.sqrt(E)            # (S, B, E) f32
    x = x + pe[:S]                                   # positional encoding
    # TODO(synk): dropout (pos-encoder & encoder layers) is an eval-mode identity.
    x = jnp.transpose(x, (1, 0, 2))                  # batch-first, single transpose in
    x2d = x.reshape(B * S, E).astype(jnp.bfloat16)   # bf16 residual stream
    for layer in params["layers"]:
        x2d = encoder_layer_fwd(x2d, layer, B, S, E, nhead)
    # Vocab projection with large tiles, full-K block, f32 logits.
    logits = linear(x2d, params["dec_w"], params["dec_b"],
                    out_dtype=jnp.float32, tm=512, tn=1024, tk=4096)
    return logits.reshape(B, S, -1).transpose(1, 0, 2)             # (S, B, ntoken)


# --------------------------------------------------------------------------
# Demo
# --------------------------------------------------------------------------

if __name__ == "__main__":
    # Module constants (emsize=200, nhead=2, nhid=200, nlayers=2); small ntoken/S/B.
    ntoken, emsize, nhead, nhid, nlayers = 128, 200, 2, 200, 2
    S, B = 16, 2

    key = jax.random.PRNGKey(0)
    pkey, dkey = jax.random.split(key)

    params = init_params(pkey, ntoken, emsize, nhead, nhid, nlayers)
    src = jax.random.randint(dkey, (S, B), 0, ntoken, dtype=jnp.int32)
    pe = make_positional_encoding(128, emsize)

    fwd = jax.jit(functools.partial(transformer_forward, nhead=nhead))
    out = jax.block_until_ready(fwd(params, src, pe))

    assert out.shape == (S, B, ntoken), out.shape
    assert out.dtype == jnp.float32
    assert bool(jnp.all(jnp.isfinite(out)))
    print("KERNEL_OK")
</pallas_src>

<mosaic_0001>
module attributes {stable_mosaic.version = 11 : i64} {
  func.func @_attn_kernel(%arg0: i32, %arg1: i32, %arg2: memref<1x16x600xbf16, #tpu.memory_space<vmem>>, %arg3: memref<1x16x200xbf16, #tpu.memory_space<vmem>>) attributes {dimension_semantics = [#tpu.dimension_semantics<parallel>, #tpu.dimension_semantics<parallel>], iteration_bounds = array<i64: 2, 1>, scalar_prefetch = 0 : i64, scratch_operands = 0 : i64, tpu.core_type = #tpu.core_type<tc>, window_params = [{transform_indices = @transform_0, window_bounds = array<i64: 1, 16, 600>}, {transform_indices = @transform_1, window_bounds = array<i64: 1, 16, 200>}]} {
    %c16_i32 = arith.constant 16 : i32
    %0 = arith.muli %arg1, %c16_i32 : i32
    %1 = tpu.assume_multiple %0, 16 : i32
    %2 = tpu.iota {dimensions = array<i32: 0>} : vector<16x16xi32>
    %3 = vector.broadcast %1 : i32 to vector<16x16xi32>
    %4 = arith.addi %3, %2 : vector<16x16xi32>
    %5 = tpu.iota {dimensions = array<i32: 1>} : vector<16x16xi32>
    %6 = arith.cmpi sle, %5, %4 : vector<16x16xi32>
    %cst = arith.constant 0.000000e+00 : f32
    %cst_0 = arith.constant -1.000000e+30 : f32
    %7 = vector.broadcast %cst : f32 to vector<16x16xf32>
    %8 = vector.broadcast %cst_0 : f32 to vector<16x16xf32>
    %9 = arith.select %6, %7, %8 : vector<16x16xi1>, vector<16x16xf32>
    %c0 = arith.constant 0 : index
    %10 = arith.index_cast %1 : i32 to index
    %c0_1 = arith.constant 0 : index
    %11 = vector.load %arg2[%c0, %10, %c0_1] : memref<1x16x600xbf16, #tpu.memory_space<vmem>>, vector<1x16x100xbf16>
    %12 = vector.shape_cast %11 : vector<1x16x100xbf16> to vector<16x100xbf16>
    %c0_2 = arith.constant 0 : index
    %c0_3 = arith.constant 0 : index
    %c200 = arith.constant 200 : index
    %13 = vector.load %arg2[%c0_2, %c0_3, %c200] : memref<1x16x600xbf16, #tpu.memory_space<vmem>>, vector<1x16x100xbf16>
    %14 = vector.shape_cast %13 : vector<1x16x100xbf16> to vector<16x100xbf16>
    %c0_4 = arith.constant 0 : index
    %c0_5 = arith.constant 0 : index
    %c400 = arith.constant 400 : index
    %15 = vector.load %arg2[%c0_4, %c0_5, %c400] : memref<1x16x600xbf16, #tpu.memory_space<vmem>>, vector<1x16x100xbf16>
    %16 = vector.shape_cast %15 : vector<1x16x100xbf16> to vector<16x100xbf16>
    %17 = arith.extf %12 : vector<16x100xbf16> to vector<16x100xf32>
    %cst_6 = arith.constant 1.000000e-01 : f32
    %18 = vector.broadcast %cst_6 : f32 to vector<16x100xf32>
    %19 = arith.mulf %17, %18 : vector<16x100xf32>
    %20 = arith.truncf %19 : vector<16x100xf32> to vector<16x100xbf16>
    %cst_7 = arith.constant dense<0.000000e+00> : vector<16x16xf32>
    %21 = tpu.matmul %20, %14, %cst_7 {dimension_numbers = #tpu.dot_dimension_numbers<[1], [1], [0], [0], [0, 0, 1, 0], [], []>} : vector<16x100xbf16>, vector<16x100xbf16>, vector<16x16xf32> -> vector<16x16xf32>
    %22 = arith.addf %21, %9 : vector<16x16xf32>
    %cst_8 = arith.constant dense<0xFF800000> : vector<16xf32>
    %23 = vector.multi_reduction <maximumf>, %22, %cst_8 [1] : vector<16x16xf32> to vector<16xf32>
    %24 = vector.shape_cast %23 : vector<16xf32> to vector<16x1xf32>
    %25 = vector.broadcast %24 : vector<16x1xf32> to vector<16x16xf32>
    %26 = arith.subf %22, %25 : vector<16x16xf32>
    %27 = math.exp %26 : vector<16x16xf32>
    %cst_9 = arith.constant dense<0.000000e+00> : vector<16xf32>
    %28 = vector.multi_reduction <add>, %27, %cst_9 [1] : vector<16x16xf32> to vector<16xf32>
    %29 = vector.shape_cast %28 : vector<16xf32> to vector<16x1xf32>
    %30 = tpu.reciprocal %29 {approx = true} : vector<16x1xf32> -> vector<16x1xf32>
    %31 = vector.broadcast %30 : vector<16x1xf32> to vector<16x16xf32>
    %32 = arith.mulf %27, %31 : vector<16x16xf32>
    %33 = arith.truncf %32 : vector<16x16xf32> to vector<16x16xbf16>
    %cst_10 = arith.constant dense<0.000000e+00> : vector<16x100xf32>
    %34 = tpu.matmul %33, %16, %cst_10 {dimension_numbers = #tpu.dot_dimension_numbers<[1], [0], [0], [1], [0, 0, 1, 1], [], []>} : vector<16x16xbf16>, vector<16x100xbf16>, vector<16x100xf32> -> vector<16x100xf32>
    %c0_11 = arith.constant 0 : index
    %35 = arith.index_cast %1 : i32 to index
    %c100 = arith.constant 100 : index
    %36 = vector.load %arg2[%c0_11, %35, %c100] : memref<1x16x600xbf16, #tpu.memory_space<vmem>>, vector<1x16x100xbf16>
    %37 = vector.shape_cast %36 : vector<1x16x100xbf16> to vector<16x100xbf16>
    %c0_12 = arith.constant 0 : index
    %c0_13 = arith.constant 0 : index
    %c300 = arith.constant 300 : index
    %38 = vector.load %arg2[%c0_12, %c0_13, %c300] : memref<1x16x600xbf16, #tpu.memory_space<vmem>>, vector<1x16x100xbf16>
    %39 = vector.shape_cast %38 : vector<1x16x100xbf16> to vector<16x100xbf16>
    %c0_14 = arith.constant 0 : index
    %c0_15 = arith.constant 0 : index
    %c500 = arith.constant 500 : index
    %40 = vector.load %arg2[%c0_14, %c0_15, %c500] : memref<1x16x600xbf16, #tpu.memory_space<vmem>>, vector<1x16x100xbf16>
    %41 = vector.shape_cast %40 : vector<1x16x100xbf16> to vector<16x100xbf16>
    %42 = arith.extf %37 : vector<16x100xbf16> to vector<16x100xf32>
    %cst_16 = arith.constant 1.000000e-01 : f32
    %43 = vector.broadcast %cst_16 : f32 to vector<16x100xf32>
    %44 = arith.mulf %42, %43 : vector<16x100xf32>
    %45 = arith.truncf %44 : vector<16x100xf32> to vector<16x100xbf16>
    %cst_17 = arith.constant dense<0.000000e+00> : vector<16x16xf32>
    %46 = tpu.matmul %45, %39, %cst_17 {dimension_numbers = #tpu.dot_dimension_numbers<[1], [1], [0], [0], [0, 0, 1, 0], [], []>} : vector<16x100xbf16>, vector<16x100xbf16>, vector<16x16xf32> -> vector<16x16xf32>
    %47 = arith.addf %46, %9 : vector<16x16xf32>
    %cst_18 = arith.constant dense<0xFF800000> : vector<16xf32>
    %48 = vector.multi_reduction <maximumf>, %47, %cst_18 [1] : vector<16x16xf32> to vector<16xf32>
    %49 = vector.shape_cast %48 : vector<16xf32> to vector<16x1xf32>
    %50 = vector.broadcast %49 : vector<16x1xf32> to vector<16x16xf32>
    %51 = arith.subf %47, %50 : vector<16x16xf32>
    %52 = math.exp %51 : vector<16x16xf32>
    %cst_19 = arith.constant dense<0.000000e+00> : vector<16xf32>
    %53 = vector.multi_reduction <add>, %52, %cst_19 [1] : vector<16x16xf32> to vector<16xf32>
    %54 = vector.shape_cast %53 : vector<16xf32> to vector<16x1xf32>
    %55 = tpu.reciprocal %54 {approx = true} : vector<16x1xf32> -> vector<16x1xf32>
    %56 = vector.broadcast %55 : vector<16x1xf32> to vector<16x16xf32>
    %57 = arith.mulf %52, %56 : vector<16x16xf32>
    %58 = arith.truncf %57 : vector<16x16xf32> to vector<16x16xbf16>
    %cst_20 = arith.constant dense<0.000000e+00> : vector<16x100xf32>
    %59 = tpu.matmul %58, %41, %cst_20 {dimension_numbers = #tpu.dot_dimension_numbers<[1], [0], [0], [1], [0, 0, 1, 1], [], []>} : vector<16x16xbf16>, vector<16x100xbf16>, vector<16x100xf32> -> vector<16x100xf32>
    %60 = tpu.concatenate %34, %59 in 1 : vector<16x100xf32>, vector<16x100xf32> -> vector<16x200xf32>
    %61 = arith.truncf %60 : vector<16x200xf32> to vector<16x200xbf16>
    %c0_21 = arith.constant 0 : index
    %c0_22 = arith.constant 0 : index
    %c0_23 = arith.constant 0 : index
    %62 = vector.load %arg3[%c0_21, %c0_22, %c0_23] : memref<1x16x200xbf16, #tpu.memory_space<vmem>>, vector<1x16x200xbf16>
    %63 = vector.shape_cast %62 : vector<1x16x200xbf16> to vector<16x200xbf16>
    %64 = vector.shape_cast %61 : vector<16x200xbf16> to vector<1x16x200xbf16>
    tpu.vector_store %arg3[%c0_21, %c0_22, %c0_23], %64 {strides = array<i32>} : memref<1x16x200xbf16, #tpu.memory_space<vmem>>, vector<1x16x200xbf16>,
    return
  }
  func.func @transform_0(%arg0: i32, %arg1: i32) -> (i32, i32, i32) {
    %c0_i32 = arith.constant 0 : i32
    %c0_i32_0 = arith.constant 0 : i32
    %c0_i32_1 = arith.constant 0 : i32
    return %arg0, %c0_i32, %c0_i32_0 : i32, i32, i32
  }
  func.func @transform_1(%arg0: i32, %arg1: i32) -> (i32, i32, i32) {
    %c0_i32 = arith.constant 0 : i32
    %c0_i32_0 = arith.constant 0 : i32
    return %arg0, %arg1, %c0_i32 : i32, i32, i32
  }
}

module attributes {stable_mosaic.version = 11 : i64} {
  func.func @_linear_kernel(%arg0: i32, %arg1: i32, %arg2: memref<32x200xbf16, #tpu.memory_space<vmem>>, %arg3: memref<200x600xbf16, #tpu.memory_space<vmem>>, %arg4: memref<1x600xf32, #tpu.memory_space<vmem>>, %arg5: memref<32x600xbf16, #tpu.memory_space<vmem>>) attributes {dimension_semantics = [#tpu.dimension_semantics<parallel>, #tpu.dimension_semantics<parallel>], iteration_bounds = array<i64: 1, 1>, scalar_prefetch = 0 : i64, scratch_operands = 0 : i64, tpu.core_type = #tpu.core_type<tc>, window_params = [{transform_indices = @transform_0, window_bounds = array<i64: 32, 200>}, {transform_indices = @transform_1, window_bounds = array<i64: 200, 600>}, {transform_indices = @transform_2, window_bounds = array<i64: 1, 600>}, {transform_indices = @transform_3, window_bounds = array<i64: 32, 600>}]} {
    %c0 = arith.constant 0 : index
    %c0_0 = arith.constant 0 : index
    %0 = vector.load %arg2[%c0, %c0_0] : memref<32x200xbf16, #tpu.memory_space<vmem>>, vector<32x200xbf16>
    %c0_1 = arith.constant 0 : index
    %c0_2 = arith.constant 0 : index
    %1 = vector.load %arg3[%c0_1, %c0_2] : memref<200x600xbf16, #tpu.memory_space<vmem>>, vector<200x600xbf16>
    %cst = arith.constant dense<0.000000e+00> : vector<32x600xf32>
    %2 = tpu.matmul %0, %1, %cst {dimension_numbers = #tpu.dot_dimension_numbers<[1], [0], [0], [1], [0, 0, 1, 1], [], []>} : vector<32x200xbf16>, vector<200x600xbf16>, vector<32x600xf32> -> vector<32x600xf32>
    %c0_3 = arith.constant 0 : index
    %c0_4 = arith.constant 0 : index
    %3 = vector.load %arg4[%c0_3, %c0_4] : memref<1x600xf32, #tpu.memory_space<vmem>>, vector<1x600xf32>
    %4 = vector.broadcast %3 : vector<1x600xf32> to vector<32x600xf32>
    %5 = arith.addf %2, %4 : vector<32x600xf32>
    %6 = arith.truncf %5 : vector<32x600xf32> to vector<32x600xbf16>
    %c0_5 = arith.constant 0 : index
    %c0_6 = arith.constant 0 : index
    %7 = vector.load %arg5[%c0_5, %c0_6] : memref<32x600xbf16, #tpu.memory_space<vmem>>, vector<32x600xbf16>
    tpu.vector_store %arg5[%c0_5, %c0_6], %6 {strides = array<i32>} : memref<32x600xbf16, #tpu.memory_space<vmem>>, vector<32x600xbf16>,
    return
  }
  func.func @transform_0(%arg0: i32, %arg1: i32) -> (i32, i32) {
    %c0_i32 = arith.constant 0 : i32
    %c0_i32_0 = arith.constant 0 : i32
    return %arg0, %c0_i32 : i32, i32
  }
  func.func @transform_1(%arg0: i32, %arg1: i32) -> (i32, i32) {
    %c0_i32 = arith.constant 0 : i32
    %c0_i32_0 = arith.constant 0 : i32
    return %c0_i32, %arg1 : i32, i32
  }
  func.func @transform_2(%arg0: i32, %arg1: i32) -> (i32, i32) {
    %c0_i32 = arith.constant 0 : i32
    %c0_i32_0 = arith.constant 0 : i32
    return %c0_i32, %arg1 : i32, i32
  }
  func.func @transform_3(%arg0: i32, %arg1: i32) -> (i32, i32) {
    %c0_i32 = arith.constant 0 : i32
    return %arg0, %arg1 : i32, i32
  }
}

module attributes {stable_mosaic.version = 11 : i64} {
  func.func @_linear_res_ln_kernel(%arg0: i32, %arg1: memref<32x200xbf16, #tpu.memory_space<vmem>>, %arg2: memref<200x200xbf16, #tpu.memory_space<vmem>>, %arg3: memref<1x200xf32, #tpu.memory_space<vmem>>, %arg4: memref<32x200xbf16, #tpu.memory_space<vmem>>, %arg5: memref<1x200xf32, #tpu.memory_space<vmem>>, %arg6: memref<1x200xf32, #tpu.memory_space<vmem>>, %arg7: memref<32x200xbf16, #tpu.memory_space<vmem>>) attributes {dimension_semantics = [#tpu.dimension_semantics<parallel>], iteration_bounds = array<i64: 1>, scalar_prefetch = 0 : i64, scratch_operands = 0 : i64, tpu.core_type = #tpu.core_type<tc>, window_params = [{transform_indices = @transform_0, window_bounds = array<i64: 32, 200>}, {pipeline_mode = #tpu.pipeline_mode<synchronous>, transform_indices = @transform_1, window_bounds = array<i64: 200, 200>}, {pipeline_mode = #tpu.pipeline_mode<synchronous>, transform_indices = @transform_2, window_bounds = array<i64: 1, 200>}, {transform_indices = @transform_3, window_bounds = array<i64: 32, 200>}, {pipeline_mode = #tpu.pipeline_mode<synchronous>, transform_indices = @transform_4, window_bounds = array<i64: 1, 200>}, {pipeline_mode = #tpu.pipeline_mode<synchronous>, transform_indices = @transform_5, window_bounds = array<i64: 1, 200>}, {transform_indices = @transform_6, window_bounds = array<i64: 32, 200>}]} {
    %c0 = arith.constant 0 : index
    %c0_0 = arith.constant 0 : index
    %0 = vector.load %arg1[%c0, %c0_0] : memref<32x200xbf16, #tpu.memory_space<vmem>>, vector<32x200xbf16>
    %c0_1 = arith.constant 0 : index
    %c0_2 = arith.constant 0 : index
    %1 = vector.load %arg2[%c0_1, %c0_2] : memref<200x200xbf16, #tpu.memory_space<vmem>>, vector<200x200xbf16>
    %cst = arith.constant dense<0.000000e+00> : vector<32x200xf32>
    %2 = tpu.matmul %0, %1, %cst {dimension_numbers = #tpu.dot_dimension_numbers<[1], [0], [0], [1], [0, 0, 1, 1], [], []>} : vector<32x200xbf16>, vector<200x200xbf16>, vector<32x200xf32> -> vector<32x200xf32>
    %c0_3 = arith.constant 0 : index
    %c0_4 = arith.constant 0 : index
    %3 = vector.load %arg3[%c0_3, %c0_4] : memref<1x200xf32, #tpu.memory_space<vmem>>, vector<1x200xf32>
    %4 = vector.broadcast %3 : vector<1x200xf32> to vector<32x200xf32>
    %5 = arith.addf %2, %4 : vector<32x200xf32>
    %c0_5 = arith.constant 0 : index
    %c0_6 = arith.constant 0 : index
    %6 = vector.load %arg4[%c0_5, %c0_6] : memref<32x200xbf16, #tpu.memory_space<vmem>>, vector<32x200xbf16>
    %7 = arith.extf %6 : vector<32x200xbf16> to vector<32x200xf32>
    %8 = arith.addf %5, %7 : vector<32x200xf32>
    %cst_7 = arith.constant dense<0.000000e+00> : vector<32xf32>
    %9 = vector.multi_reduction <add>, %8, %cst_7 [1] : vector<32x200xf32> to vector<32xf32>
    %10 = vector.shape_cast %9 : vector<32xf32> to vector<32x1xf32>
    %cst_8 = arith.constant 2.000000e+02 : f32
    %11 = vector.broadcast %cst_8 : f32 to vector<32x1xf32>
    %12 = arith.divf %10, %11 : vector<32x1xf32>
    %13 = vector.broadcast %12 : vector<32x1xf32> to vector<32x200xf32>
    %14 = arith.subf %8, %13 : vector<32x200xf32>
    %15 = arith.mulf %14, %14 : vector<32x200xf32>
    %cst_9 = arith.constant dense<0.000000e+00> : vector<32xf32>
    %16 = vector.multi_reduction <add>, %15, %cst_9 [1] : vector<32x200xf32> to vector<32xf32>
    %17 = vector.shape_cast %16 : vector<32xf32> to vector<32x1xf32>
    %cst_10 = arith.constant 2.000000e+02 : f32
    %18 = vector.broadcast %cst_10 : f32 to vector<32x1xf32>
    %19 = arith.divf %17, %18 : vector<32x1xf32>
    %cst_11 = arith.constant 9.99999974E-6 : f32
    %20 = vector.broadcast %cst_11 : f32 to vector<32x1xf32>
    %21 = arith.addf %19, %20 : vector<32x1xf32>
    %22 = math.rsqrt %21 : vector<32x1xf32>
    %23 = vector.broadcast %22 : vector<32x1xf32> to vector<32x200xf32>
    %24 = arith.mulf %14, %23 : vector<32x200xf32>
    %c0_12 = arith.constant 0 : index
    %c0_13 = arith.constant 0 : index
    %25 = vector.load %arg5[%c0_12, %c0_13] : memref<1x200xf32, #tpu.memory_space<vmem>>, vector<1x200xf32>
    %26 = vector.broadcast %25 : vector<1x200xf32> to vector<32x200xf32>
    %27 = arith.mulf %24, %26 : vector<32x200xf32>
    %c0_14 = arith.constant 0 : index
    %c0_15 = arith.constant 0 : index
    %28 = vector.load %arg6[%c0_14, %c0_15] : memref<1x200xf32, #tpu.memory_space<vmem>>, vector<1x200xf32>
    %29 = vector.broadcast %28 : vector<1x200xf32> to vector<32x200xf32>
    %30 = arith.addf %27, %29 : vector<32x200xf32>
    %31 = arith.truncf %30 : vector<32x200xf32> to vector<32x200xbf16>
    %c0_16 = arith.constant 0 : index
    %c0_17 = arith.constant 0 : index
    %32 = vector.load %arg7[%c0_16, %c0_17] : memref<32x200xbf16, #tpu.memory_space<vmem>>, vector<32x200xbf16>
    tpu.vector_store %arg7[%c0_16, %c0_17], %31 {strides = array<i32>} : memref<32x200xbf16, #tpu.memory_space<vmem>>, vector<32x200xbf16>,
    return
  }
  func.func @transform_0(%arg0: i32) -> (i32, i32) {
    %c0_i32 = arith.constant 0 : i32
    %c0_i32_0 = arith.constant 0 : i32
    return %arg0, %c0_i32 : i32, i32
  }
  func.func @transform_1(%arg0: i32) -> (i32, i32) {
    %c0_i32 = arith.constant 0 : i32
    %c0_i32_0 = arith.constant 0 : i32
    %c0_i32_1 = arith.constant 0 : i32
    return %c0_i32, %c0_i32_0 : i32, i32
  }
  func.func @transform_2(%arg0: i32) -> (i32, i32) {
    %c0_i32 = arith.constant 0 : i32
    %c0_i32_0 = arith.constant 0 : i32
    %c0_i32_1 = arith.constant 0 : i32
    return %c0_i32, %c0_i32_0 : i32, i32
  }
  func.func @transform_3(%arg0: i32) -> (i32, i32) {
    %c0_i32 = arith.constant 0 : i32
    %c0_i32_0 = arith.constant 0 : i32
    return %arg0, %c0_i32 : i32, i32
  }
  func.func @transform_4(%arg0: i32) -> (i32, i32) {
    %c0_i32 = arith.constant 0 : i32
    %c0_i32_0 = arith.constant 0 : i32
    %c0_i32_1 = arith.constant 0 : i32
    return %c0_i32, %c0_i32_0 : i32, i32
  }
  func.func @transform_5(%arg0: i32) -> (i32, i32) {
    %c0_i32 = arith.constant 0 : i32
    %c0_i32_0 = arith.constant 0 : i32
    %c0_i32_1 = arith.constant 0 : i32
    return %c0_i32, %c0_i32_0 : i32, i32
  }
  func.func @transform_6(%arg0: i32) -> (i32, i32) {
    %c0_i32 = arith.constant 0 : i32
    %c0_i32_0 = arith.constant 0 : i32
    return %arg0, %c0_i32 : i32, i32
  }
}

module attributes {stable_mosaic.version = 11 : i64} {
  func.func @_ffn_res_ln_kernel(%arg0: i32, %arg1: i32, %arg2: memref<32x200xbf16, #tpu.memory_space<vmem>>, %arg3: memref<200x200xbf16, #tpu.memory_space<vmem>>, %arg4: memref<1x200xf32, #tpu.memory_space<vmem>>, %arg5: memref<200x200xbf16, #tpu.memory_space<vmem>>, %arg6: memref<1x200xf32, #tpu.memory_space<vmem>>, %arg7: memref<1x200xf32, #tpu.memory_space<vmem>>, %arg8: memref<1x200xf32, #tpu.memory_space<vmem>>, %arg9: memref<32x200xbf16, #tpu.memory_space<vmem>>, %arg10: memref<32x200xf32, #tpu.memory_space<vmem>>) attributes {dimension_semantics = [#tpu.dimension_semantics<parallel>, #tpu.dimension_semantics<arbitrary>], iteration_bounds = array<i64: 1, 1>, scalar_prefetch = 0 : i64, scratch_operands = 1 : i64, tpu.core_type = #tpu.core_type<tc>, window_params = [{transform_indices = @transform_0, window_bounds = array<i64: 32, 200>}, {transform_indices = @transform_1, window_bounds = array<i64: 200, 200>}, {transform_indices = @transform_2, window_bounds = array<i64: 1, 200>}, {transform_indices = @transform_3, window_bounds = array<i64: 200, 200>}, {pipeline_mode = #tpu.pipeline_mode<synchronous>, transform_indices = @transform_4, window_bounds = array<i64: 1, 200>}, {pipeline_mode = #tpu.pipeline_mode<synchronous>, transform_indices = @transform_5, window_bounds = array<i64: 1, 200>}, {pipeline_mode = #tpu.pipeline_mode<synchronous>, transform_indices = @transform_6, window_bounds = array<i64: 1, 200>}, {transform_indices = @transform_7, window_bounds = array<i64: 32, 200>}]} {
    %c0_i32 = arith.constant 0 : i32
    %0 = arith.cmpi eq, %arg1, %c0_i32 : i32
    %1 = arith.extui %0 : i1 to i32
    %c0_i32_0 = arith.constant 0 : i32
    %2 = arith.cmpi ne, %1, %c0_i32_0 : i32
    scf.if %2 {
      %cst_16 = arith.constant 0.000000e+00 : f32
      %20 = vector.broadcast %cst_16 : f32 to vector<32x200xf32>
      %c0_17 = arith.constant 0 : index
      %c0_18 = arith.constant 0 : index
      %21 = vector.load %arg10[%c0_17, %c0_18] : memref<32x200xf32, #tpu.memory_space<vmem>>, vector<32x200xf32>
      tpu.vector_store %arg10[%c0_17, %c0_18], %20 {strides = array<i32>} : memref<32x200xf32, #tpu.memory_space<vmem>>, vector<32x200xf32>,
    } else {
    }
    %c0 = arith.constant 0 : index
    %c0_1 = arith.constant 0 : index
    %3 = vector.load %arg2[%c0, %c0_1] : memref<32x200xbf16, #tpu.memory_space<vmem>>, vector<32x200xbf16>
    %c0_2 = arith.constant 0 : index
    %c0_3 = arith.constant 0 : index
    %4 = vector.load %arg3[%c0_2, %c0_3] : memref<200x200xbf16, #tpu.memory_space<vmem>>, vector<200x200xbf16>
    %cst = arith.constant dense<0.000000e+00> : vector<32x200xf32>
    %5 = tpu.matmul %3, %4, %cst {dimension_numbers = #tpu.dot_dimension_numbers<[1], [0], [0], [1], [0, 0, 1, 1], [], []>} : vector<32x200xbf16>, vector<200x200xbf16>, vector<32x200xf32> -> vector<32x200xf32>
    %c0_4 = arith.constant 0 : index
    %c0_5 = arith.constant 0 : index
    %6 = vector.load %arg4[%c0_4, %c0_5] : memref<1x200xf32, #tpu.memory_space<vmem>>, vector<1x200xf32>
    %7 = vector.broadcast %6 : vector<1x200xf32> to vector<32x200xf32>
    %8 = arith.addf %5, %7 : vector<32x200xf32>
    %cst_6 = arith.constant 0.000000e+00 : f32
    %9 = vector.broadcast %cst_6 : f32 to vector<32x200xf32>
    %10 = arith.maximumf %8, %9 : vector<32x200xf32>
    %c0_7 = arith.constant 0 : index
    %c0_8 = arith.constant 0 : index
    %11 = vector.load %arg10[%c0_7, %c0_8] : memref<32x200xf32, #tpu.memory_space<vmem>>, vector<32x200xf32>
    %12 = arith.truncf %10 : vector<32x200xf32> to vector<32x200xbf16>
    %c0_9 = arith.constant 0 : index
    %c0_10 = arith.constant 0 : index
    %13 = vector.load %arg5[%c0_9, %c0_10] : memref<200x200xbf16, #tpu.memory_space<vmem>>, vector<200x200xbf16>
    %cst_11 = arith.constant dense<0.000000e+00> : vector<32x200xf32>
    %14 = tpu.matmul %12, %13, %cst_11 {dimension_numbers = #tpu.dot_dimension_numbers<[1], [0], [0], [1], [0, 0, 1, 1], [], []>} : vector<32x200xbf16>, vector<200x200xbf16>, vector<32x200xf32> -> vector<32x200xf32>
    %15 = arith.addf %11, %14 : vector<32x200xf32>
    %c0_12 = arith.constant 0 : index
    %c0_13 = arith.constant 0 : index
    %16 = vector.load %arg10[%c0_12, %c0_13] : memref<32x200xf32, #tpu.memory_space<vmem>>, vector<32x200xf32>
    tpu.vector_store %arg10[%c0_12, %c0_13], %15 {strides = array<i32>} : memref<32x200xf32, #tpu.memory_space<vmem>>, vector<32x200xf32>,
    %c0_i32_14 = arith.constant 0 : i32
    %17 = arith.cmpi eq, %arg1, %c0_i32_14 : i32
    %18 = arith.extui %17 : i1 to i32
    %c0_i32_15 = arith.constant 0 : i32
    %19 = arith.cmpi ne, %18, %c0_i32_15 : i32
    scf.if %19 {
      %c0_16 = arith.constant 0 : index
      %c0_17 = arith.constant 0 : index
      %20 = vector.load %arg10[%c0_16, %c0_17] : memref<32x200xf32, #tpu.memory_space<vmem>>, vector<32x200xf32>
      %c0_18 = arith.constant 0 : index
      %c0_19 = arith.constant 0 : index
      %21 = vector.load %arg6[%c0_18, %c0_19] : memref<1x200xf32, #tpu.memory_space<vmem>>, vector<1x200xf32>
      %22 = vector.broadcast %21 : vector<1x200xf32> to vector<32x200xf32>
      %23 = arith.addf %20, %22 : vector<32x200xf32>
      %c0_20 = arith.constant 0 : index
      %c0_21 = arith.constant 0 : index
      %24 = vector.load %arg2[%c0_20, %c0_21] : memref<32x200xbf16, #tpu.memory_space<vmem>>, vector<32x200xbf16>
      %25 = arith.extf %24 : vector<32x200xbf16> to vector<32x200xf32>
      %26 = arith.addf %23, %25 : vector<32x200xf32>
      %cst_22 = arith.constant dense<0.000000e+00> : vector<32xf32>
      %27 = vector.multi_reduction <add>, %26, %cst_22 [1] : vector<32x200xf32> to vector<32xf32>
      %28 = vector.shape_cast %27 : vector<32xf32> to vector<32x1xf32>
      %cst_23 = arith.constant 2.000000e+02 : f32
      %29 = vector.broadcast %cst_23 : f32 to vector<32x1xf32>
      %30 = arith.divf %28, %29 : vector<32x1xf32>
      %31 = vector.broadcast %30 : vector<32x1xf32> to vector<32x200xf32>
      %32 = arith.subf %26, %31 : vector<32x200xf32>
      %33 = arith.mulf %32, %32 : vector<32x200xf32>
      %cst_24 = arith.constant dense<0.000000e+00> : vector<32xf32>
      %34 = vector.multi_reduction <add>, %33, %cst_24 [1] : vector<32x200xf32> to vector<32xf32>
      %35 = vector.shape_cast %34 : vector<32xf32> to vector<32x1xf32>
      %cst_25 = arith.constant 2.000000e+02 : f32
      %36 = vector.broadcast %cst_25 : f32 to vector<32x1xf32>
      %37 = arith.divf %35, %36 : vector<32x1xf32>
      %cst_26 = arith.constant 9.99999974E-6 : f32
      %38 = vector.broadcast %cst_26 : f32 to vector<32x1xf32>
      %39 = arith.addf %37, %38 : vector<32x1xf32>
      %40 = math.rsqrt %39 : vector<32x1xf32>
      %41 = vector.broadcast %40 : vector<32x1xf32> to vector<32x200xf32>
      %42 = arith.mulf %32, %41 : vector<32x200xf32>
      %c0_27 = arith.constant 0 : index
      %c0_28 = arith.constant 0 : index
      %43 = vector.load %arg7[%c0_27, %c0_28] : memref<1x200xf32, #tpu.memory_space<vmem>>, vector<1x200xf32>
      %44 = vector.broadcast %43 : vector<1x200xf32> to vector<32x200xf32>
      %45 = arith.mulf %42, %44 : vector<32x200xf32>
      %c0_29 = arith.constant 0 : index
      %c0_30 = arith.constant 0 : index
      %46 = vector.load %arg8[%c0_29, %c0_30] : memref<1x200xf32, #tpu.memory_space<vmem>>, vector<1x200xf32>
      %47 = vector.broadcast %46 : vector<1x200xf32> to vector<32x200xf32>
      %48 = arith.addf %45, %47 : vector<32x200xf32>
      %49 = arith.truncf %48 : vector<32x200xf32> to vector<32x200xbf16>
      %c0_31 = arith.constant 0 : index
      %c0_32 = arith.constant 0 : index
      %50 = vector.load %arg9[%c0_31, %c0_32] : memref<32x200xbf16, #tpu.memory_space<vmem>>, vector<32x200xbf16>
      tpu.vector_store %arg9[%c0_31, %c0_32], %49 {strides = array<i32>} : memref<32x200xbf16, #tpu.memory_space<vmem>>, vector<32x200xbf16>,
    } else {
    }
    return
  }
  func.func @transform_0(%arg0: i32, %arg1: i32) -> (i32, i32) {
    %c0_i32 = arith.constant 0 : i32
    %c0_i32_0 = arith.constant 0 : i32
    return %arg0, %c0_i32 : i32, i32
  }
  func.func @transform_1(%arg0: i32, %arg1: i32) -> (i32, i32) {
    %c0_i32 = arith.constant 0 : i32
    %c0_i32_0 = arith.constant 0 : i32
    return %c0_i32, %arg1 : i32, i32
  }
  func.func @transform_2(%arg0: i32, %arg1: i32) -> (i32, i32) {
    %c0_i32 = arith.constant 0 : i32
    %c0_i32_0 = arith.constant 0 : i32
    return %c0_i32, %arg1 : i32, i32
  }
  func.func @transform_3(%arg0: i32, %arg1: i32) -> (i32, i32) {
    %c0_i32 = arith.constant 0 : i32
    %c0_i32_0 = arith.constant 0 : i32
    return %arg1, %c0_i32 : i32, i32
  }
  func.func @transform_4(%arg0: i32, %arg1: i32) -> (i32, i32) {
    %c0_i32 = arith.constant 0 : i32
    %c0_i32_0 = arith.constant 0 : i32
    %c0_i32_1 = arith.constant 0 : i32
    return %c0_i32, %c0_i32_0 : i32, i32
  }
  func.func @transform_5(%arg0: i32, %arg1: i32) -> (i32, i32) {
    %c0_i32 = arith.constant 0 : i32
    %c0_i32_0 = arith.constant 0 : i32
    %c0_i32_1 = arith.constant 0 : i32
    return %c0_i32, %c0_i32_0 : i32, i32
  }
  func.func @transform_6(%arg0: i32, %arg1: i32) -> (i32, i32) {
    %c0_i32 = arith.constant 0 : i32
    %c0_i32_0 = arith.constant 0 : i32
    %c0_i32_1 = arith.constant 0 : i32
    return %c0_i32, %c0_i32_0 : i32, i32
  }
  func.func @transform_7(%arg0: i32, %arg1: i32) -> (i32, i32) {
    %c0_i32 = arith.constant 0 : i32
    %c0_i32_0 = arith.constant 0 : i32
    return %arg0, %c0_i32 : i32, i32
  }
}

module attributes {stable_mosaic.version = 11 : i64} {
  func.func @_linear_kernel(%arg0: i32, %arg1: i32, %arg2: memref<32x200xbf16, #tpu.memory_space<vmem>>, %arg3: memref<200x128xbf16, #tpu.memory_space<vmem>>, %arg4: memref<1x128xf32, #tpu.memory_space<vmem>>, %arg5: memref<32x128xf32, #tpu.memory_space<vmem>>) attributes {dimension_semantics = [#tpu.dimension_semantics<parallel>, #tpu.dimension_semantics<parallel>], iteration_bounds = array<i64: 1, 1>, scalar_prefetch = 0 : i64, scratch_operands = 0 : i64, tpu.core_type = #tpu.core_type<tc>, window_params = [{transform_indices = @transform_0, window_bounds = array<i64: 32, 200>}, {transform_indices = @transform_1, window_bounds = array<i64: 200, 128>}, {transform_indices = @transform_2, window_bounds = array<i64: 1, 128>}, {transform_indices = @transform_3, window_bounds = array<i64: 32, 128>}]} {
    %c0 = arith.constant 0 : index
    %c0_0 = arith.constant 0 : index
    %0 = vector.load %arg2[%c0, %c0_0] : memref<32x200xbf16, #tpu.memory_space<vmem>>, vector<32x200xbf16>
    %c0_1 = arith.constant 0 : index
    %c0_2 = arith.constant 0 : index
    %1 = vector.load %arg3[%c0_1, %c0_2] : memref<200x128xbf16, #tpu.memory_space<vmem>>, vector<200x128xbf16>
    %cst = arith.constant dense<0.000000e+00> : vector<32x128xf32>
    %2 = tpu.matmul %0, %1, %cst {dimension_numbers = #tpu.dot_dimension_numbers<[1], [0], [0], [1], [0, 0, 1, 1], [], []>} : vector<32x200xbf16>, vector<200x128xbf16>, vector<32x128xf32> -> vector<32x128xf32>
    %c0_3 = arith.constant 0 : index
    %c0_4 = arith.constant 0 : index
    %3 = vector.load %arg4[%c0_3, %c0_4] : memref<1x128xf32, #tpu.memory_space<vmem>>, vector<1x128xf32>
    %4 = vector.broadcast %3 : vector<1x128xf32> to vector<32x128xf32>
    %5 = arith.addf %2, %4 : vector<32x128xf32>
    %c0_5 = arith.constant 0 : index
    %c0_6 = arith.constant 0 : index
    %6 = vector.load %arg5[%c0_5, %c0_6] : memref<32x128xf32, #tpu.memory_space<vmem>>, vector<32x128xf32>
    tpu.vector_store %arg5[%c0_5, %c0_6], %5 {strides = array<i32>} : memref<32x128xf32, #tpu.memory_space<vmem>>, vector<32x128xf32>,
    return
  }
  func.func @transform_0(%arg0: i32, %arg1: i32) -> (i32, i32) {
    %c0_i32 = arith.constant 0 : i32
    %c0_i32_0 = arith.constant 0 : i32
    return %arg0, %c0_i32 : i32, i32
  }
  func.func @transform_1(%arg0: i32, %arg1: i32) -> (i32, i32) {
    %c0_i32 = arith.constant 0 : i32
    %c0_i32_0 = arith.constant 0 : i32
    return %c0_i32, %arg1 : i32, i32
  }
  func.func @transform_2(%arg0: i32, %arg1: i32) -> (i32, i32) {
    %c0_i32 = arith.constant 0 : i32
    %c0_i32_0 = arith.constant 0 : i32
    return %c0_i32, %arg1 : i32, i32
  }
  func.func @transform_3(%arg0: i32, %arg1: i32) -> (i32, i32) {
    %c0_i32 = arith.constant 0 : i32
    return %arg0, %arg1 : i32, i32
  }
}

</mosaic_0001>

<bundles_post_ra>
// kernel: transformer_forward.10
= control target key start
LH: loop header
LB: loop body
LE: loop exit
PB: predicated region body
PF: predicated region fallthrough
CT: control target
= control target key end

     0   :  { %s619_s6 = smov 0   ;;  %s621_s7 = smov 0   ;;  %s692_s0 = inlined_call_operand.vmem [shape: bf16[2,16,600], index: 0, kind: input, shape index: {}]   ;;  %s693_s1 = inlined_call_operand.vmem [shape: bf16[2,16,200], index: 1, kind: output, shape index: {}]  }
   0x1   :  { %s623_s8 = smov 0  }
   0x2 LB: > { %s23_s9 = sadd.s32 1, %s596_s7  ;;  %p479_p0 = scmp.ge.s32.totalorder %s600_s8, 1  ;;  %s600_s8 = sphi %s623_s8, %s11_s8   ;;  %s596_s7 = sphi %s621_s7, %s695_s7   ;;  %s592_s6 = sphi %s619_s6, %s694_s6  }
   0x3   : > { %p25_p1 = scmp.ge.s32.totalorder %s23_s9, 2  ;;  %p101_p2 = scmp.lt.s32.totalorder %s600_s8, 3 }
   0x5   : > { %s697_s9 = smov (%p25_p1, %s23_s9), 0  ;;  %p102_p3 = pnand %p479_p0, %p101_p2 }
   0x6   : > { %p126_p4 = scmp.lt.s32.totalorder (!%p102_p3), %s592_s6, 1  ;;  %s602_s14 = smov (!%p102_p3), 84  }
   0x7   : > { %105 = sbr.rel (%p102_p3) target bundleno = 817 (0x331), region = 24  ;;  %s603_s15 = smov (!%p102_p3), 56  }
   0x8   : > { %s604_s16 = smov (!%p102_p3), 28   ;;  %s606_s17 = smov (!%p102_p3), 12  }
   0x9   : > { %s607_s18 = smov (!%p102_p3), 112   ;;  %s608_s19 = smov (!%p102_p3), 100  }
   0xc   : > { %s699_s6 = smov (!%p126_p4, %s592_s6), 1  ;;  %vm184_vm0 = vcmask 457728   ;;  %vm186_vm1 = vcmask 818176   ;;  %vm292_vm2 = vcmask 687104   ;;  %vm278_vm3 = vcmask 228352  }
   0xd   : > { %s525_s10 = smul.u32 40, %s699_s6  ;;  %v144_v42 = vlaneseq  ;;  %v605_v45 = vmov -1e+30   ;;  %vm207_vm5 = vcmask 130048   ;;  %vm349_vm7 = vcmask 97280   ;;  %s517_s20 = sshll.u32 %s699_s6, 4 }
   0xe   : > { %vm381_vm8 = vcmask 1043456   ;;  %vm382_vm9 = vcmask 588804   ;;  %s140_s23 = scalar_lea.vmem %s693_s1, %s517_s20 }
   0xf   : > { %s643_s13 = scalar_lea.vmem %s692_s0, %s525_s10  ;;  %v145_v43 = vshrl.u32 %v144_v42, 7  ;;  %v151_v44 = vand.u32 127, %v144_v42  ;;  %vm383_vm10 = vmor %vm382_vm9, %vm381_vm8 }
  0x10   : > { %v499_v0 = vld [vmem:[%s643_s13 + $0x8] sm:$0xf]  ;;  %v522_v1 = vld [vmem:[%s643_s13 + $0x18] sm:$0xf0]  ;;  %v256_v2 = vld [vmem:[%s643_s13] sm:$0xff] }
  0x11   : > { %v500_v3 = vor.u32 %v522_v1, %v499_v0  ;;  %v257_v4 = vld [vmem:[%s643_s13 + $0x14] sm:$0xff]  ;;  %v262_v5 = vunpack.c.l.bf16 %v256_v2  ;;  %v485_v7 = vld [vmem:[%s643_s13 + $0x4] sm:$0xf]  ;;  %v263_v11 = vunpack.c.h.bf16 %v256_v2  ;;  %v521_v14 = vld [vmem:[%s643_s13 + $0xc] sm:$0xf]  ;;  %vm152_vm4 = vcmp.le.s32.totalorder %v151_v44, %v145_v43 }
  0x12   : > { %v264_v6 = vunpack.c.l.bf16 %v257_v4  ;;  %v519_v8 = vld [vmem:[%s643_s13 + $0x14] sm:$0xf0]  ;;  %v265_v12 = vunpack.c.h.bf16 %v257_v4  ;;  %v501_v15 = vld [vmem:[%s643_s13 + $0x1c] sm:$0xf0]  ;;  %v518_v17 = vld [vmem:[%s643_s13 + $0x8] sm:$0xf] }
  0x13   : > { %288 = vrot.lane.b32.xlu0 %v500_v3, %s602_s14  ;;  %v266_v9 = vmul.f32 0.1, %v262_v5  ;;  %v486_v10 = vor.u32 %v519_v8, %v485_v7  ;;  %v487_v18 = vld [vmem:[%s643_s13 + $0x18] sm:$0xf0]  ;;  %v504_v19 = vor.u32 %v521_v14, %v501_v15  ;;  %v267_v20 = vmul.f32 0.1, %v263_v11 }
  0x14   : > { %v268_v13 = vmul.f32 0.1, %v264_v6  ;;  %v269_v21 = vmul.f32 0.1, %v265_v12  ;;  %v490_v22 = vor.u32 %v518_v17, %v487_v18  ;;  %v161_v25 = vld [vmem:[%s643_s13] sm:$0xf] }
  0x15   : > { %180 = vrot.lane.b32.xlu2 %v486_v10, %s603_s15  ;;  %v162_v26 = vld [vmem:[%s643_s13 + $0x14] sm:$0xf]  ;;  %v167_v27 = vunpack.c.l.bf16 %v161_v25  ;;  %v154_v46 = vsel %vm152_vm4, 0.0, %v605_v45  ;;  %v146_v47 = vadd.s32 8, %v145_v43  ;;  %v508_v0 = vld [vmem:[%s643_s13 + $0xc] sm:$0xf] }
  0x16   : > { %v270_v16 = vpack.c.bf16 %v268_v13, %v266_v9  ;;  %v271_v23 = vpack.c.bf16 %v269_v21, %v267_v20  ;;  %v168_v28 = vunpack.c.l.bf16 %v162_v26  ;;  %v524_v1 = vld [vmem:[%s643_s13 + $0x1c] sm:$0xf0]  ;;  %v523_v17 = vld [vmem:[%s643_s13 + $0x10] sm:$0xf]  ;;  %v510_v18 = vld [vmem:[%s643_s13 + $0x20] sm:$0xf0] }
  0x17   : > { %v169_v32 = vmul.f32 0.1, %v167_v27  ;;  %vm153_vm6 = vcmp.le.s32.totalorder %v151_v44, %v146_v47  ;;  %v509_v3 = vor.u32 %v524_v1, %v508_v0  ;;  %v513_v20 = vor.u32 %v523_v17, %v510_v18 }
  0x18   : > { %274 = vrot.lane.b32.xlu1 %v270_v16, %s604_s16  ;;  %v170_v33 = vmul.f32 0.1, %v168_v28  ;;  %v155_v51 = vsel %vm153_vm6, 0.0, %v605_v45 }
  0x1a   : > { %v171_v34 = vpack.c.bf16 %v170_v33, %v169_v32 }
  0x1b   : > { %290 = vrot.lane.b32.xlu0 %v504_v19, %s602_s14 }
  0x1d   : > { %182 = vrot.lane.b32.xlu2 %v490_v22, %s603_s15 }
  0x20   : > { %276 = vrot.lane.b32.xlu1 %v271_v23, %s604_s16  ;;  %v494_v23 = vld [vmem:[%s643_s13 + $0xc] sm:$0xf] }
  0x6f   : > { %v181_v24 = vpop.permute.xlu2 %180 }
  0x77   : > { %v183_v29 = vpop.permute.xlu2 %182 }
  0x78   : > { %v185_v30 = vsel %vm184_vm0, %v181_v24, %v183_v29  ;;  %v520_v24 = vld [vmem:[%s643_s13 + $0x1c] sm:$0xf0] }
  0x79   : > { %v191_v31 = vsel %vm186_vm1, %v185_v30, 0  ;;  %v495_v25 = vor.u32 %v520_v24, %v494_v23 }
  0x7a   : > { %200 = vmatpush.bf16.xpose.msra.mxu0 %v191_v31 }
  0x81   : > { %491 = vmatmul.msk.bf16.vlgmr.msra.gmra.mxu0 %vm186_vm1, %v171_v34 }
  0x85   : > { %v289_v35 = vpop.permute.xlu0 %288 }
  0x8a   : > { %v275_v36 = vpop.permute.xlu1 %274 }
  0x8d   : > { %v291_v37 = vpop.permute.xlu0 %290 }
  0x8e   : > { %v293_v38 = vsel %vm292_vm2, %v289_v35, %v291_v37 }
  0x8f   : > { %v298_v39 = vsel %vm186_vm1, %v293_v38, 0 }
  0x90   : > { %307 = vmatpush.bf16.xpose.msra.mxu2 %v298_v39 }
  0x92   : > { %v277_v40 = vpop.permute.xlu1 %276 }
  0x93   : > { %v279_v41 = vsel %vm278_vm3, %v275_v36, %v277_v40 }
  0x97   : > { %505 = vmatmul.msk.bf16.vlgmr.msra.gmra.mxu2 %vm186_vm1, %v279_v41 }
  0xfe   : > { %v202_v48 = vpop.f32.mrf.mxu0 }
  0xff   : > { %v203_v49 = vadd.f32 %v202_v48, %v154_v46 }
 0x101   : > { %v208_v50 = vsel %vm207_vm5, %v203_v49, -inf }
 0x102   : > { %209 = vmax.xlane.f32.xlu2 %v208_v50 }
 0x106   : > { %v204_v52 = vpop.f32.mrf.mxu0 }
 0x107   : > { %v205_v53 = vadd.f32 %v204_v52, %v155_v51 }
 0x109   : > { %v211_v54 = vsel %vm207_vm5, %v205_v53, -inf }
 0x10a   : > { %212 = vmax.xlane.f32.xlu2 %v211_v54 }
 0x11a   : > { %v309_v55 = vpop.f32.mrf.mxu2 }
 0x11b   : > { %v310_v56 = vadd.f32 %v309_v55, %v154_v46 }
 0x11d   : > { %v314_v57 = vsel %vm207_vm5, %v310_v56, -inf }
 0x11e   : > { %315 = vmax.xlane.f32.xlu0 %v314_v57 }
 0x122   : > { %v311_v58 = vpop.f32.mrf.mxu2  ;;  %345 = vrot.lane.b32.xlu2 %v509_v3, %s606_s17 }
 0x123   : > { %v312_v59 = vadd.f32 %v311_v58, %v155_v51 }
 0x125   : > { %v317_v60 = vsel %vm207_vm5, %v312_v59, -inf }
 0x126   : > { %318 = vmax.xlane.f32.xlu1 %v317_v60 }
 0x175   : > { %v210_v2 = vpop.xlane.xlu2 %209 }
 0x176   : > { %v214_v7 = vsub.f32 %v203_v49, %v210_v2 }
 0x178   : > { %v216_v10 = vmul.f32 1.442695, %v214_v7 }
 0x17d   : > { %v213_v11 = vpop.xlane.xlu2 %212 }
 0x17e   : > { %v215_v13 = vsub.f32 %v205_v53, %v213_v11 }
 0x180   : > { %v218_v15 = vmul.f32 1.442695, %v215_v13 }
 0x185   : > { %v346_v30 = vpop.permute.xlu2 %345 }
 0x191   : > { %v316_v61 = vpop.xlane.xlu0 %315 }
 0x192   : > { %v320_v62 = vsub.f32 %v310_v56, %v316_v61 }
 0x194   : > { %v322_v63 = vmul.f32 1.442695, %v320_v62 }
 0x196   : > { %562 = vpow2.f32 %v322_v63 }
 0x199   : > { %v319_v4 = vpop.xlane.xlu1 %318 }
 0x19a   : > { %v321_v5 = vsub.f32 %v312_v59, %v319_v4 }
 0x19c   : > { %v563_v6 = vpop.eup %562  ;;  %v324_v8 = vmul.f32 1.442695, %v321_v5 }
 0x19d   : > { %v326_v9 = vsel %vm207_vm5, %v563_v6, 0.0 }
 0x19e   : > { %564 = vpow2.f32 %v324_v8  ;;  %327 = vadd.xlane.f32.xlu0 %v326_v9 }
 0x19f   : > { %566 = vpow2.f32 %v216_v10 }
 0x1a0   : > { %568 = vpow2.f32 %v218_v15 }
 0x1a4   : > { %v565_v12 = vpop.eup %564 }
 0x1a5   : > { %v329_v14 = vsel %vm207_vm5, %v565_v12, 0.0  ;;  %v567_v16 = vpop.eup %566 }
 0x1a6   : > { %330 = vadd.xlane.f32.xlu1 %v329_v14  ;;  %v220_v19 = vsel %vm207_vm5, %v567_v16, 0.0  ;;  %v569_v21 = vpop.eup %568 }
 0x1a7   : > { %v223_v22 = vsel %vm207_vm5, %v569_v21, 0.0 }
 0x1ae   : > { %221 = vadd.xlane.f32.xlu1 %v220_v19 }
 0x1b2   : > { %347 = vrot.lane.b32.xlu0 %v513_v20, %s606_s17 }
 0x1b6   : > { %224 = vadd.xlane.f32.xlu1 %v223_v22 }
 0x1cf   : > { %236 = vrot.lane.b32.xlu1 %v495_v25, %s607_s18 }
 0x211   : > { %v328_v26 = vpop.xlane.xlu0 %327 }
 0x219   : > { %v331_v27 = vpop.xlane.xlu1 %330 }
 0x21a   : > { %570 = vrcp.f32 %v331_v27 }
 0x21b   : > { %572 = vrcp.f32 %v328_v26 }
 0x220   : > { %v571_v28 = vpop.eup %570 }
 0x221   : > { %v573_v29 = vpop.eup %572  ;;  %v335_v31 = vmul.f32 %v571_v28, %v565_v12  ;;  %v222_v36 = vpop.xlane.xlu1 %221 }
 0x222   : > { %v334_v34 = vmul.f32 %v573_v29, %v563_v6 }
 0x224   : > { %v348_v32 = vpop.permute.xlu0 %347  ;;  %v336_v35 = vpack.c.bf16 %v335_v31, %v334_v34 }
 0x225   : > { %v350_v33 = vsel %vm349_vm7, %v346_v30, %v348_v32 }
 0x226   : > { %362 = vmatpush.bf16.msra.mxu3 %v350_v33 }
 0x229   : > { %514 = vmatmul.msk.bf16.vlgmr.msra.gmra.mxu3 %vm207_vm5, %v336_v35  ;;  %v225_v37 = vpop.xlane.xlu1 %224 }
 0x22a   : > { %574 = vrcp.f32 %v225_v37 }
 0x22b   : > { %576 = vrcp.f32 %v222_v36 }
 0x230   : > { %v575_v38 = vpop.eup %574 }
 0x231   : > { %v577_v39 = vpop.eup %576  ;;  %v229_v40 = vmul.f32 %v575_v38, %v569_v21 }
 0x232   : > { %v228_v42 = vmul.f32 %v577_v39, %v567_v16 }
 0x234   : > { %v230_v43 = vpack.c.bf16 %v229_v40, %v228_v42 }
 0x241   : > { %v237_v41 = vpop.permute.xlu1 %236 }
 0x242   : > { %249 = vmatpush.bf16.msra.mxu1 %v237_v41 }
 0x245   : > { %496 = vmatmul.msk.bf16.vlgmr.msra.gmra.mxu1 %vm207_vm5, %v230_v43 }
 0x2ac   : > { %v364_v44 = vpop.f32.mrf.mxu3 }
 0x2b4   : > { %v366_v45 = vpop.f32.mrf.mxu3 }
 0x2b5   : > { %v557_v46 = vpack.i.bf16 %v366_v45, %v364_v44 }
 0x2b7   : > { %558 = vrot.lane.b32.xlu0 %v557_v46, %s608_s19 }
 0x2c2   : > { %v251_v47 = vpop.f32.mrf.mxu1 }
 0x2ca   : > { %v253_v51 = vpop.f32.mrf.mxu1 }
 0x329   : > { %v559_v48 = vpop.permute.xlu0 %558 }
 0x32a   : > { %v561_v49 = vunpack.i.h.bf16 %v559_v48  ;;  %v560_v50 = vunpack.i.l.bf16 %v559_v48 }
 0x32c   : > { %v378_v52 = vsel %vm186_vm1, %v253_v51, %v561_v49  ;;  %v377_v53 = vsel %vm186_vm1, %v251_v47, %v560_v50 }
 0x32d   : > { %v380_v54 = vpack.c.bf16 %v561_v49, %v378_v52  ;;  %v379_v55 = vpack.c.bf16 %v560_v50, %v377_v53 }
 0x32f   : > { %385 = vst.msk [vmem:[%s140_s23 + $0x8] sm:$0xff] %vm383_vm10, %v380_v54 }
 0x330   : > { %384 = vst.msk [vmem:[%s140_s23] sm:$0xff] %vm383_vm10, %v379_v55 }
 0x331 PF: > { %s11_s8 = sadd.s32 1, %s600_s8   ;;  %s694_s6 = smov %s596_s7 }
 0x332   : > { %p8_p5 = scmp.ge.s32.totalorder %s11_s8, 4   ;;  %s695_s7 = smov %s697_s9 }
 0x334   :  { %10 = sbr.rel (!%p8_p5) target bundleno = 2 (0x2), region = 55 }

// kernel: transformer_forward.11
= control target key start
LH: loop header
LB: loop body
LE: loop exit
PB: predicated region body
PF: predicated region fallthrough
CT: control target
= control target key end

     0   :  { %vm209_vm0 = vcmask 1043456   ;;  %vm202_vm1 = vcmask 588800   ;;  %vm459_vm6 = vcmask 588804   ;;  %s965_s1 = inlined_call_operand.vmem [shape: bf16[200,200], index: 1, kind: input, shape index: {}]   ;;  %s966_s0 = inlined_call_operand.vmem [shape: bf16[32,200], index: 0, kind: input, shape index: {}]   ;;  %s967_s2 = inlined_call_operand.vmem [shape: f32[1,200], index: 2, kind: input, shape index: {}]   ;;  %s968_s3 = inlined_call_operand.vmem [shape: bf16[32,200], index: 3, kind: input, shape index: {}]   ;;  %s969_s4 = inlined_call_operand.vmem [shape: f32[1,200], index: 4, kind: input, shape index: {}]   ;;  %s970_s5 = inlined_call_operand.vmem [shape: f32[1,200], index: 5, kind: input, shape index: {}]   ;;  %s971_s6 = inlined_call_operand.vmem [shape: bf16[32,200], index: 6, kind: output, shape index: {}]  }
   0x1   :  { %v543_v0 = vld [vmem:[%s965_s1 + $0x70] sm:$0xf]  ;;  %v604_v1 = vld [vmem:[%s965_s1 + $0x74] sm:$0xf0]  ;;  %v603_v2 = vld [vmem:[%s965_s1 + $0x74] sm:$0xf] }
   0x2   :  { %v544_v3 = vor.u32 %v604_v1, %v543_v0  ;;  %v545_v4 = vld [vmem:[%s965_s1 + $0x78] sm:$0xf0]  ;;  %v535_v5 = vld [vmem:[%s965_s1 + $0x60] sm:$0xf]  ;;  %v602_v6 = vld [vmem:[%s965_s1 + $0x64] sm:$0xf0] }
   0x3   :  { %v548_v7 = vor.u32 %v603_v2, %v545_v4  ;;  %v601_v8 = vld [vmem:[%s965_s1 + $0x64] sm:$0xf]  ;;  %v537_v9 = vld [vmem:[%s965_s1 + $0x68] sm:$0xf0]  ;;  %v536_v11 = vor.u32 %v602_v6, %v535_v5  ;;  %v527_v15 = vld [vmem:[%s965_s1 + $0x50] sm:$0xf] }
   0x4   :  { %v52_v10 = vld [vmem:[%s965_s1 + $0xc0] sm:$0xff]  ;;  %216 = vmatpush.bf16.msra.mxu0 %v544_v3  ;;  %v540_v14 = vor.u32 %v601_v8, %v537_v9  ;;  %v600_v16 = vld [vmem:[%s965_s1 + $0x54] sm:$0xf0]  ;;  %v599_v17 = vld [vmem:[%s965_s1 + $0x54] sm:$0xf] }
   0x5   :  { %v151_v12 = vunpack.c.h.b16 %v52_v10  ;;  %v150_v13 = vunpack.c.l.b16 %v52_v10  ;;  %254 = vmatpush.bf16.msra.mxu2 %v548_v7  ;;  %v529_v19 = vld [vmem:[%s965_s1 + $0x58] sm:$0xf0]  ;;  %v611_v20 = vld [vmem:[%s965_s1 + $0xb4] sm:$0xf]  ;;  %v528_v24 = vor.u32 %v600_v16, %v527_v15  ;;  %v519_v25 = vld [vmem:[%s965_s1 + $0x40] sm:$0xf] }
   0x6   :  { %v577_v21 = vld [vmem:[%s965_s1 + $0xb8] sm:$0xf0]  ;;  %v598_v26 = vld [vmem:[%s965_s1 + $0x44] sm:$0xf0]  ;;  %v532_v28 = vor.u32 %v599_v17, %v529_v19  ;;  %v597_v30 = vld [vmem:[%s965_s1 + $0x44] sm:$0xf] }
   0x7   :  { %v177_v18 = vpack.c.b16 %v151_v12, %v151_v12  ;;  %v176_v22 = vpack.c.b16 %v150_v13, %v150_v13  ;;  %v580_v29 = vor.u32 %v611_v20, %v577_v21  ;;  %v521_v31 = vld [vmem:[%s965_s1 + $0x48] sm:$0xf0]  ;;  %v609_v32 = vld [vmem:[%s965_s1 + $0xa4] sm:$0xf]  ;;  %v575_v34 = vld [vmem:[%s965_s1 + $0xb0] sm:$0xf]  ;;  %v520_v37 = vor.u32 %v598_v26, %v519_v25 }
   0x8   :  { %217 = vmatpush.bf16.msra.mxu0 %v536_v11  ;;  %v569_v33 = vld [vmem:[%s965_s1 + $0xa8] sm:$0xf0]  ;;  %v612_v35 = vld [vmem:[%s965_s1 + $0xb4] sm:$0xf0]  ;;  %v511_v38 = vld [vmem:[%s965_s1 + $0x30] sm:$0xf]  ;;  %v524_v40 = vor.u32 %v597_v30, %v521_v31 }
   0x9   :  { %v214_v23 = vsel %vm209_vm0, %v177_v18, 0  ;;  %v211_v27 = vsel %vm209_vm0, %v176_v22, 0  ;;  %255 = vmatpush.bf16.msra.mxu2 %v540_v14  ;;  %v576_v36 = vor.u32 %v612_v35, %v575_v34  ;;  %v567_v39 = vld [vmem:[%s965_s1 + $0xa0] sm:$0xf]  ;;  %v572_v41 = vor.u32 %v609_v32, %v569_v33  ;;  %v596_v42 = vld [vmem:[%s965_s1 + $0x34] sm:$0xf0]  ;;  %vm923_vm8 = vmor %vm459_vm6, %vm209_vm0 }
   0xa   :  { %276 = vmatpush.bf16.msra.mxu3 %v214_v23  ;;  %238 = vmatpush.bf16.msra.mxu1 %v211_v27  ;;  %v595_v43 = vld [vmem:[%s965_s1 + $0x34] sm:$0xf]  ;;  %v610_v44 = vld [vmem:[%s965_s1 + $0xa4] sm:$0xf0]  ;;  %v513_v45 = vld [vmem:[%s965_s1 + $0x38] sm:$0xf0]  ;;  %v512_v51 = vor.u32 %v596_v42, %v511_v38 }
   0xb   :  { %v607_v46 = vld [vmem:[%s965_s1 + $0x94] sm:$0xf]  ;;  %v561_v47 = vld [vmem:[%s965_s1 + $0x98] sm:$0xf0]  ;;  %v568_v48 = vor.u32 %v610_v44, %v567_v39  ;;  %v559_v49 = vld [vmem:[%s965_s1 + $0x90] sm:$0xf]  ;;  %v516_v52 = vor.u32 %v595_v43, %v513_v45 }
   0xc   :  { %218 = vmatpush.bf16.msra.mxu0 %v528_v24  ;;  %v608_v50 = vld [vmem:[%s965_s1 + $0x94] sm:$0xf0]  ;;  %v564_v53 = vor.u32 %v607_v46, %v561_v47  ;;  %v503_v54 = vld [vmem:[%s965_s1 + $0x20] sm:$0xf]  ;;  %v594_v55 = vld [vmem:[%s965_s1 + $0x24] sm:$0xf0] }
   0xd   :  { %256 = vmatpush.bf16.msra.mxu2 %v532_v28  ;;  %v593_v56 = vld [vmem:[%s965_s1 + $0x24] sm:$0xf]  ;;  %v505_v57 = vld [vmem:[%s965_s1 + $0x28] sm:$0xf0]  ;;  %v560_v60 = vor.u32 %v608_v50, %v559_v49  ;;  %v551_v61 = vld [vmem:[%s965_s1 + $0x80] sm:$0xf]  ;;  %v504_v63 = vor.u32 %v594_v55, %v503_v54 }
   0xe   :  { %277 = vmatpush.bf16.msra.mxu3 %v580_v29  ;;  %239 = vmatpush.bf16.msra.mxu1 %v576_v36  ;;  %v605_v58 = vld [vmem:[%s965_s1 + $0x84] sm:$0xf]  ;;  %v553_v59 = vld [vmem:[%s965_s1 + $0x88] sm:$0xf0]  ;;  %v606_v62 = vld [vmem:[%s965_s1 + $0x84] sm:$0xf0]  ;;  %v508_v1 = vor.u32 %v593_v56, %v505_v57 }
   0xf   :  { %v495_v0 = vld [vmem:[%s965_s1 + $0x10] sm:$0xf]  ;;  %v556_v2 = vor.u32 %v605_v58, %v553_v59  ;;  %v592_v3 = vld [vmem:[%s965_s1 + $0x14] sm:$0xf0]  ;;  %v585_v4 = vld [vmem:[%s966_s0 + $0x4] sm:$0xf]  ;;  %v552_v8 = vor.u32 %v606_v62, %v551_v61 }
  0x10   :  { %219 = vmatpush.bf16.msra.mxu0 %v520_v37  ;;  %v473_v5 = vld [vmem:[%s966_s0 + $0x8] sm:$0xf0]  ;;  %v591_v6 = vld [vmem:[%s965_s1 + $0x14] sm:$0xf]  ;;  %v497_v7 = vld [vmem:[%s965_s1 + $0x18] sm:$0xf0]  ;;  %v496_v9 = vor.u32 %v592_v3, %v495_v0 }
  0x11   :  { %257 = vmatpush.bf16.msra.mxu2 %v524_v40  ;;  %v476_v10 = vor.u32 %v585_v4, %v473_v5  ;;  %v500_v11 = vor.u32 %v591_v6, %v497_v7  ;;  %v487_v12 = vld [vmem:[%s965_s1] sm:$0xf]  ;;  %v590_v13 = vld [vmem:[%s965_s1 + $0x4] sm:$0xf0]  ;;  %v589_v14 = vld [vmem:[%s965_s1 + $0x4] sm:$0xf] }
  0x12   :  { %278 = vmatpush.bf16.msra.mxu3 %v572_v41  ;;  %240 = vmatpush.bf16.msra.mxu1 %v568_v48  ;;  %v489_v15 = vld [vmem:[%s965_s1 + $0x8] sm:$0xf0]  ;;  %v488_v16 = vor.u32 %v590_v13, %v487_v12  ;;  %v471_v17 = vld [vmem:[%s966_s0] sm:$0xf]  ;;  %v586_v18 = vld [vmem:[%s966_s0 + $0x4] sm:$0xf0] }
  0x13   :  { %v492_v19 = vor.u32 %v589_v14, %v489_v15  ;;  %v472_v20 = vor.u32 %v586_v18, %v471_v17  ;;  %v587_v21 = vld [vmem:[%s966_s0 + $0x14] sm:$0xf]  ;;  %v481_v22 = vld [vmem:[%s966_s0 + $0x18] sm:$0xf0]  ;;  %v479_v24 = vld [vmem:[%s966_s0 + $0x10] sm:$0xf] }
  0x14   :  { %220 = vmatpush.bf16.msra.mxu0 %v512_v51  ;;  %v484_v23 = vor.u32 %v587_v21, %v481_v22  ;;  %v588_v25 = vld [vmem:[%s966_s0 + $0x14] sm:$0xf0]  ;;  %v53_v27 = vld [vmem:[%s967_s2] sm:$0x3]  ;;  %v293_v47 = vld [vmem:[%s968_s3 + $0x8] sm:$0xff] }
  0x15   :  { %258 = vmatpush.bf16.msra.mxu2 %v516_v52  ;;  %v480_v26 = vor.u32 %v588_v25, %v479_v24  ;;  %v55_v28 = vperm.slane %v53_v27, 0  ;;  %v56_v33 = vperm.slane %v53_v27, 1  ;;  %v292_v34 = vld [vmem:[%s968_s3] sm:$0xff]  ;;  %v298_v55 = vunpack.c.l.bf16 %v293_v47  ;;  %v295_v12 = vld [vmem:[%s968_s3 + $0x18] sm:$0xff] }
  0x16   :  { %279 = vmatpush.bf16.msra.mxu3 %v564_v53  ;;  %241 = vmatpush.bf16.msra.mxu1 %v560_v60  ;;  %v296_v37 = vunpack.c.l.bf16 %v292_v34  ;;  %v297_v40 = vunpack.c.h.bf16 %v292_v34  ;;  %v299_v53 = vunpack.c.h.bf16 %v293_v47  ;;  %v294_v60 = vld [vmem:[%s968_s3 + $0x10] sm:$0xff]  ;;  %v303_v17 = vunpack.c.h.bf16 %v295_v12 }
  0x17   :  { %v300_v3 = vunpack.c.l.bf16 %v294_v60  ;;  %v301_v5 = vunpack.c.h.bf16 %v294_v60 }
  0x18   :  { %221 = vmatpush.bf16.msra.mxu0 %v504_v63 }
  0x19   :  { %259 = vmatpush.bf16.msra.mxu2 %v508_v1 }
  0x1a   :  { %280 = vmatpush.bf16.msra.mxu3 %v556_v2  ;;  %242 = vmatpush.bf16.msra.mxu1 %v552_v8 }
  0x1c   :  { %222 = vmatpush.bf16.msra.mxu0 %v496_v9 }
  0x1d   :  { %583 = vmatmul.msk.bf16.vlgmr.msra.gmra.mxu3 %vm202_vm1, %v476_v10  ;;  %260 = vmatpush.bf16.msra.mxu2 %v500_v11 }
  0x1e   :  { %581 = vmatmul.msk.bf16.vlgmr.msra.gmra.mxu1 %vm202_vm1, %v476_v10 }
  0x20   :  { %223 = vmatpush.bf16.msra.mxu0 %v488_v16 }
  0x21   :  { %261 = vmatpush.bf16.msra.mxu2 %v492_v19 }
  0x23   :  { %224 = vmatmul.bf16.vlgmr.msra.gmra.mxu0 %v472_v20 }
  0x24   :  { %262 = vmatmul.bf16.vlgmr.msra.gmra.mxu2 %v472_v20  ;;  %v302_v20 = vunpack.c.l.bf16 %v295_v12 }
  0x2d   :  { %584 = vmatmul.msk.bf16.gmra.mxu3 %vm202_vm1, %v484_v23 }
  0x2e   :  { %582 = vmatmul.msk.bf16.gmra.mxu1 %vm202_vm1, %v484_v23 }
  0x33   :  { %229 = vmatmul.bf16.gmra.mxu0 %v480_v26 }
  0x34   :  { %267 = vmatmul.bf16.gmra.mxu2 %v480_v26  ;;  %v624_v26 = vmov 200.0  }
  0x35   :  { %614 = vrcp.f32 %v624_v26 }
  0x3b   :  { %v615_v27 = vpop.eup %614 }
  0x3c   :  { %vm333_vm2 = vweird.f32 %v615_v27 }
  0x9b   :  { %v244_v30 = vpop.f32.mrf.mxu1 }
  0xa0   :  { %v225_v29 = vpop.f32.mrf.mxu0  ;;  %v282_v32 = vpop.f32.mrf.mxu3 }
  0xa1   :  { %v226_v31 = vadd.f32 %v225_v29, %v55_v28 }
  0xa3   :  { %v245_v35 = vadd.f32 %v244_v30, %v226_v31  ;;  %v246_v42 = vpop.f32.mrf.mxu1 }
  0xa5   :  { %v304_v43 = vadd.f32 %v296_v37, %v245_v35 }
  0xa7   :  { %v263_v36 = vpop.f32.mrf.mxu2 }
  0xa8   :  { %v264_v38 = vadd.f32 %v263_v36, %v56_v33  ;;  %v227_v39 = vpop.f32.mrf.mxu0  ;;  %v284_v46 = vpop.f32.mrf.mxu3 }
  0xa9   :  { %v228_v45 = vadd.f32 %v227_v39, %v55_v28 }
  0xaa   :  { %v283_v41 = vadd.f32 %v282_v32, %v264_v38 }
  0xab   :  { %v247_v54 = vadd.f32 %v246_v42, %v228_v45  ;;  %v249_v58 = vpop.f32.mrf.mxu1 }
  0xac   :  { %v305_v44 = vadd.f32 %v297_v40, %v283_v41 }
  0xad   :  { %v306_v61 = vadd.f32 %v298_v55, %v247_v54 }
  0xae   :  { %v312_v48 = vsel %vm202_vm1, %v305_v44, 0.0 }
  0xaf   :  { %v265_v49 = vpop.f32.mrf.mxu2  ;;  %v313_v50 = vadd.f32 %v312_v48, %v304_v43 }
  0xb0   :  { %v266_v51 = vadd.f32 %v265_v49, %v56_v33  ;;  %v230_v52 = vpop.f32.mrf.mxu0  ;;  %v287_v63 = vpop.f32.mrf.mxu3 }
  0xb1   :  { %314 = vadd.xlane.f32.xlu0 %v313_v50  ;;  %v231_v57 = vadd.f32 %v230_v52, %v55_v28 }
  0xb2   :  { %v285_v56 = vadd.f32 %v284_v46, %v266_v51 }
  0xb3   :  { %v250_v0 = vadd.f32 %v249_v58, %v231_v57  ;;  %v251_v11 = vpop.f32.mrf.mxu1 }
  0xb4   :  { %v307_v59 = vadd.f32 %v299_v53, %v285_v56 }
  0xb5   :  { %v308_v8 = vadd.f32 %v300_v3, %v250_v0 }
  0xb6   :  { %v316_v62 = vsel %vm202_vm1, %v307_v59, 0.0 }
  0xb7   :  { %v268_v1 = vpop.f32.mrf.mxu2  ;;  %v317_v2 = vadd.f32 %v316_v62, %v306_v61 }
  0xb8   :  { %v269_v4 = vadd.f32 %v268_v1, %v56_v33  ;;  %v232_v7 = vpop.f32.mrf.mxu0  ;;  %v289_v18 = vpop.f32.mrf.mxu3 }
  0xb9   :  { %318 = vadd.xlane.f32.xlu0 %v317_v2  ;;  %v233_v10 = vadd.f32 %v232_v7, %v55_v28  ;;  %v329_v28 = vmul.f32 200.0, %v615_v27 }
  0xba   :  { %v288_v6 = vadd.f32 %v287_v63, %v269_v4 }
  0xbb   :  { %v252_v19 = vadd.f32 %v251_v11, %v233_v10  ;;  %v330_v29 = vsub.f32 1.0, %v329_v28 }
  0xbc   :  { %v309_v9 = vadd.f32 %v301_v5, %v288_v6 }
  0xbd   :  { %v310_v23 = vadd.f32 %v302_v20, %v252_v19  ;;  %v331_v30 = vmul.f32 %v615_v27, %v330_v29 }
  0xbe   :  { %v320_v13 = vsel %vm202_vm1, %v309_v9, 0.0 }
  0xbf   :  { %v270_v14 = vpop.f32.mrf.mxu2  ;;  %v321_v15 = vadd.f32 %v320_v13, %v308_v8  ;;  %v332_v31 = vadd.f32 %v615_v27, %v331_v30  ;;  %v427_v13 = vld [vmem:[%s969_s4] sm:$0x3] }
  0xc0   :  { %v271_v16 = vadd.f32 %v270_v14, %v56_v33  ;;  %v907_v20 = vperm.slane %v427_v13, 0 }
  0xc1   :  { %322 = vadd.xlane.f32.xlu1 %v321_v15  ;;  %v856_v32 = vsel %vm333_vm2, %v615_v27, %v332_v31 }
  0xc2   :  { %v290_v21 = vadd.f32 %v289_v18, %v271_v16 }
  0xc4   :  { %v311_v22 = vadd.f32 %v303_v17, %v290_v21  ;;  %v441_v17 = vld [vmem:[%s970_s5] sm:$0x3]  ;;  %v909_v21 = vperm.slane %v427_v13, 1 }
  0xc6   :  { %v324_v24 = vsel %vm202_vm1, %v311_v22, 0.0 }
  0xc7   :  { %v325_v25 = vadd.f32 %v324_v24, %v310_v23  ;;  %v911_v24 = vperm.slane %v441_v17, 0 }
  0xc9   :  { %326 = vadd.xlane.f32.xlu1 %v325_v25  ;;  %v913_v25 = vperm.slane %v441_v17, 1 }
 0x124   :  { %v315_v33 = vpop.xlane.xlu0 %314 }
 0x125   :  { %v335_v34 = vmul.f32 %v856_v32, %v315_v33 }
 0x127   :  { %v859_v35 = vsub.f32 %v304_v43, %v335_v34  ;;  %v861_v36 = vsub.f32 %v305_v44, %v335_v34 }
 0x129   :  { %v347_v37 = vmul.f32 %v859_v35, %v859_v35  ;;  %v348_v38 = vmul.f32 %v861_v36, %v861_v36 }
 0x12b   :  { %v355_v39 = vsel %vm202_vm1, %v348_v38, 0.0 }
 0x12c   :  { %v319_v40 = vpop.xlane.xlu0 %318  ;;  %v356_v41 = vadd.f32 %v355_v39, %v347_v37 }
 0x12d   :  { %v336_v42 = vmul.f32 %v856_v32, %v319_v40 }
 0x12e   :  { %357 = vadd.xlane.f32.xlu2 %v356_v41 }
 0x12f   :  { %v869_v45 = vsub.f32 %v306_v61, %v336_v42  ;;  %v871_v46 = vsub.f32 %v307_v59, %v336_v42 }
 0x131   :  { %v349_v43 = vmul.f32 %v869_v45, %v869_v45  ;;  %v350_v44 = vmul.f32 %v871_v46, %v871_v46 }
 0x133   :  { %v359_v47 = vsel %vm202_vm1, %v350_v44, 0.0 }
 0x134   :  { %v323_v48 = vpop.xlane.xlu1 %322  ;;  %v360_v49 = vadd.f32 %v359_v47, %v349_v43 }
 0x135   :  { %v337_v50 = vmul.f32 %v856_v32, %v323_v48 }
 0x136   :  { %361 = vadd.xlane.f32.xlu2 %v360_v49 }
 0x137   :  { %v879_v51 = vsub.f32 %v308_v8, %v337_v50  ;;  %v881_v52 = vsub.f32 %v309_v9, %v337_v50 }
 0x139   :  { %v351_v53 = vmul.f32 %v879_v51, %v879_v51  ;;  %v352_v54 = vmul.f32 %v881_v52, %v881_v52 }
 0x13b   :  { %v363_v55 = vsel %vm202_vm1, %v352_v54, 0.0 }
 0x13c   :  { %v327_v56 = vpop.xlane.xlu1 %326  ;;  %v364_v57 = vadd.f32 %v363_v55, %v351_v53 }
 0x13d   :  { %v338_v58 = vmul.f32 %v856_v32, %v327_v56 }
 0x13e   :  { %365 = vadd.xlane.f32.xlu0 %v364_v57 }
 0x13f   :  { %v889_v59 = vsub.f32 %v310_v23, %v338_v58  ;;  %v891_v60 = vsub.f32 %v311_v22, %v338_v58 }
 0x141   :  { %v353_v61 = vmul.f32 %v889_v59, %v889_v59  ;;  %v354_v62 = vmul.f32 %v891_v60, %v891_v60 }
 0x143   :  { %v367_v63 = vsel %vm202_vm1, %v354_v62, 0.0 }
 0x144   :  { %v368_v0 = vadd.f32 %v367_v63, %v353_v61 }
 0x146   :  { %369 = vadd.xlane.f32.xlu1 %v368_v0 }
 0x1a1   :  { %v358_v1 = vpop.xlane.xlu2 %357 }
 0x1a2   :  { %v371_v2 = vmul.f32 %v358_v1, %v856_v32 }
 0x1a4   :  { %v375_v3 = vadd.f32 1e-05, %v371_v2 }
 0x1a6   :  { %616 = vrsqrt.f32 %v375_v3  ;;  %vm385_vm4 = vweird.f32 %v375_v3 }
 0x1a9   :  { %v362_v4 = vpop.xlane.xlu2 %361 }
 0x1aa   :  { %v372_v5 = vmul.f32 %v362_v4, %v856_v32 }
 0x1ac   :  { %v617_v6 = vpop.eup %616  ;;  %v376_v7 = vadd.f32 1e-05, %v372_v5 }
 0x1ad   :  { %v380_v8 = vmul.f32 %v617_v6, %v375_v3  ;;  %vm386_vm3 = vweird.f32 %v617_v6 }
 0x1ae   :  { %618 = vrsqrt.f32 %v376_v7  ;;  %vm387_vm5 = vmor %vm385_vm4, %vm386_vm3  ;;  %vm395_vm9 = vweird.f32 %v376_v7 }
 0x1af   :  { %v381_v9 = vmul.f32 %v617_v6, %v380_v8 }
 0x1b1   :  { %v382_v10 = vmul.f32 0.5, %v381_v9  ;;  %v366_v11 = vpop.xlane.xlu0 %365 }
 0x1b2   :  { %v373_v12 = vmul.f32 %v366_v11, %v856_v32 }
 0x1b3   :  { %v383_v14 = vsub.f32 1.5, %v382_v10 }
 0x1b4   :  { %v619_v15 = vpop.eup %618  ;;  %v377_v16 = vadd.f32 1e-05, %v373_v12 }
 0x1b5   :  { %v384_v18 = vmul.f32 %v617_v6, %v383_v14  ;;  %v390_v19 = vmul.f32 %v619_v15, %v376_v7  ;;  %vm396_vm7 = vweird.f32 %v619_v15 }
 0x1b6   :  { %620 = vrsqrt.f32 %v377_v16  ;;  %vm397_vm10 = vmor %vm395_vm9, %vm396_vm7  ;;  %vm405_vm12 = vweird.f32 %v377_v16 }
 0x1b7   :  { %v388_v22 = vsel %vm387_vm5, %v617_v6, %v384_v18  ;;  %v391_v23 = vmul.f32 %v619_v15, %v390_v19 }
 0x1b8   :  { %v419_v26 = vmul.f32 %v388_v22, %v859_v35  ;;  %v420_v27 = vmul.f32 %v388_v22, %v861_v36 }
 0x1b9   :  { %v392_v28 = vmul.f32 0.5, %v391_v23  ;;  %v370_v29 = vpop.xlane.xlu1 %369 }
 0x1ba   :  { %v433_v30 = vmul.f32 %v907_v20, %v419_v26  ;;  %v434_v31 = vmul.f32 %v909_v21, %v420_v27  ;;  %v374_v33 = vmul.f32 %v370_v29, %v856_v32 }
 0x1bb   :  { %v393_v34 = vsub.f32 1.5, %v392_v28 }
 0x1bc   :  { %v621_v37 = vpop.eup %620  ;;  %v447_v38 = vadd.f32 %v911_v24, %v433_v30  ;;  %v448_v39 = vadd.f32 %v913_v25, %v434_v31  ;;  %v378_v40 = vadd.f32 1e-05, %v374_v33 }
 0x1bd   :  { %v394_v36 = vmul.f32 %v619_v15, %v393_v34  ;;  %v400_v41 = vmul.f32 %v621_v37, %v377_v16  ;;  %vm406_vm11 = vweird.f32 %v621_v37 }
 0x1be   :  { %v455_v42 = vpack.c.bf16 %v448_v39, %v447_v38  ;;  %622 = vrsqrt.f32 %v378_v40  ;;  %vm407_vm13 = vmor %vm405_vm12, %vm406_vm11  ;;  %vm415_vm15 = vweird.f32 %v378_v40 }
 0x1bf   :  { %v398_v32 = vsel %vm397_vm10, %v619_v15, %v394_v36  ;;  %v401_v43 = vmul.f32 %v621_v37, %v400_v41 }
 0x1c0   :  { %461 = vst.msk [vmem:[%s971_s6] sm:$0xff] %vm923_vm8, %v455_v42  ;;  %v421_v44 = vmul.f32 %v398_v32, %v869_v45  ;;  %v422_v47 = vmul.f32 %v398_v32, %v871_v46 }
 0x1c1   :  { %v402_v48 = vmul.f32 0.5, %v401_v43 }
 0x1c2   :  { %v435_v49 = vmul.f32 %v907_v20, %v421_v44  ;;  %v436_v50 = vmul.f32 %v909_v21, %v422_v47 }
 0x1c3   :  { %v403_v53 = vsub.f32 1.5, %v402_v48 }
 0x1c4   :  { %v623_v54 = vpop.eup %622  ;;  %v449_v55 = vadd.f32 %v911_v24, %v435_v49  ;;  %v450_v56 = vadd.f32 %v913_v25, %v436_v50 }
 0x1c5   :  { %v404_v57 = vmul.f32 %v621_v37, %v403_v53  ;;  %v410_v58 = vmul.f32 %v623_v54, %v378_v40  ;;  %vm416_vm14 = vweird.f32 %v623_v54 }
 0x1c6   :  { %v456_v61 = vpack.c.bf16 %v450_v56, %v449_v55  ;;  %vm417_vm0 = vmor %vm415_vm15, %vm416_vm14 }
 0x1c7   :  { %v408_v45 = vsel %vm407_vm13, %v621_v37, %v404_v57  ;;  %v411_v62 = vmul.f32 %v623_v54, %v410_v58 }
 0x1c8   :  { %462 = vst.msk [vmem:[%s971_s6 + $0x8] sm:$0xff] %vm923_vm8, %v456_v61  ;;  %v423_v46 = vmul.f32 %v408_v45, %v879_v51  ;;  %v424_v63 = vmul.f32 %v408_v45, %v881_v52 }
 0x1c9   :  { %v412_v0 = vmul.f32 0.5, %v411_v62 }
 0x1ca   :  { %v437_v1 = vmul.f32 %v907_v20, %v423_v46  ;;  %v438_v2 = vmul.f32 %v909_v21, %v424_v63 }
 0x1cb   :  { %v413_v3 = vsub.f32 1.5, %v412_v0 }
 0x1cc   :  { %v451_v4 = vadd.f32 %v911_v24, %v437_v1  ;;  %v452_v5 = vadd.f32 %v913_v25, %v438_v2 }
 0x1cd   :  { %v414_v6 = vmul.f32 %v623_v54, %v413_v3 }
 0x1ce   :  { %v457_v7 = vpack.c.bf16 %v452_v5, %v451_v4 }
 0x1cf   :  { %v418_v8 = vsel %vm417_vm0, %v623_v54, %v414_v6 }
 0x1d0   :  { %463 = vst.msk [vmem:[%s971_s6 + $0x10] sm:$0xff] %vm923_vm8, %v457_v7  ;;  %v425_v51 = vmul.f32 %v418_v8, %v889_v59  ;;  %v426_v52 = vmul.f32 %v418_v8, %v891_v60 }
 0x1d2   :  { %v439_v9 = vmul.f32 %v907_v20, %v425_v51  ;;  %v440_v10 = vmul.f32 %v909_v21, %v426_v52 }
 0x1d4   :  { %v453_v11 = vadd.f32 %v911_v24, %v439_v9  ;;  %v454_v12 = vadd.f32 %v913_v25, %v440_v10 }
 0x1d6   :  { %v458_v13 = vpack.c.bf16 %v454_v12, %v453_v11 }
 0x1d8   :  { %464 = vst.msk [vmem:[%s971_s6 + $0x18] sm:$0xff] %vm923_vm8, %v458_v13 }

// kernel: transformer_forward.9
= control target key start
LH: loop header
LB: loop body
LE: loop exit
PB: predicated region body
PF: predicated region fallthrough
CT: control target
= control target key end

     0   :  { %vm456_vm0 = vcmask 1043456   ;;  %vm449_vm1 = vcmask 588800   ;;  %vm676_vm2 = vcmask 715776   ;;  %s1540_s1 = inlined_call_operand.vmem [shape: bf16[200,600], index: 1, kind: input, shape index: {}]   ;;  %s1541_s0 = inlined_call_operand.vmem [shape: bf16[32,200], index: 0, kind: input, shape index: {}]   ;;  %s1542_s2 = inlined_call_operand.vmem [shape: f32[1,600], index: 2, kind: input, shape index: {}]   ;;  %s1543_s3 = inlined_call_operand.vmem [shape: bf16[32,600], index: 3, kind: output, shape index: {}]  }
   0x1   :  { %v849_v0 = vld [vmem:[%s1540_s1 + $0x118] sm:$0xf]  ;;  %v998_v1 = vld [vmem:[%s1540_s1 + $0x128] sm:$0xf0]  ;;  %v996_v2 = vld [vmem:[%s1540_s1 + $0x11c] sm:$0xf] }
   0x2   :  { %v850_v3 = vor.u32 %v998_v1, %v849_v0  ;;  %v851_v4 = vld [vmem:[%s1540_s1 + $0x12c] sm:$0xf0]  ;;  %v993_v6 = vld [vmem:[%s1540_s1 + $0x100] sm:$0xf0]  ;;  %v991_v8 = vld [vmem:[%s1540_s1 + $0xf4] sm:$0xf] }
   0x3   :  { %v829_v5 = vld [vmem:[%s1540_s1 + $0xf0] sm:$0xf]  ;;  %v854_v7 = vor.u32 %v996_v2, %v851_v4  ;;  %v831_v9 = vld [vmem:[%s1540_s1 + $0x104] sm:$0xf0]  ;;  %v91_v10 = vld [vmem:[%s1540_s1 + $0x1e0] sm:$0xff] }
   0x4   :  { %472 = vmatpush.bf16.msra.mxu0 %v850_v3  ;;  %v830_v11 = vor.u32 %v993_v6, %v829_v5  ;;  %v320_v12 = vunpack.c.h.b16 %v91_v10  ;;  %v319_v13 = vunpack.c.l.b16 %v91_v10  ;;  %v834_v14 = vor.u32 %v991_v8, %v831_v9  ;;  %v809_v15 = vld [vmem:[%s1540_s1 + $0xc8] sm:$0xf]  ;;  %v988_v16 = vld [vmem:[%s1540_s1 + $0xd8] sm:$0xf0]  ;;  %v986_v17 = vld [vmem:[%s1540_s1 + $0xcc] sm:$0xf] }
   0x5   :  { %510 = vmatpush.bf16.msra.mxu2 %v854_v7  ;;  %v811_v20 = vld [vmem:[%s1540_s1 + $0xdc] sm:$0xf0]  ;;  %v1016_v21 = vld [vmem:[%s1540_s1 + $0x1bc] sm:$0xf]  ;;  %v931_v22 = vld [vmem:[%s1540_s1 + $0x1cc] sm:$0xf0]  ;;  %v810_v26 = vor.u32 %v988_v16, %v809_v15 }
   0x6   :  { %v385_v18 = vpack.c.b16 %v320_v12, %v320_v12  ;;  %v384_v19 = vpack.c.b16 %v319_v13, %v319_v13  ;;  %v929_v23 = vld [vmem:[%s1540_s1 + $0x1b8] sm:$0xf]  ;;  %v1018_v24 = vld [vmem:[%s1540_s1 + $0x1c8] sm:$0xf0]  ;;  %v814_v28 = vor.u32 %v986_v17, %v811_v20  ;;  %v934_v29 = vor.u32 %v1016_v21, %v931_v22  ;;  %v789_v30 = vld [vmem:[%s1540_s1 + $0xa0] sm:$0xf] }
   0x7   :  { %v983_v31 = vld [vmem:[%s1540_s1 + $0xb0] sm:$0xf0]  ;;  %v981_v32 = vld [vmem:[%s1540_s1 + $0xa4] sm:$0xf]  ;;  %v930_v33 = vor.u32 %v1018_v24, %v929_v23  ;;  %v791_v34 = vld [vmem:[%s1540_s1 + $0xb4] sm:$0xf0] }
   0x8   :  { %473 = vmatpush.bf16.msra.mxu0 %v830_v11  ;;  %v461_v25 = vsel %vm456_vm0, %v385_v18, 0  ;;  %v458_v27 = vsel %vm456_vm0, %v384_v19, 0  ;;  %v1011_v35 = vld [vmem:[%s1540_s1 + $0x194] sm:$0xf]  ;;  %v911_v36 = vld [vmem:[%s1540_s1 + $0x1a4] sm:$0xf0]  ;;  %v790_v39 = vor.u32 %v983_v31, %v789_v30  ;;  %v794_v40 = vor.u32 %v981_v32, %v791_v34 }
   0x9   :  { %511 = vmatpush.bf16.msra.mxu2 %v834_v14  ;;  %532 = vmatpush.bf16.msra.mxu3 %v461_v25  ;;  %v909_v37 = vld [vmem:[%s1540_s1 + $0x190] sm:$0xf]  ;;  %v1013_v38 = vld [vmem:[%s1540_s1 + $0x1a0] sm:$0xf0]  ;;  %v914_v41 = vor.u32 %v1011_v35, %v911_v36  ;;  %v769_v42 = vld [vmem:[%s1540_s1 + $0x78] sm:$0xf] }
   0xa   :  { %494 = vmatpush.bf16.msra.mxu1 %v458_v27  ;;  %v978_v43 = vld [vmem:[%s1540_s1 + $0x88] sm:$0xf0]  ;;  %v976_v44 = vld [vmem:[%s1540_s1 + $0x7c] sm:$0xf]  ;;  %v910_v45 = vor.u32 %v1013_v38, %v909_v37  ;;  %v771_v46 = vld [vmem:[%s1540_s1 + $0x8c] sm:$0xf0] }
   0xb   :  { %v1006_v47 = vld [vmem:[%s1540_s1 + $0x16c] sm:$0xf]  ;;  %v891_v48 = vld [vmem:[%s1540_s1 + $0x17c] sm:$0xf0]  ;;  %v889_v49 = vld [vmem:[%s1540_s1 + $0x168] sm:$0xf]  ;;  %v770_v51 = vor.u32 %v978_v43, %v769_v42  ;;  %v774_v52 = vor.u32 %v976_v44, %v771_v46 }
   0xc   :  { %474 = vmatpush.bf16.msra.mxu0 %v810_v26  ;;  %v1008_v50 = vld [vmem:[%s1540_s1 + $0x178] sm:$0xf0]  ;;  %v894_v53 = vor.u32 %v1006_v47, %v891_v48  ;;  %v749_v54 = vld [vmem:[%s1540_s1 + $0x50] sm:$0xf]  ;;  %v973_v55 = vld [vmem:[%s1540_s1 + $0x60] sm:$0xf0] }
   0xd   :  { %512 = vmatpush.bf16.msra.mxu2 %v814_v28  ;;  %533 = vmatpush.bf16.msra.mxu3 %v934_v29  ;;  %v971_v56 = vld [vmem:[%s1540_s1 + $0x54] sm:$0xf]  ;;  %v890_v57 = vor.u32 %v1008_v50, %v889_v49  ;;  %v751_v58 = vld [vmem:[%s1540_s1 + $0x64] sm:$0xf0]  ;;  %v1001_v59 = vld [vmem:[%s1540_s1 + $0x144] sm:$0xf]  ;;  %v750_v0 = vor.u32 %v973_v55, %v749_v54 }
   0xe   :  { %495 = vmatpush.bf16.msra.mxu1 %v930_v33  ;;  %v871_v60 = vld [vmem:[%s1540_s1 + $0x154] sm:$0xf0]  ;;  %v869_v61 = vld [vmem:[%s1540_s1 + $0x140] sm:$0xf]  ;;  %v1003_v62 = vld [vmem:[%s1540_s1 + $0x150] sm:$0xf0]  ;;  %v754_v5 = vor.u32 %v971_v56, %v751_v58 }
   0xf   :  { %v92_v63 = vld [vmem:[%s1540_s1 + $0x1e8] sm:$0xff]  ;;  %v957_v1 = vld [vmem:[%s1541_s0 + $0x4] sm:$0xf]  ;;  %v857_v2 = vld [vmem:[%s1540_s1 + $0x120] sm:$0xf]  ;;  %v874_v6 = vor.u32 %v1001_v59, %v871_v60  ;;  %v870_v10 = vor.u32 %v1003_v62, %v869_v61 }
  0x10   :  { %475 = vmatpush.bf16.msra.mxu0 %v790_v39  ;;  %v999_v3 = vld [vmem:[%s1540_s1 + $0x130] sm:$0xf0]  ;;  %v321_v4 = vunpack.c.l.b16 %v92_v63  ;;  %v695_v7 = vld [vmem:[%s1541_s0 + $0x8] sm:$0xf0]  ;;  %v729_v8 = vld [vmem:[%s1540_s1 + $0x28] sm:$0xf]  ;;  %v322_v15 = vunpack.c.h.b16 %v92_v63 }
  0x11   :  { %513 = vmatpush.bf16.msra.mxu2 %v794_v40  ;;  %534 = vmatpush.bf16.msra.mxu3 %v914_v41  ;;  %v968_v9 = vld [vmem:[%s1540_s1 + $0x38] sm:$0xf0]  ;;  %v966_v11 = vld [vmem:[%s1540_s1 + $0x2c] sm:$0xf]  ;;  %v731_v12 = vld [vmem:[%s1540_s1 + $0x3c] sm:$0xf0]  ;;  %v858_v14 = vor.u32 %v999_v3, %v857_v2  ;;  %v1212_v18 = vor.u32 %v957_v1, %v695_v7 }
  0x12   :  { %496 = vmatpush.bf16.msra.mxu1 %v910_v45  ;;  %v386_v13 = vpack.c.b16 %v321_v4, %v321_v4  ;;  %v937_v16 = vld [vmem:[%s1540_s1 + $0x1c0] sm:$0xf]  ;;  %v1019_v17 = vld [vmem:[%s1540_s1 + $0x1d0] sm:$0xf0]  ;;  %v730_v19 = vor.u32 %v968_v9, %v729_v8  ;;  %v837_v21 = vld [vmem:[%s1540_s1 + $0xf8] sm:$0xf]  ;;  %v734_v23 = vor.u32 %v966_v11, %v731_v12  ;;  %v387_v32 = vpack.c.b16 %v322_v15, %v322_v15 }
  0x13   :  { %v994_v22 = vld [vmem:[%s1540_s1 + $0x108] sm:$0xf0]  ;;  %v709_v24 = vld [vmem:[%s1540_s1] sm:$0xf]  ;;  %v963_v25 = vld [vmem:[%s1540_s1 + $0x10] sm:$0xf0]  ;;  %v938_v30 = vor.u32 %v1019_v17, %v937_v16 }
  0x14   :  { %476 = vmatpush.bf16.msra.mxu0 %v770_v51  ;;  %v464_v20 = vsel %vm456_vm0, %v386_v13, 0  ;;  %v961_v26 = vld [vmem:[%s1540_s1 + $0x4] sm:$0xf]  ;;  %v711_v27 = vld [vmem:[%s1540_s1 + $0x14] sm:$0xf0]  ;;  %v838_v33 = vor.u32 %v994_v22, %v837_v21  ;;  %v710_v36 = vor.u32 %v963_v25, %v709_v24  ;;  %v467_v48 = vsel %vm456_vm0, %v387_v32, 0 }
  0x15   :  { %514 = vmatpush.bf16.msra.mxu2 %v774_v52  ;;  %535 = vmatpush.bf16.msra.mxu3 %v894_v53  ;;  %v997_v28 = vld [vmem:[%s1540_s1 + $0x124] sm:$0xf]  ;;  %v859_v29 = vld [vmem:[%s1540_s1 + $0x134] sm:$0xf0]  ;;  %v693_v31 = vld [vmem:[%s1541_s0] sm:$0xf]  ;;  %v714_v40 = vor.u32 %v961_v26, %v711_v27 }
  0x16   :  { %497 = vmatpush.bf16.msra.mxu1 %v890_v57  ;;  %v917_v34 = vld [vmem:[%s1540_s1 + $0x198] sm:$0xf]  ;;  %v1014_v35 = vld [vmem:[%s1540_s1 + $0x1a8] sm:$0xf0]  ;;  %v958_v37 = vld [vmem:[%s1541_s0 + $0x4] sm:$0xf0]  ;;  %v862_v41 = vor.u32 %v997_v28, %v859_v29 }
  0x17   :  { %v817_v38 = vld [vmem:[%s1540_s1 + $0xd0] sm:$0xf]  ;;  %v989_v39 = vld [vmem:[%s1540_s1 + $0xe0] sm:$0xf0]  ;;  %v992_v42 = vld [vmem:[%s1540_s1 + $0xfc] sm:$0xf]  ;;  %v918_v46 = vor.u32 %v1014_v35, %v917_v34  ;;  %v1273_v47 = vor.u32 %v958_v37, %v693_v31 }
  0x18   :  { %477 = vmatpush.bf16.msra.mxu0 %v750_v0  ;;  %v839_v43 = vld [vmem:[%s1540_s1 + $0x10c] sm:$0xf0]  ;;  %v1017_v44 = vld [vmem:[%s1540_s1 + $0x1c4] sm:$0xf]  ;;  %v939_v45 = vld [vmem:[%s1540_s1 + $0x1d4] sm:$0xf0]  ;;  %v818_v49 = vor.u32 %v989_v39, %v817_v38 }
  0x19   :  { %515 = vmatpush.bf16.msra.mxu2 %v754_v5  ;;  %536 = vmatpush.bf16.msra.mxu3 %v874_v6  ;;  %v897_v50 = vld [vmem:[%s1540_s1 + $0x170] sm:$0xf]  ;;  %v1009_v51 = vld [vmem:[%s1540_s1 + $0x180] sm:$0xf0]  ;;  %v797_v52 = vld [vmem:[%s1540_s1 + $0xa8] sm:$0xf]  ;;  %v842_v54 = vor.u32 %v992_v42, %v839_v43  ;;  %v942_v55 = vor.u32 %v1017_v44, %v939_v45 }
  0x1a   :  { %498 = vmatpush.bf16.msra.mxu1 %v870_v10  ;;  %v984_v53 = vld [vmem:[%s1540_s1 + $0xb8] sm:$0xf0]  ;;  %v987_v56 = vld [vmem:[%s1540_s1 + $0xd4] sm:$0xf]  ;;  %v819_v57 = vld [vmem:[%s1540_s1 + $0xe4] sm:$0xf0]  ;;  %v898_v59 = vor.u32 %v1009_v51, %v897_v50 }
  0x1b   :  { %v1012_v58 = vld [vmem:[%s1540_s1 + $0x19c] sm:$0xf]  ;;  %v798_v60 = vor.u32 %v984_v53, %v797_v52  ;;  %v919_v61 = vld [vmem:[%s1540_s1 + $0x1ac] sm:$0xf0]  ;;  %v877_v62 = vld [vmem:[%s1540_s1 + $0x148] sm:$0xf]  ;;  %v822_v4 = vor.u32 %v987_v56, %v819_v57 }
  0x1c   :  { %949 = vmatmul.msk.bf16.vlgmr.msra.gmra.mxu3 %vm449_vm1, %v1212_v18  ;;  %478 = vmatpush.bf16.msra.mxu0 %v730_v19  ;;  %v1004_v63 = vld [vmem:[%s1540_s1 + $0x158] sm:$0xf0]  ;;  %v777_v0 = vld [vmem:[%s1540_s1 + $0x80] sm:$0xf]  ;;  %v979_v1 = vld [vmem:[%s1540_s1 + $0x90] sm:$0xf0]  ;;  %v922_v8 = vor.u32 %v1012_v58, %v919_v61 }
  0x1d   :  { %570 = vmatpush.bf16.msrb.mxu3 %v464_v20  ;;  %516 = vmatpush.bf16.msra.mxu2 %v734_v23  ;;  %v959_v2 = vld [vmem:[%s1541_s0 + $0x14] sm:$0xf]  ;;  %v703_v3 = vld [vmem:[%s1541_s0 + $0x18] sm:$0xf0]  ;;  %v93_v5 = vld [vmem:[%s1540_s1 + $0x1f0] sm:$0xf]  ;;  %v878_v9 = vor.u32 %v1004_v63, %v877_v62  ;;  %v778_v11 = vor.u32 %v979_v1, %v777_v0 }
  0x1e   :  { %548 = vmatpush.bf16.msrb.mxu1 %v858_v14  ;;  %v982_v6 = vld [vmem:[%s1540_s1 + $0xac] sm:$0xf]  ;;  %v799_v7 = vld [vmem:[%s1540_s1 + $0xbc] sm:$0xf0]  ;;  %v323_v10 = vunpack.c.l.b16 %v93_v5  ;;  %v757_v12 = vld [vmem:[%s1540_s1 + $0x58] sm:$0xf]  ;;  %v1338_v15 = vor.u32 %v959_v2, %v703_v3 }
  0x1f   :  { %947 = vmatmul.msk.bf16.vlgmr.msra.gmra.mxu1 %vm449_vm1, %v1212_v18  ;;  %v1007_v13 = vld [vmem:[%s1540_s1 + $0x174] sm:$0xf]  ;;  %v899_v14 = vld [vmem:[%s1540_s1 + $0x184] sm:$0xf0]  ;;  %v974_v16 = vld [vmem:[%s1540_s1 + $0x68] sm:$0xf0]  ;;  %v802_v21 = vor.u32 %v982_v6, %v799_v7 }
  0x20   :  { %479 = vmatpush.bf16.msra.mxu0 %v710_v36  ;;  %v388_v17 = vpack.c.b16 %v323_v10, %v323_v10  ;;  %v945_v19 = vld [vmem:[%s1540_s1 + $0x1c8] sm:$0xf]  ;;  %v1020_v20 = vld [vmem:[%s1540_s1 + $0x1d8] sm:$0xf0]  ;;  %v977_v22 = vld [vmem:[%s1540_s1 + $0x84] sm:$0xf]  ;;  %v902_v24 = vor.u32 %v1007_v13, %v899_v14  ;;  %v758_v27 = vor.u32 %v974_v16, %v757_v12 }
  0x21   :  { %571 = vmatpush.bf16.msrb.mxu3 %v938_v30  ;;  %517 = vmatpush.bf16.msra.mxu2 %v714_v40  ;;  %v779_v23 = vld [vmem:[%s1540_s1 + $0x94] sm:$0xf0]  ;;  %v701_v26 = vld [vmem:[%s1541_s0 + $0x10] sm:$0xf]  ;;  %v1002_v28 = vld [vmem:[%s1540_s1 + $0x14c] sm:$0xf]  ;;  %v946_v30 = vor.u32 %v1020_v20, %v945_v19 }
  0x22   :  { %549 = vmatpush.bf16.msrb.mxu1 %v838_v33  ;;  %v470_v25 = vsel %vm456_vm0, %v388_v17, 0  ;;  %v879_v29 = vld [vmem:[%s1540_s1 + $0x15c] sm:$0xf0]  ;;  %v960_v31 = vld [vmem:[%s1541_s0 + $0x14] sm:$0xf0]  ;;  %v782_v34 = vor.u32 %v977_v22, %v779_v23 }
  0x23   :  { %480 = vmatmul.bf16.vlgmr.msra.gmra.mxu0 %v1273_v47  ;;  %v737_v32 = vld [vmem:[%s1540_s1 + $0x30] sm:$0xf]  ;;  %v969_v33 = vld [vmem:[%s1540_s1 + $0x40] sm:$0xf0]  ;;  %v925_v35 = vld [vmem:[%s1540_s1 + $0x1a0] sm:$0xf]  ;;  %v882_v38 = vor.u32 %v1002_v28, %v879_v29  ;;  %v1390_v40 = vor.u32 %v960_v31, %v701_v26 }
  0x24   :  { %586 = vmatpush.bf16.msrb.mxu0 %v862_v41  ;;  %518 = vmatmul.bf16.vlgmr.msra.gmra.mxu2 %v1273_v47  ;;  %v972_v36 = vld [vmem:[%s1540_s1 + $0x5c] sm:$0xf]  ;;  %v759_v37 = vld [vmem:[%s1540_s1 + $0x6c] sm:$0xf0]  ;;  %v1015_v39 = vld [vmem:[%s1540_s1 + $0x1b0] sm:$0xf0]  ;;  %v738_v41 = vor.u32 %v969_v33, %v737_v32 }
  0x25   :  { %608 = vmatpush.bf16.msrb.mxu2 %v467_v48  ;;  %572 = vmatpush.bf16.msrb.mxu3 %v918_v46  ;;  %v717_v42 = vld [vmem:[%s1540_s1 + $0x8] sm:$0xf]  ;;  %v964_v43 = vld [vmem:[%s1540_s1 + $0x18] sm:$0xf0]  ;;  %v926_v44 = vor.u32 %v1015_v39, %v925_v35  ;;  %v762_v45 = vor.u32 %v972_v36, %v759_v37  ;;  %v905_v51 = vld [vmem:[%s1540_s1 + $0x178] sm:$0xf] }
  0x26   :  { %550 = vmatpush.bf16.msrb.mxu1 %v818_v49  ;;  %v865_v46 = vld [vmem:[%s1540_s1 + $0x128] sm:$0xf]  ;;  %v1000_v48 = vld [vmem:[%s1540_s1 + $0x138] sm:$0xf0]  ;;  %v967_v49 = vld [vmem:[%s1540_s1 + $0x34] sm:$0xf]  ;;  %v718_v52 = vor.u32 %v964_v43, %v717_v42 }
  0x27   :  { %v739_v50 = vld [vmem:[%s1540_s1 + $0x44] sm:$0xf0]  ;;  %v1010_v53 = vld [vmem:[%s1540_s1 + $0x188] sm:$0xf0]  ;;  %v845_v57 = vld [vmem:[%s1540_s1 + $0x100] sm:$0xf] }
  0x28   :  { %587 = vmatpush.bf16.msrb.mxu0 %v842_v54  ;;  %v866_v54 = vor.u32 %v1000_v48, %v865_v46  ;;  %v742_v56 = vor.u32 %v967_v49, %v739_v50  ;;  %v995_v58 = vld [vmem:[%s1540_s1 + $0x110] sm:$0xf0]  ;;  %v885_v62 = vld [vmem:[%s1540_s1 + $0x150] sm:$0xf]  ;;  %v1005_v63 = vld [vmem:[%s1540_s1 + $0x160] sm:$0xf0] }
  0x29   :  { %609 = vmatpush.bf16.msrb.mxu2 %v942_v55  ;;  %573 = vmatpush.bf16.msrb.mxu3 %v898_v59  ;;  %v906_v55 = vor.u32 %v1010_v53, %v905_v51  ;;  %v962_v59 = vld [vmem:[%s1540_s1 + $0xc] sm:$0xf]  ;;  %v846_v61 = vor.u32 %v995_v58, %v845_v57  ;;  %v825_v1 = vld [vmem:[%s1540_s1 + $0xd8] sm:$0xf]  ;;  %v886_v3 = vor.u32 %v1005_v63, %v885_v62  ;;  %v805_v5 = vld [vmem:[%s1540_s1 + $0xb0] sm:$0xf] }
  0x2a   :  { %551 = vmatpush.bf16.msrb.mxu1 %v798_v60  ;;  %v719_v60 = vld [vmem:[%s1540_s1 + $0x1c] sm:$0xf0]  ;;  %v990_v2 = vld [vmem:[%s1540_s1 + $0xe8] sm:$0xf0]  ;;  %v985_v6 = vld [vmem:[%s1540_s1 + $0xc0] sm:$0xf0] }
  0x2b   :  { %v722_v0 = vor.u32 %v962_v59, %v719_v60  ;;  %v806_v7 = vor.u32 %v985_v6, %v805_v5  ;;  %v975_v12 = vld [vmem:[%s1540_s1 + $0x70] sm:$0xf0]  ;;  %v745_v14 = vld [vmem:[%s1540_s1 + $0x38] sm:$0xf]  ;;  %v970_v16 = vld [vmem:[%s1540_s1 + $0x48] sm:$0xf0] }
  0x2c   :  { %588 = vmatpush.bf16.msrb.mxu0 %v822_v4  ;;  %950 = vmatmul.msk.bf16.gmra.mxu3 %vm449_vm1, %v1338_v15  ;;  %v826_v4 = vor.u32 %v990_v2, %v825_v1  ;;  %v746_v17 = vor.u32 %v970_v16, %v745_v14  ;;  %v725_v19 = vld [vmem:[%s1540_s1 + $0x10] sm:$0xf]  ;;  %v965_v20 = vld [vmem:[%s1540_s1 + $0x20] sm:$0xf0] }
  0x2d   :  { %610 = vmatpush.bf16.msrb.mxu2 %v922_v8  ;;  %574 = vmatpush.bf16.msrb.mxu3 %v878_v9  ;;  %v785_v8 = vld [vmem:[%s1540_s1 + $0x88] sm:$0xf]  ;;  %v980_v9 = vld [vmem:[%s1540_s1 + $0x98] sm:$0xf0] }
  0x2e   :  { %552 = vmatpush.bf16.msrb.mxu1 %v778_v11  ;;  %v786_v10 = vor.u32 %v980_v9, %v785_v8  ;;  %v765_v11 = vld [vmem:[%s1540_s1 + $0x60] sm:$0xf] }
  0x2f   :  { %948 = vmatmul.msk.bf16.gmra.mxu1 %vm449_vm1, %v1338_v15  ;;  %v766_v13 = vor.u32 %v975_v12, %v765_v11 }
  0x30   :  { %589 = vmatpush.bf16.msrb.mxu0 %v802_v21  ;;  %v726_v21 = vor.u32 %v965_v20, %v725_v19 }
  0x31   :  { %1029 = vmatpush.bf16.msra.mxu3 %v470_v25  ;;  %611 = vmatpush.bf16.msrb.mxu2 %v902_v24  ;;  %v1493_v24 = vld [vmem:[%s1542_s2] sm:$0x1f] }
  0x32   :  { %553 = vmatpush.bf16.msrb.mxu1 %v758_v27  ;;  %v96_v26 = vperm.slane %v1493_v24, 0  ;;  %v99_v59 = vperm.slane %v1493_v24, 3 }
  0x33   :  { %485 = vmatmul.bf16.gmra.mxu0 %v1390_v40 }
  0x34   :  { %590 = vmatpush.bf16.msrb.mxu0 %v782_v34  ;;  %523 = vmatmul.bf16.gmra.mxu2 %v1390_v40 }
  0x35   :  { %1030 = vmatpush.bf16.msra.mxu3 %v946_v30  ;;  %612 = vmatpush.bf16.msrb.mxu2 %v882_v38 }
  0x36   :  { %554 = vmatpush.bf16.msrb.mxu1 %v738_v41 }
  0x38   :  { %591 = vmatpush.bf16.msrb.mxu0 %v762_v45 }
  0x39   :  { %1031 = vmatpush.bf16.msra.mxu3 %v926_v44  ;;  %646 = vmatpush.bf16.msra.mxu2 %v470_v25 }
  0x3a   :  { %555 = vmatpush.bf16.msrb.mxu1 %v718_v52 }
  0x3c   :  { %592 = vmatpush.bf16.msrb.mxu0 %v742_v56  ;;  %951 = vmatmul.msk.bf16.vlgmr.msrb.gmra.mxu3 %vm449_vm1, %v1212_v18 }
  0x3d   :  { %1032 = vmatpush.bf16.msra.mxu3 %v906_v55  ;;  %647 = vmatpush.bf16.msra.mxu2 %v946_v30 }
  0x3e   :  { %1021 = vmatpush.bf16.msra.mxu1 %v866_v54 }
  0x3f   :  { %556 = vmatmul.bf16.vlgmr.msrb.gmra.mxu1 %v1273_v47 }
  0x40   :  { %593 = vmatpush.bf16.msrb.mxu0 %v722_v0 }
  0x41   :  { %648 = vmatpush.bf16.msra.mxu2 %v926_v44  ;;  %1033 = vmatpush.bf16.msra.mxu3 %v886_v3 }
  0x42   :  { %1022 = vmatpush.bf16.msra.mxu1 %v846_v61 }
  0x43   :  { %594 = vmatmul.bf16.vlgmr.msrb.gmra.mxu0 %v1273_v47 }
  0x44   :  { %624 = vmatpush.bf16.msra.mxu0 %v866_v54  ;;  %953 = vmatmul.msk.bf16.vlgmr.msrb.gmra.mxu2 %vm449_vm1, %v1212_v18 }
  0x45   :  { %649 = vmatpush.bf16.msra.mxu2 %v906_v55  ;;  %v98_v55 = vperm.slane %v1493_v24, 2 }
  0x46   :  { %1023 = vmatpush.bf16.msra.mxu1 %v826_v4 }
  0x48   :  { %625 = vmatpush.bf16.msra.mxu0 %v846_v61 }
  0x49   :  { %650 = vmatpush.bf16.msra.mxu2 %v886_v3 }
  0x4a   :  { %1024 = vmatpush.bf16.msra.mxu1 %v806_v7 }
  0x4c   :  { %626 = vmatpush.bf16.msra.mxu0 %v826_v4  ;;  %952 = vmatmul.msk.bf16.gmra.mxu3 %vm449_vm1, %v1338_v15 }
  0x4e   :  { %1025 = vmatpush.bf16.msra.mxu1 %v786_v10 }
  0x4f   :  { %561 = vmatmul.bf16.gmra.mxu1 %v1390_v40 }
  0x50   :  { %627 = vmatpush.bf16.msra.mxu0 %v806_v7 }
  0x52   :  { %1026 = vmatpush.bf16.msra.mxu1 %v766_v13 }
  0x53   :  { %599 = vmatmul.bf16.gmra.mxu0 %v1390_v40 }
  0x54   :  { %628 = vmatpush.bf16.msra.mxu0 %v786_v10  ;;  %954 = vmatmul.msk.bf16.gmra.mxu2 %vm449_vm1, %v1338_v15 }
  0x56   :  { %1027 = vmatpush.bf16.msra.mxu1 %v746_v17 }
  0x58   :  { %629 = vmatpush.bf16.msra.mxu0 %v766_v13 }
  0x5a   :  { %1028 = vmatpush.bf16.msra.mxu1 %v726_v21 }
  0x5c   :  { %630 = vmatpush.bf16.msra.mxu0 %v746_v17  ;;  %956 = vmatmul.msk.bf16.vlgmr.msra.gmra.mxu3 %vm449_vm1, %v1338_v15  ;;  %v97_v15 = vperm.slane %v1493_v24, 1 }
  0x5f   :  { %637 = vmatmul.bf16.vlgmr.msra.gmra.mxu1 %v1390_v40 }
  0x60   :  { %631 = vmatpush.bf16.msra.mxu0 %v726_v21 }
  0x63   :  { %632 = vmatmul.bf16.vlgmr.msra.gmra.mxu0 %v1273_v47 }
  0x64   :  { %955 = vmatmul.msk.bf16.vlgmr.msra.gmra.mxu2 %vm449_vm1, %v1212_v18 }
  0x9c   :  { %v500_v22 = vpop.f32.mrf.mxu1 }
  0x9f   :  { %v538_v23 = vpop.f32.mrf.mxu3 }
  0xa0   :  { %v481_v25 = vpop.f32.mrf.mxu0 }
  0xa1   :  { %v482_v28 = vadd.f32 %v481_v25, %v96_v26 }
  0xa3   :  { %v501_v32 = vadd.f32 %v500_v22, %v482_v28  ;;  %v100_v28 = vperm.slane %v1493_v24, 4 }
  0xa4   :  { %v502_v27 = vpop.f32.mrf.mxu1 }
  0xa7   :  { %v519_v29 = vpop.f32.mrf.mxu2  ;;  %v540_v30 = vpop.f32.mrf.mxu3 }
  0xa8   :  { %v520_v47 = vadd.f32 %v519_v29, %v97_v15  ;;  %v483_v31 = vpop.f32.mrf.mxu0 }
  0xa9   :  { %v484_v35 = vadd.f32 %v483_v31, %v96_v26 }
  0xaa   :  { %v539_v18 = vadd.f32 %v538_v23, %v520_v47 }
  0xab   :  { %v503_v40 = vadd.f32 %v502_v27, %v484_v35 }
  0xac   :  { %v505_v33 = vpop.f32.mrf.mxu1  ;;  %v662_v34 = vpack.c.bf16 %v539_v18, %v501_v32 }
  0xae   :  { %674 = vst [vmem:[%s1543_s3] sm:$0xff] %v662_v34 }
  0xaf   :  { %v521_v36 = vpop.f32.mrf.mxu2  ;;  %v543_v37 = vpop.f32.mrf.mxu3 }
  0xb0   :  { %v522_v38 = vadd.f32 %v521_v36, %v97_v15  ;;  %v486_v39 = vpop.f32.mrf.mxu0 }
  0xb1   :  { %v487_v44 = vadd.f32 %v486_v39, %v96_v26 }
  0xb2   :  { %v541_v41 = vadd.f32 %v540_v30, %v522_v38 }
  0xb3   :  { %v506_v50 = vadd.f32 %v505_v33, %v487_v44 }
  0xb4   :  { %v507_v42 = vpop.f32.mrf.mxu1  ;;  %v665_v43 = vpack.c.bf16 %v541_v41, %v503_v40 }
  0xb6   :  { %678 = vst [vmem:[%s1543_s3 + $0x14] sm:$0xff] %v665_v43 }
  0xb7   :  { %v524_v45 = vpop.f32.mrf.mxu2  ;;  %v545_v46 = vpop.f32.mrf.mxu3 }
  0xb8   :  { %v525_v48 = vadd.f32 %v524_v45, %v97_v15  ;;  %v488_v49 = vpop.f32.mrf.mxu0 }
  0xb9   :  { %v489_v54 = vadd.f32 %v488_v49, %v96_v26 }
  0xba   :  { %v544_v51 = vadd.f32 %v543_v37, %v525_v48 }
  0xbb   :  { %v508_v61 = vadd.f32 %v507_v42, %v489_v54 }
  0xbc   :  { %v557_v52 = vpop.f32.mrf.mxu1  ;;  %v668_v53 = vpack.c.bf16 %v544_v51, %v506_v50 }
  0xbd   :  { %v558_v62 = vadd.f32 %v557_v52, %v98_v55 }
  0xbe   :  { %681 = vst [vmem:[%s1543_s3 + $0x28] sm:$0xff] %v668_v53 }
  0xbf   :  { %v526_v56 = vpop.f32.mrf.mxu2  ;;  %v576_v57 = vpop.f32.mrf.mxu3 }
  0xc0   :  { %v527_v58 = vadd.f32 %v526_v56, %v97_v15  ;;  %v595_v60 = vpop.f32.mrf.mxu0  ;;  %v577_v3 = vadd.f32 %v576_v57, %v558_v62 }
  0xc1   :  { %v596_v2 = vadd.f32 %v595_v60, %v99_v59 }
  0xc2   :  { %v546_v63 = vadd.f32 %v545_v46, %v527_v58 }
  0xc4   :  { %v559_v0 = vpop.f32.mrf.mxu1  ;;  %v671_v1 = vpack.c.bf16 %v546_v63, %v508_v61 }
  0xc5   :  { %v560_v10 = vadd.f32 %v559_v0, %v98_v55 }
  0xc6   :  { %684 = vst [vmem:[%s1543_s3 + $0x3c] sm:$0xff] %v671_v1 }
  0xc7   :  { %v578_v4 = vpop.f32.mrf.mxu3  ;;  %v614_v5 = vpop.f32.mrf.mxu2 }
  0xc8   :  { %v615_v6 = vadd.f32 %v614_v5, %v596_v2  ;;  %v597_v7 = vpop.f32.mrf.mxu0  ;;  %v579_v14 = vadd.f32 %v578_v4, %v560_v10 }
  0xc9   :  { %v598_v11 = vadd.f32 %v597_v7, %v99_v59 }
  0xca   :  { %v663_v8 = vpack.c.bf16 %v615_v6, %v577_v3 }
  0xcc   :  { %v562_v9 = vpop.f32.mrf.mxu1  ;;  %675 = vst [vmem:[%s1543_s3 + $0x8] sm:$0xff] %v663_v8 }
  0xcd   :  { %v563_v19 = vadd.f32 %v562_v9, %v98_v55 }
  0xcf   :  { %v581_v12 = vpop.f32.mrf.mxu3  ;;  %v616_v13 = vpop.f32.mrf.mxu2 }
  0xd0   :  { %v617_v16 = vadd.f32 %v616_v13, %v598_v11  ;;  %v600_v17 = vpop.f32.mrf.mxu0  ;;  %v582_v23 = vadd.f32 %v581_v12, %v563_v19 }
  0xd1   :  { %v601_v22 = vadd.f32 %v600_v17, %v99_v59 }
  0xd2   :  { %v666_v20 = vpack.c.bf16 %v617_v16, %v579_v14 }
  0xd4   :  { %v564_v21 = vpop.f32.mrf.mxu1  ;;  %679 = vst [vmem:[%s1543_s3 + $0x1c] sm:$0xff] %v666_v20 }
  0xd5   :  { %v565_v47 = vadd.f32 %v564_v21, %v98_v55 }
  0xd7   :  { %v583_v25 = vpop.f32.mrf.mxu3  ;;  %v619_v26 = vpop.f32.mrf.mxu2 }
  0xd8   :  { %v620_v27 = vadd.f32 %v619_v26, %v601_v22  ;;  %v602_v15 = vpop.f32.mrf.mxu0  ;;  %v584_v34 = vadd.f32 %v583_v25, %v565_v47 }
  0xd9   :  { %v603_v32 = vadd.f32 %v602_v15, %v99_v59 }
  0xda   :  { %v669_v29 = vpack.c.bf16 %v620_v27, %v582_v23 }
  0xdc   :  { %v638_v30 = vpop.f32.mrf.mxu1  ;;  %682 = vst [vmem:[%s1543_s3 + $0x30] sm:$0xff] %v669_v29 }
  0xdd   :  { %v639_v31 = vadd.f32 %v638_v30, %v100_v28 }
  0xdf   :  { %v621_v18 = vpop.f32.mrf.mxu2  ;;  %v657_v33 = vpop.f32.mrf.mxu3 }
  0xe0   :  { %v622_v35 = vadd.f32 %v621_v18, %v603_v32  ;;  %v658_v36 = vadd.f32 %v657_v33, %v639_v31  ;;  %v633_v37 = vpop.f32.mrf.mxu0 }
  0xe1   :  { %v634_v24 = vadd.f32 %v633_v37, %v100_v28 }
  0xe2   :  { %v672_v38 = vpack.c.bf16 %v622_v35, %v584_v34  ;;  %v670_v39 = vpack.c.bf16 %v658_v36, %v658_v36 }
  0xe4   :  { %v640_v40 = vpop.f32.mrf.mxu1  ;;  %685 = vst [vmem:[%s1543_s3 + $0x44] sm:$0xff] %v672_v38 }
  0xe5   :  { %v641_v41 = vadd.f32 %v640_v40, %v100_v28  ;;  %683 = vst.msk [vmem:[%s1543_s3 + $0x38] sm:$0xf] %vm676_vm2, %v670_v39 }
  0xe7   :  { %v652_v42 = vpop.f32.mrf.mxu2  ;;  %v659_v43 = vpop.f32.mrf.mxu3 }
  0xe8   :  { %v653_v44 = vadd.f32 %v652_v42, %v634_v24  ;;  %v660_v45 = vadd.f32 %v659_v43, %v641_v41  ;;  %v635_v49 = vpop.f32.mrf.mxu0 }
  0xe9   :  { %v636_v50 = vadd.f32 %v635_v49, %v100_v28 }
  0xea   :  { %v664_v46 = vpack.c.bf16 %v653_v44, %v653_v44  ;;  %v673_v48 = vpack.c.bf16 %v660_v45, %v660_v45 }
  0xec   :  { %677 = vst.msk [vmem:[%s1543_s3 + $0x10] sm:$0xf] %vm676_vm2, %v664_v46 }
  0xed   :  { %686 = vst.msk [vmem:[%s1543_s3 + $0x4c] sm:$0xf] %vm676_vm2, %v673_v48 }
  0xef   :  { %v654_v51 = vpop.f32.mrf.mxu2 }
  0xf0   :  { %v655_v52 = vadd.f32 %v654_v51, %v636_v50 }
  0xf2   :  { %v667_v53 = vpack.c.bf16 %v655_v52, %v655_v52 }
  0xf4   :  { %680 = vst.msk [vmem:[%s1543_s3 + $0x24] sm:$0xf] %vm676_vm2, %v667_v53 }

// kernel: transformer_forward.12
= control target key start
LH: loop header
LB: loop body
LE: loop exit
PB: predicated region body
PF: predicated region fallthrough
CT: control target
= control target key end

     0   :  { %vm225_vm0 = vcmask 1043456   ;;  %vm32_vm1 = vcmask 588800   ;;  %vm774_vm6 = vcmask 588804   ;;  %s1579_s1 = inlined_call_operand.vmem [shape: bf16[200,200], index: 1, kind: input, shape index: {}]   ;;  %s1580_s3 = inlined_call_operand.vmem [shape: bf16[200,200], index: 3, kind: input, shape index: {}]   ;;  %s1581_s0 = inlined_call_operand.vmem [shape: bf16[32,200], index: 0, kind: input, shape index: {}]   ;;  %s1582_s2 = inlined_call_operand.vmem [shape: f32[1,200], index: 2, kind: input, shape index: {}]   ;;  %s1583_s4 = inlined_call_operand.vmem [shape: f32[1,200], index: 4, kind: input, shape index: {}]   ;;  %s1584_s5 = inlined_call_operand.vmem [shape: f32[1,200], index: 5, kind: input, shape index: {}]   ;;  %s1585_s6 = inlined_call_operand.vmem [shape: f32[1,200], index: 6, kind: input, shape index: {}]   ;;  %s1586_s7 = inlined_call_operand.vmem [shape: bf16[32,200], index: 7, kind: output, shape index: {}]  }
   0x1   :  { %v858_v0 = vld [vmem:[%s1579_s1 + $0x70] sm:$0xf]  ;;  %v1019_v1 = vld [vmem:[%s1579_s1 + $0x74] sm:$0xf0]  ;;  %v1018_v2 = vld [vmem:[%s1579_s1 + $0x74] sm:$0xf] }
   0x2   :  { %v859_v3 = vor.u32 %v1019_v1, %v858_v0  ;;  %v860_v4 = vld [vmem:[%s1579_s1 + $0x78] sm:$0xf0]  ;;  %v850_v5 = vld [vmem:[%s1579_s1 + $0x60] sm:$0xf]  ;;  %v1017_v6 = vld [vmem:[%s1579_s1 + $0x64] sm:$0xf0] }
   0x3   :  { %v863_v7 = vor.u32 %v1018_v2, %v860_v4  ;;  %v1016_v8 = vld [vmem:[%s1579_s1 + $0x64] sm:$0xf]  ;;  %v852_v9 = vld [vmem:[%s1579_s1 + $0x68] sm:$0xf0]  ;;  %v851_v11 = vor.u32 %v1017_v6, %v850_v5  ;;  %v842_v15 = vld [vmem:[%s1579_s1 + $0x50] sm:$0xf] }
   0x4   :  { %v68_v10 = vld [vmem:[%s1579_s1 + $0xc0] sm:$0xff]  ;;  %232 = vmatpush.bf16.msra.mxu0 %v859_v3  ;;  %v855_v14 = vor.u32 %v1016_v8, %v852_v9  ;;  %v1015_v16 = vld [vmem:[%s1579_s1 + $0x54] sm:$0xf0]  ;;  %v1014_v17 = vld [vmem:[%s1579_s1 + $0x54] sm:$0xf] }
   0x5   :  { %v167_v12 = vunpack.c.h.b16 %v68_v10  ;;  %v166_v13 = vunpack.c.l.b16 %v68_v10  ;;  %270 = vmatpush.bf16.msra.mxu2 %v863_v7  ;;  %v844_v19 = vld [vmem:[%s1579_s1 + $0x58] sm:$0xf0]  ;;  %v1026_v20 = vld [vmem:[%s1579_s1 + $0xb4] sm:$0xf]  ;;  %v843_v24 = vor.u32 %v1015_v16, %v842_v15  ;;  %v834_v25 = vld [vmem:[%s1579_s1 + $0x40] sm:$0xf] }
   0x6   :  { %v892_v21 = vld [vmem:[%s1579_s1 + $0xb8] sm:$0xf0]  ;;  %v1013_v26 = vld [vmem:[%s1579_s1 + $0x44] sm:$0xf0]  ;;  %v847_v28 = vor.u32 %v1014_v17, %v844_v19  ;;  %v1012_v30 = vld [vmem:[%s1579_s1 + $0x44] sm:$0xf] }
   0x7   :  { %v193_v18 = vpack.c.b16 %v167_v12, %v167_v12  ;;  %v192_v22 = vpack.c.b16 %v166_v13, %v166_v13  ;;  %v895_v29 = vor.u32 %v1026_v20, %v892_v21  ;;  %v836_v31 = vld [vmem:[%s1579_s1 + $0x48] sm:$0xf0]  ;;  %v1024_v32 = vld [vmem:[%s1579_s1 + $0xa4] sm:$0xf]  ;;  %v890_v34 = vld [vmem:[%s1579_s1 + $0xb0] sm:$0xf]  ;;  %v835_v37 = vor.u32 %v1013_v26, %v834_v25 }
   0x8   :  { %233 = vmatpush.bf16.msra.mxu0 %v851_v11  ;;  %v884_v33 = vld [vmem:[%s1579_s1 + $0xa8] sm:$0xf0]  ;;  %v1027_v35 = vld [vmem:[%s1579_s1 + $0xb4] sm:$0xf0]  ;;  %v826_v38 = vld [vmem:[%s1579_s1 + $0x30] sm:$0xf]  ;;  %v839_v40 = vor.u32 %v1012_v30, %v836_v31 }
   0x9   :  { %v230_v23 = vsel %vm225_vm0, %v193_v18, 0  ;;  %v227_v27 = vsel %vm225_vm0, %v192_v22, 0  ;;  %271 = vmatpush.bf16.msra.mxu2 %v855_v14  ;;  %v891_v36 = vor.u32 %v1027_v35, %v890_v34  ;;  %v882_v39 = vld [vmem:[%s1579_s1 + $0xa0] sm:$0xf]  ;;  %v887_v41 = vor.u32 %v1024_v32, %v884_v33  ;;  %v1011_v42 = vld [vmem:[%s1579_s1 + $0x34] sm:$0xf0]  ;;  %vm1537_vm8 = vmor %vm774_vm6, %vm225_vm0 }
   0xa   :  { %292 = vmatpush.bf16.msra.mxu3 %v230_v23  ;;  %254 = vmatpush.bf16.msra.mxu1 %v227_v27  ;;  %v1010_v43 = vld [vmem:[%s1579_s1 + $0x34] sm:$0xf]  ;;  %v1025_v44 = vld [vmem:[%s1579_s1 + $0xa4] sm:$0xf0]  ;;  %v828_v45 = vld [vmem:[%s1579_s1 + $0x38] sm:$0xf0]  ;;  %v827_v49 = vor.u32 %v1011_v42, %v826_v38 }
   0xb   :  { %v1022_v46 = vld [vmem:[%s1579_s1 + $0x94] sm:$0xf]  ;;  %v876_v47 = vld [vmem:[%s1579_s1 + $0x98] sm:$0xf0]  ;;  %v883_v48 = vor.u32 %v1025_v44, %v882_v39  ;;  %v874_v50 = vld [vmem:[%s1579_s1 + $0x90] sm:$0xf]  ;;  %v831_v52 = vor.u32 %v1010_v43, %v828_v45 }
   0xc   :  { %234 = vmatpush.bf16.msra.mxu0 %v843_v24  ;;  %v1023_v51 = vld [vmem:[%s1579_s1 + $0x94] sm:$0xf0]  ;;  %v879_v53 = vor.u32 %v1022_v46, %v876_v47  ;;  %v818_v54 = vld [vmem:[%s1579_s1 + $0x20] sm:$0xf]  ;;  %v1009_v55 = vld [vmem:[%s1579_s1 + $0x24] sm:$0xf0] }
   0xd   :  { %272 = vmatpush.bf16.msra.mxu2 %v847_v28  ;;  %v1008_v56 = vld [vmem:[%s1579_s1 + $0x24] sm:$0xf]  ;;  %v820_v57 = vld [vmem:[%s1579_s1 + $0x28] sm:$0xf0]  ;;  %v875_v60 = vor.u32 %v1023_v51, %v874_v50  ;;  %v866_v61 = vld [vmem:[%s1579_s1 + $0x80] sm:$0xf]  ;;  %v819_v63 = vor.u32 %v1009_v55, %v818_v54 }
   0xe   :  { %293 = vmatpush.bf16.msra.mxu3 %v895_v29  ;;  %255 = vmatpush.bf16.msra.mxu1 %v891_v36  ;;  %v1020_v58 = vld [vmem:[%s1579_s1 + $0x84] sm:$0xf]  ;;  %v868_v59 = vld [vmem:[%s1579_s1 + $0x88] sm:$0xf0]  ;;  %v1021_v62 = vld [vmem:[%s1579_s1 + $0x84] sm:$0xf0]  ;;  %v823_v3 = vor.u32 %v1008_v56, %v820_v57 }
   0xf   :  { %v810_v0 = vld [vmem:[%s1579_s1 + $0x10] sm:$0xf]  ;;  %v1007_v1 = vld [vmem:[%s1579_s1 + $0x14] sm:$0xf0]  ;;  %v871_v4 = vor.u32 %v1020_v58, %v868_v59  ;;  %v1000_v5 = vld [vmem:[%s1581_s0 + $0x4] sm:$0xf]  ;;  %v867_v10 = vor.u32 %v1021_v62, %v866_v61 }
  0x10   :  { %235 = vmatpush.bf16.msra.mxu0 %v835_v37  ;;  %v958_v2 = vld [vmem:[%s1580_s3 + $0x70] sm:$0xf]  ;;  %v788_v6 = vld [vmem:[%s1581_s0 + $0x8] sm:$0xf0]  ;;  %v1043_v7 = vld [vmem:[%s1580_s3 + $0x74] sm:$0xf0]  ;;  %v811_v13 = vor.u32 %v1007_v1, %v810_v0 }
  0x11   :  { %273 = vmatpush.bf16.msra.mxu2 %v839_v40  ;;  %v1006_v8 = vld [vmem:[%s1579_s1 + $0x14] sm:$0xf]  ;;  %v812_v9 = vld [vmem:[%s1579_s1 + $0x18] sm:$0xf0]  ;;  %v959_v11 = vor.u32 %v1043_v7, %v958_v2  ;;  %v352_v12 = vld [vmem:[%s1580_s3 + $0xc0] sm:$0xff]  ;;  %v791_v14 = vor.u32 %v1000_v5, %v788_v6 }
  0x12   :  { %294 = vmatpush.bf16.msra.mxu3 %v887_v41  ;;  %256 = vmatpush.bf16.msra.mxu1 %v883_v48  ;;  %v802_v15 = vld [vmem:[%s1579_s1] sm:$0xf]  ;;  %v1041_v17 = vld [vmem:[%s1580_s3 + $0x64] sm:$0xf0]  ;;  %v427_v18 = vunpack.c.h.b16 %v352_v12  ;;  %v426_v19 = vunpack.c.l.b16 %v352_v12  ;;  %v815_v20 = vor.u32 %v1006_v8, %v812_v9  ;;  %v1004_v22 = vld [vmem:[%s1579_s1 + $0x4] sm:$0xf] }
  0x13   :  { %v950_v16 = vld [vmem:[%s1580_s3 + $0x60] sm:$0xf]  ;;  %v1005_v21 = vld [vmem:[%s1579_s1 + $0x4] sm:$0xf0]  ;;  %v804_v23 = vld [vmem:[%s1579_s1 + $0x8] sm:$0xf0] }
  0x14   :  { %236 = vmatpush.bf16.msra.mxu0 %v827_v49  ;;  %v786_v24 = vld [vmem:[%s1581_s0] sm:$0xf]  ;;  %v1042_v25 = vld [vmem:[%s1580_s3 + $0x74] sm:$0xf]  ;;  %v960_v26 = vld [vmem:[%s1580_s3 + $0x78] sm:$0xf0]  ;;  %v452_v27 = vpack.c.b16 %v426_v19, %v426_v19  ;;  %v951_v29 = vor.u32 %v1041_v17, %v950_v16  ;;  %v453_v30 = vpack.c.b16 %v427_v18, %v427_v18  ;;  %v803_v33 = vor.u32 %v1005_v21, %v802_v15 }
  0x15   :  { %274 = vmatpush.bf16.msra.mxu2 %v831_v52  ;;  %v1001_v28 = vld [vmem:[%s1581_s0 + $0x4] sm:$0xf0]  ;;  %v990_v31 = vld [vmem:[%s1580_s3 + $0xb0] sm:$0xf]  ;;  %v1051_v32 = vld [vmem:[%s1580_s3 + $0xb4] sm:$0xf0]  ;;  %v807_v37 = vor.u32 %v1004_v22, %v804_v23  ;;  %v963_v38 = vor.u32 %v1042_v25, %v960_v26 }
  0x16   :  { %295 = vmatpush.bf16.msra.mxu3 %v879_v53  ;;  %257 = vmatpush.bf16.msra.mxu1 %v875_v60  ;;  %v485_v34 = vsel %vm225_vm0, %v452_v27, 0  ;;  %v942_v35 = vld [vmem:[%s1580_s3 + $0x50] sm:$0xf]  ;;  %v1039_v36 = vld [vmem:[%s1580_s3 + $0x54] sm:$0xf0]  ;;  %v991_v41 = vor.u32 %v1051_v32, %v990_v31  ;;  %v787_v42 = vor.u32 %v1001_v28, %v786_v24  ;;  %v488_v43 = vsel %vm225_vm0, %v453_v30, 0 }
  0x17   :  { %v1040_v39 = vld [vmem:[%s1580_s3 + $0x64] sm:$0xf]  ;;  %v952_v40 = vld [vmem:[%s1580_s3 + $0x68] sm:$0xf0]  ;;  %v943_v44 = vor.u32 %v1039_v36, %v942_v35  ;;  %v1050_v45 = vld [vmem:[%s1580_s3 + $0xb4] sm:$0xf] }
  0x18   :  { %237 = vmatpush.bf16.msra.mxu0 %v819_v63  ;;  %v992_v46 = vld [vmem:[%s1580_s3 + $0xb8] sm:$0xf0]  ;;  %v934_v47 = vld [vmem:[%s1580_s3 + $0x40] sm:$0xf]  ;;  %v1037_v48 = vld [vmem:[%s1580_s3 + $0x44] sm:$0xf0]  ;;  %v955_v49 = vor.u32 %v1040_v39, %v952_v40 }
  0x19   :  { %275 = vmatpush.bf16.msra.mxu2 %v823_v3  ;;  %v1038_v50 = vld [vmem:[%s1580_s3 + $0x54] sm:$0xf]  ;;  %v944_v51 = vld [vmem:[%s1580_s3 + $0x58] sm:$0xf0]  ;;  %v995_v52 = vor.u32 %v1050_v45, %v992_v46  ;;  %v935_v53 = vor.u32 %v1037_v48, %v934_v47  ;;  %v1036_v57 = vld [vmem:[%s1580_s3 + $0x44] sm:$0xf] }
  0x1a   :  { %296 = vmatpush.bf16.msra.mxu3 %v871_v4  ;;  %258 = vmatpush.bf16.msra.mxu1 %v867_v10  ;;  %v1002_v54 = vld [vmem:[%s1581_s0 + $0x14] sm:$0xf]  ;;  %v796_v55 = vld [vmem:[%s1581_s0 + $0x18] sm:$0xf0]  ;;  %v947_v56 = vor.u32 %v1038_v50, %v944_v51  ;;  %v936_v58 = vld [vmem:[%s1580_s3 + $0x48] sm:$0xf0] }
  0x1b   :  { %v799_v59 = vor.u32 %v1002_v54, %v796_v55  ;;  %v939_v60 = vor.u32 %v1036_v57, %v936_v58  ;;  %v794_v61 = vld [vmem:[%s1581_s0 + $0x10] sm:$0xf]  ;;  %v1003_v62 = vld [vmem:[%s1581_s0 + $0x14] sm:$0xf0]  ;;  %v1034_v2 = vld [vmem:[%s1580_s3 + $0x34] sm:$0xf] }
  0x1c   :  { %238 = vmatpush.bf16.msra.mxu0 %v811_v13  ;;  %v795_v63 = vor.u32 %v1003_v62, %v794_v61  ;;  %v926_v0 = vld [vmem:[%s1580_s3 + $0x30] sm:$0xf]  ;;  %v1035_v1 = vld [vmem:[%s1580_s3 + $0x34] sm:$0xf0]  ;;  %v928_v4 = vld [vmem:[%s1580_s3 + $0x38] sm:$0xf0] }
  0x1d   :  { %898 = vmatmul.msk.bf16.vlgmr.msra.gmra.mxu3 %vm32_vm1, %v791_v14  ;;  %276 = vmatpush.bf16.msra.mxu2 %v815_v20  ;;  %v927_v3 = vor.u32 %v1035_v1, %v926_v0  ;;  %v931_v5 = vor.u32 %v1034_v2, %v928_v4  ;;  %v918_v6 = vld [vmem:[%s1580_s3 + $0x20] sm:$0xf]  ;;  %v1033_v7 = vld [vmem:[%s1580_s3 + $0x24] sm:$0xf0]  ;;  %v1032_v8 = vld [vmem:[%s1580_s3 + $0x24] sm:$0xf] }
  0x1e   :  { %490 = vmatpush.bf16.msrb.mxu1 %v959_v11  ;;  %512 = vmatpush.bf16.msrb.mxu3 %v485_v34  ;;  %v1048_v9 = vld [vmem:[%s1580_s3 + $0xa4] sm:$0xf]  ;;  %v984_v10 = vld [vmem:[%s1580_s3 + $0xa8] sm:$0xf0]  ;;  %v982_v11 = vld [vmem:[%s1580_s3 + $0xa0] sm:$0xf]  ;;  %v919_v12 = vor.u32 %v1033_v7, %v918_v6 }
  0x1f   :  { %896 = vmatmul.msk.bf16.vlgmr.msra.gmra.mxu1 %vm32_vm1, %v791_v14  ;;  %v987_v13 = vor.u32 %v1048_v9, %v984_v10  ;;  %v1049_v14 = vld [vmem:[%s1580_s3 + $0xa4] sm:$0xf0]  ;;  %v920_v15 = vld [vmem:[%s1580_s3 + $0x28] sm:$0xf0]  ;;  %v910_v18 = vld [vmem:[%s1580_s3 + $0x10] sm:$0xf] }
  0x20   :  { %239 = vmatpush.bf16.msra.mxu0 %v803_v33  ;;  %v983_v16 = vor.u32 %v1049_v14, %v982_v11  ;;  %v923_v17 = vor.u32 %v1032_v8, %v920_v15  ;;  %v1031_v19 = vld [vmem:[%s1580_s3 + $0x14] sm:$0xf0]  ;;  %v1030_v20 = vld [vmem:[%s1580_s3 + $0x14] sm:$0xf]  ;;  %v912_v22 = vld [vmem:[%s1580_s3 + $0x18] sm:$0xf0] }
  0x21   :  { %277 = vmatpush.bf16.msra.mxu2 %v807_v37  ;;  %v911_v21 = vor.u32 %v1031_v19, %v910_v18  ;;  %v915_v23 = vor.u32 %v1030_v20, %v912_v22  ;;  %v902_v24 = vld [vmem:[%s1580_s3] sm:$0xf]  ;;  %v1029_v25 = vld [vmem:[%s1580_s3 + $0x4] sm:$0xf0]  ;;  %v1028_v26 = vld [vmem:[%s1580_s3 + $0x4] sm:$0xf] }
  0x22   :  { %491 = vmatpush.bf16.msrb.mxu1 %v951_v29  ;;  %513 = vmatpush.bf16.msrb.mxu3 %v991_v41  ;;  %v903_v27 = vor.u32 %v1029_v25, %v902_v24  ;;  %v904_v28 = vld [vmem:[%s1580_s3 + $0x8] sm:$0xf0]  ;;  %v1046_v29 = vld [vmem:[%s1580_s3 + $0x94] sm:$0xf]  ;;  %v976_v30 = vld [vmem:[%s1580_s3 + $0x98] sm:$0xf0] }
  0x23   :  { %240 = vmatmul.bf16.vlgmr.msra.gmra.mxu0 %v787_v42  ;;  %v974_v31 = vld [vmem:[%s1580_s3 + $0x90] sm:$0xf]  ;;  %v907_v32 = vor.u32 %v1028_v26, %v904_v28  ;;  %v979_v33 = vor.u32 %v1046_v29, %v976_v30  ;;  %v1047_v34 = vld [vmem:[%s1580_s3 + $0x94] sm:$0xf0]  ;;  %v1044_v36 = vld [vmem:[%s1580_s3 + $0x84] sm:$0xf] }
  0x24   :  { %528 = vmatpush.bf16.msrb.mxu0 %v963_v38  ;;  %278 = vmatmul.bf16.vlgmr.msra.gmra.mxu2 %v787_v42  ;;  %v975_v35 = vor.u32 %v1047_v34, %v974_v31  ;;  %v968_v37 = vld [vmem:[%s1580_s3 + $0x88] sm:$0xf0]  ;;  %v966_v38 = vld [vmem:[%s1580_s3 + $0x80] sm:$0xf]  ;;  %v1045_v40 = vld [vmem:[%s1580_s3 + $0x84] sm:$0xf0] }
  0x25   :  { %550 = vmatpush.bf16.msrb.mxu2 %v488_v43  ;;  %v971_v39 = vor.u32 %v1044_v36, %v968_v37  ;;  %v967_v41 = vor.u32 %v1045_v40, %v966_v38  ;;  %v69_v43 = vld [vmem:[%s1582_s2] sm:$0x3]  ;;  %v1064_v25 = vmov 0.0  }
  0x26   :  { %492 = vmatpush.bf16.msrb.mxu1 %v943_v44  ;;  %514 = vmatpush.bf16.msrb.mxu3 %v983_v16  ;;  %v71_v44 = vperm.slane %v69_v43, 0  ;;  %v72_v51 = vperm.slane %v69_v43, 1  ;;  %33 = vst.msk [vmem:[#allocation2 + $0x8] sm:$0xff] %vm32_vm1, %v1064_v25  ;;  %v593_v36 = vld [vmem:[%s1583_s4] sm:$0x3] }
  0x27   :  { %35 = vst.msk [vmem:[#allocation2 + $0x18] sm:$0xff] %vm32_vm1, %v1064_v25  ;;  %v596_v43 = vperm.slane %v593_v36, 1 }
  0x28   :  { %529 = vmatpush.bf16.msrb.mxu0 %v955_v49  ;;  %37 = vst.msk [vmem:[#allocation2 + $0x28] sm:$0xff] %vm32_vm1, %v1064_v25 }
  0x29   :  { %551 = vmatpush.bf16.msrb.mxu2 %v995_v52  ;;  %39 = vst.msk [vmem:[#allocation2 + $0x38] sm:$0xff] %vm32_vm1, %v1064_v25 }
  0x2a   :  { %493 = vmatpush.bf16.msrb.mxu1 %v935_v53  ;;  %515 = vmatpush.bf16.msrb.mxu3 %v975_v35 }
  0x2c   :  { %530 = vmatpush.bf16.msrb.mxu0 %v947_v56 }
  0x2d   :  { %899 = vmatmul.msk.bf16.gmra.mxu3 %vm32_vm1, %v799_v59  ;;  %552 = vmatpush.bf16.msrb.mxu2 %v987_v13  ;;  %v317_v29 = vld [vmem:[#allocation2 + $0x8] sm:$0xff] }
  0x2e   :  { %494 = vmatpush.bf16.msrb.mxu1 %v927_v3  ;;  %516 = vmatpush.bf16.msrb.mxu3 %v967_v41  ;;  %v319_v38 = vld [vmem:[#allocation2 + $0x18] sm:$0xff] }
  0x2f   :  { %897 = vmatmul.msk.bf16.gmra.mxu1 %vm32_vm1, %v799_v59 }
  0x30   :  { %531 = vmatpush.bf16.msrb.mxu0 %v939_v60 }
  0x31   :  { %553 = vmatpush.bf16.msrb.mxu2 %v979_v33 }
  0x32   :  { %495 = vmatpush.bf16.msrb.mxu1 %v919_v12 }
  0x33   :  { %245 = vmatmul.bf16.gmra.mxu0 %v795_v63 }
  0x34   :  { %283 = vmatmul.bf16.gmra.mxu2 %v795_v63  ;;  %532 = vmatpush.bf16.msrb.mxu0 %v931_v5 }
  0x35   :  { %554 = vmatpush.bf16.msrb.mxu2 %v971_v39 }
  0x36   :  { %496 = vmatpush.bf16.msrb.mxu1 %v911_v21 }
  0x38   :  { %533 = vmatpush.bf16.msrb.mxu0 %v923_v17 }
  0x3a   :  { %497 = vmatpush.bf16.msrb.mxu1 %v903_v27 }
  0x3c   :  { %534 = vmatpush.bf16.msrb.mxu0 %v915_v23 }
  0x40   :  { %535 = vmatpush.bf16.msrb.mxu0 %v907_v32 }
  0x9c   :  { %v260_v42 = vpop.f32.mrf.mxu1 }
  0xa0   :  { %v241_v45 = vpop.f32.mrf.mxu0  ;;  %v298_v47 = vpop.f32.mrf.mxu3 }
  0xa1   :  { %v242_v46 = vadd.f32 %v241_v45, %v71_v44 }
  0xa3   :  { %v261_v49 = vadd.f32 %v260_v42, %v242_v46  ;;  %v595_v42 = vperm.slane %v593_v36, 0 }
  0xa4   :  { %v262_v48 = vpop.f32.mrf.mxu1 }
  0xa5   :  { %v308_v54 = vmax.f32 %v261_v49, 0.0 }
  0xa7   :  { %v279_v50 = vpop.f32.mrf.mxu2 }
  0xa8   :  { %v243_v52 = vpop.f32.mrf.mxu0  ;;  %v280_v56 = vadd.f32 %v279_v50, %v72_v51  ;;  %v300_v57 = vpop.f32.mrf.mxu3 }
  0xa9   :  { %v244_v53 = vadd.f32 %v243_v52, %v71_v44 }
  0xaa   :  { %v299_v62 = vadd.f32 %v298_v47, %v280_v56 }
  0xab   :  { %v263_v55 = vadd.f32 %v262_v48, %v244_v53 }
  0xac   :  { %v265_v59 = vpop.f32.mrf.mxu1  ;;  %v309_v3 = vmax.f32 %v299_v62, 0.0 }
  0xad   :  { %v310_v58 = vmax.f32 %v263_v55, 0.0 }
  0xaf   :  { %v324_v60 = vpack.c.bf16 %v310_v58, %v308_v54  ;;  %v281_v61 = vpop.f32.mrf.mxu2  ;;  %v321_v54 = vld [vmem:[#allocation2 + $0x28] sm:$0xff] }
  0xb0   :  { %v282_v63 = vadd.f32 %v281_v61, %v72_v51  ;;  %v246_v0 = vpop.f32.mrf.mxu0  ;;  %v303_v6 = vpop.f32.mrf.mxu3  ;;  %v608_v61 = vld [vmem:[%s1581_s0 + $0x8] sm:$0xff] }
  0xb1   :  { %498 = vmatmul.bf16.vlgmr.msrb.gmra.mxu1 %v324_v60  ;;  %536 = vmatmul.bf16.vlgmr.msrb.gmra.mxu0 %v324_v60  ;;  %v247_v2 = vadd.f32 %v246_v0, %v71_v44  ;;  %v614_v0 = vunpack.c.h.bf16 %v608_v61 }
  0xb2   :  { %v301_v1 = vadd.f32 %v300_v57, %v282_v63 }
  0xb3   :  { %v266_v7 = vadd.f32 %v265_v59, %v247_v2 }
  0xb4   :  { %v311_v4 = vmax.f32 %v301_v1, 0.0  ;;  %v267_v10 = vpop.f32.mrf.mxu1 }
  0xb5   :  { %v312_v12 = vmax.f32 %v266_v7, 0.0 }
  0xb6   :  { %v325_v5 = vpack.c.bf16 %v311_v4, %v309_v3  ;;  %v613_v3 = vunpack.c.l.bf16 %v608_v61 }
  0xb7   :  { %v284_v8 = vpop.f32.mrf.mxu2 }
  0xb8   :  { %996 = vmatmul.msk.bf16.vlgmr.msrb.gmra.mxu3 %vm32_vm1, %v325_v5  ;;  %998 = vmatmul.msk.bf16.vlgmr.msrb.gmra.mxu2 %vm32_vm1, %v325_v5  ;;  %v248_v9 = vpop.f32.mrf.mxu0  ;;  %v285_v14 = vadd.f32 %v284_v8, %v72_v51  ;;  %v305_v20 = vpop.f32.mrf.mxu3  ;;  %v323_v8 = vld [vmem:[#allocation2 + $0x38] sm:$0xff] }
  0xb9   :  { %v249_v11 = vadd.f32 %v248_v9, %v71_v44  ;;  %v607_v44 = vld [vmem:[%s1581_s0] sm:$0xff] }
  0xba   :  { %v304_v18 = vadd.f32 %v303_v6, %v285_v14  ;;  %v612_v46 = vunpack.c.h.bf16 %v607_v44 }
  0xbb   :  { %v268_v13 = vadd.f32 %v267_v10, %v249_v11 }
  0xbc   :  { %v313_v22 = vmax.f32 %v304_v18, 0.0 }
  0xbd   :  { %v314_v15 = vmax.f32 %v268_v13, 0.0 }
  0xbf   :  { %v286_v16 = vpop.f32.mrf.mxu2  ;;  %v326_v17 = vpack.c.bf16 %v314_v15, %v312_v12  ;;  %v609_v15 = vld [vmem:[%s1581_s0 + $0x10] sm:$0xff] }
  0xc0   :  { %v287_v19 = vadd.f32 %v286_v16, %v72_v51  ;;  %v611_v51 = vunpack.c.l.bf16 %v607_v44  ;;  %v616_v18 = vunpack.c.h.bf16 %v609_v15 }
  0xc1   :  { %503 = vmatmul.bf16.gmra.mxu1 %v326_v17  ;;  %541 = vmatmul.bf16.gmra.mxu0 %v326_v17 }
  0xc2   :  { %v306_v21 = vadd.f32 %v305_v20, %v287_v19 }
  0xc4   :  { %v315_v23 = vmax.f32 %v306_v21, 0.0  ;;  %v615_v21 = vunpack.c.l.bf16 %v609_v15 }
  0xc6   :  { %v327_v24 = vpack.c.bf16 %v315_v23, %v313_v22 }
  0xc8   :  { %997 = vmatmul.msk.bf16.gmra.mxu3 %vm32_vm1, %v327_v24  ;;  %999 = vmatmul.msk.bf16.gmra.mxu2 %vm32_vm1, %v327_v24 }
 0x12e   :  { %v499_v26 = vpop.f32.mrf.mxu1  ;;  %v537_v27 = vpop.f32.mrf.mxu0 }
 0x136   :  { %v501_v33 = vpop.f32.mrf.mxu1  ;;  %v539_v34 = vpop.f32.mrf.mxu0 }
 0x13b   :  { %v518_v28 = vpop.f32.mrf.mxu3  ;;  %v556_v30 = vpop.f32.mrf.mxu2 }
 0x13c   :  { %v519_v31 = vadd.f32 %v518_v28, %v499_v26  ;;  %v557_v32 = vadd.f32 %v556_v30, %v537_v27  ;;  %v610_v26 = vld [vmem:[%s1581_s0 + $0x18] sm:$0xff] }
 0x13d   :  { %v618_v28 = vunpack.c.h.bf16 %v610_v26 }
 0x13e   :  { %v567_v35 = vadd.f32 %v557_v32, %v317_v29  ;;  %v504_v47 = vpop.f32.mrf.mxu1  ;;  %v542_v48 = vpop.f32.mrf.mxu0  ;;  %v599_v50 = vadd.f32 %v595_v42, %v519_v31  ;;  %v617_v31 = vunpack.c.l.bf16 %v610_v26 }
 0x140   :  { %575 = vst.msk [vmem:[#allocation2 + $0x8] sm:$0xff] %vm32_vm1, %v567_v35  ;;  %v619_v59 = vadd.f32 %v611_v51, %v599_v50 }
 0x143   :  { %v520_v37 = vpop.f32.mrf.mxu3  ;;  %v558_v39 = vpop.f32.mrf.mxu2 }
 0x144   :  { %v521_v40 = vadd.f32 %v520_v37, %v501_v33  ;;  %v559_v41 = vadd.f32 %v558_v39, %v539_v34  ;;  %v1065_v37 = vmov 200.0  }
 0x145   :  { %1054 = vrcp.f32 %v1065_v37 }
 0x146   :  { %v569_v45 = vadd.f32 %v559_v41, %v319_v38  ;;  %v601_v2 = vadd.f32 %v595_v42, %v521_v40  ;;  %v506_v5 = vpop.f32.mrf.mxu1  ;;  %v544_v6 = vpop.f32.mrf.mxu0 }
 0x147   :  { %v586_v49 = vld [vmem:[#allocation2 + $0x8] sm:$0xff] }
 0x148   :  { %577 = vst.msk [vmem:[#allocation2 + $0x18] sm:$0xff] %vm32_vm1, %v569_v45  ;;  %v600_v52 = vadd.f32 %v596_v43, %v586_v49  ;;  %v621_v13 = vadd.f32 %v613_v3, %v601_v2 }
 0x14a   :  { %v1451_v56 = vadd.f32 %v612_v46, %v600_v52 }
 0x14b   :  { %v523_v53 = vpop.f32.mrf.mxu3  ;;  %v561_v55 = vpop.f32.mrf.mxu2 }
 0x14c   :  { %v524_v57 = vadd.f32 %v523_v53, %v504_v47  ;;  %v562_v58 = vadd.f32 %v561_v55, %v542_v48  ;;  %v627_v60 = vsel %vm32_vm1, %v1451_v56, 0.0  ;;  %v1055_v38 = vpop.eup %1054 }
 0x14d   :  { %v628_v63 = vadd.f32 %v627_v60, %v619_v59  ;;  %v644_v39 = vmul.f32 200.0, %v1055_v38  ;;  %vm648_vm2 = vweird.f32 %v1055_v38 }
 0x14e   :  { %v571_v62 = vadd.f32 %v562_v58, %v321_v54  ;;  %v603_v20 = vadd.f32 %v595_v42, %v524_v57 }
 0x14f   :  { %629 = vadd.xlane.f32.xlu0 %v628_v63  ;;  %v588_v1 = vld [vmem:[#allocation2 + $0x18] sm:$0xff]  ;;  %v645_v40 = vsub.f32 1.0, %v644_v39 }
 0x150   :  { %579 = vst.msk [vmem:[#allocation2 + $0x28] sm:$0xff] %vm32_vm1, %v571_v62  ;;  %v602_v4 = vadd.f32 %v596_v43, %v588_v1  ;;  %v623_v24 = vadd.f32 %v615_v21, %v603_v20 }
 0x151   :  { %v646_v41 = vmul.f32 %v1055_v38, %v645_v40 }
 0x152   :  { %v622_v10 = vadd.f32 %v614_v0, %v602_v4 }
 0x153   :  { %v525_v7 = vpop.f32.mrf.mxu3  ;;  %v563_v9 = vpop.f32.mrf.mxu2  ;;  %v647_v44 = vadd.f32 %v1055_v38, %v646_v41 }
 0x154   :  { %v526_v11 = vadd.f32 %v525_v7, %v506_v5  ;;  %v564_v12 = vadd.f32 %v563_v9, %v544_v6  ;;  %v631_v14 = vsel %vm32_vm1, %v622_v10, 0.0 }
 0x155   :  { %v632_v17 = vadd.f32 %v631_v14, %v621_v13  ;;  %v1469_v45 = vsel %vm648_vm2, %v1055_v38, %v647_v44 }
 0x156   :  { %v573_v16 = vadd.f32 %v564_v12, %v323_v8  ;;  %v605_v30 = vadd.f32 %v595_v42, %v526_v11 }
 0x157   :  { %633 = vadd.xlane.f32.xlu0 %v632_v17  ;;  %v590_v19 = vld [vmem:[#allocation2 + $0x28] sm:$0xff] }
 0x158   :  { %581 = vst.msk [vmem:[#allocation2 + $0x38] sm:$0xff] %vm32_vm1, %v573_v16  ;;  %v604_v22 = vadd.f32 %v596_v43, %v590_v19  ;;  %v625_v34 = vadd.f32 %v617_v31, %v605_v30 }
 0x15a   :  { %v624_v23 = vadd.f32 %v616_v18, %v604_v22 }
 0x15c   :  { %v635_v25 = vsel %vm32_vm1, %v624_v23, 0.0 }
 0x15d   :  { %v636_v27 = vadd.f32 %v635_v25, %v623_v24 }
 0x15f   :  { %637 = vadd.xlane.f32.xlu1 %v636_v27  ;;  %v592_v29 = vld [vmem:[#allocation2 + $0x38] sm:$0xff] }
 0x160   :  { %v606_v32 = vadd.f32 %v596_v43, %v592_v29 }
 0x162   :  { %v626_v33 = vadd.f32 %v618_v28, %v606_v32  ;;  %v756_v28 = vld [vmem:[%s1585_s6] sm:$0x3] }
 0x164   :  { %v639_v35 = vsel %vm32_vm1, %v626_v33, 0.0 }
 0x165   :  { %v640_v36 = vadd.f32 %v639_v35, %v625_v34  ;;  %v1525_v35 = vperm.slane %v756_v28, 0 }
 0x167   :  { %641 = vadd.xlane.f32.xlu1 %v640_v36  ;;  %v1527_v36 = vperm.slane %v756_v28, 1 }
 0x1c2   :  { %v630_v46 = vpop.xlane.xlu0 %629 }
 0x1c3   :  { %v650_v42 = vmul.f32 %v1469_v45, %v630_v46 }
 0x1c5   :  { %v1472_v43 = vsub.f32 %v619_v59, %v650_v42  ;;  %v1475_v47 = vsub.f32 %v1451_v56, %v650_v42 }
 0x1c7   :  { %v662_v48 = vmul.f32 %v1472_v43, %v1472_v43  ;;  %v663_v49 = vmul.f32 %v1475_v47, %v1475_v47 }
 0x1c9   :  { %v670_v50 = vsel %vm32_vm1, %v663_v49, 0.0 }
 0x1ca   :  { %v634_v51 = vpop.xlane.xlu0 %633  ;;  %v671_v52 = vadd.f32 %v670_v50, %v662_v48 }
 0x1cb   :  { %v651_v53 = vmul.f32 %v1469_v45, %v634_v51 }
 0x1cc   :  { %672 = vadd.xlane.f32.xlu2 %v671_v52 }
 0x1cd   :  { %v1483_v54 = vsub.f32 %v621_v13, %v651_v53  ;;  %v1485_v55 = vsub.f32 %v622_v10, %v651_v53 }
 0x1cf   :  { %v664_v56 = vmul.f32 %v1483_v54, %v1483_v54  ;;  %v665_v57 = vmul.f32 %v1485_v55, %v1485_v55 }
 0x1d1   :  { %v674_v58 = vsel %vm32_vm1, %v665_v57, 0.0 }
 0x1d2   :  { %v638_v59 = vpop.xlane.xlu1 %637  ;;  %v675_v60 = vadd.f32 %v674_v58, %v664_v56 }
 0x1d3   :  { %v652_v61 = vmul.f32 %v1469_v45, %v638_v59 }
 0x1d4   :  { %676 = vadd.xlane.f32.xlu2 %v675_v60 }
 0x1d5   :  { %v1493_v62 = vsub.f32 %v623_v24, %v652_v61  ;;  %v1495_v63 = vsub.f32 %v624_v23, %v652_v61  ;;  %v742_v24 = vld [vmem:[%s1584_s5] sm:$0x3] }
 0x1d6   :  { %v1521_v31 = vperm.slane %v742_v24, 0  ;;  %v1523_v32 = vperm.slane %v742_v24, 1 }
 0x1d7   :  { %v666_v0 = vmul.f32 %v1493_v62, %v1493_v62  ;;  %v667_v1 = vmul.f32 %v1495_v63, %v1495_v63 }
 0x1d9   :  { %v678_v2 = vsel %vm32_vm1, %v667_v1, 0.0 }
 0x1da   :  { %v642_v3 = vpop.xlane.xlu1 %641  ;;  %v679_v4 = vadd.f32 %v678_v2, %v666_v0 }
 0x1db   :  { %v653_v5 = vmul.f32 %v1469_v45, %v642_v3 }
 0x1dc   :  { %680 = vadd.xlane.f32.xlu0 %v679_v4 }
 0x1dd   :  { %v1503_v6 = vsub.f32 %v625_v34, %v653_v5  ;;  %v1505_v7 = vsub.f32 %v626_v33, %v653_v5 }
 0x1df   :  { %v668_v8 = vmul.f32 %v1503_v6, %v1503_v6  ;;  %v669_v9 = vmul.f32 %v1505_v7, %v1505_v7 }
 0x1e1   :  { %v682_v10 = vsel %vm32_vm1, %v669_v9, 0.0 }
 0x1e2   :  { %v683_v11 = vadd.f32 %v682_v10, %v668_v8 }
 0x1e4   :  { %684 = vadd.xlane.f32.xlu1 %v683_v11 }
 0x23f   :  { %v673_v12 = vpop.xlane.xlu2 %672 }
 0x240   :  { %v686_v13 = vmul.f32 %v673_v12, %v1469_v45 }
 0x242   :  { %v690_v14 = vadd.f32 1e-05, %v686_v13 }
 0x244   :  { %1056 = vrsqrt.f32 %v690_v14  ;;  %vm700_vm4 = vweird.f32 %v690_v14 }
 0x247   :  { %v677_v15 = vpop.xlane.xlu2 %676 }
 0x248   :  { %v687_v16 = vmul.f32 %v677_v15, %v1469_v45 }
 0x24a   :  { %v1057_v17 = vpop.eup %1056  ;;  %v691_v18 = vadd.f32 1e-05, %v687_v16 }
 0x24b   :  { %v695_v19 = vmul.f32 %v1057_v17, %v690_v14  ;;  %vm701_vm3 = vweird.f32 %v1057_v17 }
 0x24c   :  { %1058 = vrsqrt.f32 %v691_v18  ;;  %vm702_vm5 = vmor %vm700_vm4, %vm701_vm3  ;;  %vm710_vm9 = vweird.f32 %v691_v18 }
 0x24d   :  { %v696_v20 = vmul.f32 %v1057_v17, %v695_v19 }
 0x24f   :  { %v697_v21 = vmul.f32 0.5, %v696_v20  ;;  %v681_v22 = vpop.xlane.xlu0 %680 }
 0x250   :  { %v688_v23 = vmul.f32 %v681_v22, %v1469_v45 }
 0x251   :  { %v698_v25 = vsub.f32 1.5, %v697_v21 }
 0x252   :  { %v1059_v26 = vpop.eup %1058  ;;  %v692_v27 = vadd.f32 1e-05, %v688_v23 }
 0x253   :  { %v699_v29 = vmul.f32 %v1057_v17, %v698_v25  ;;  %v705_v30 = vmul.f32 %v1059_v26, %v691_v18  ;;  %vm711_vm7 = vweird.f32 %v1059_v26 }
 0x254   :  { %1060 = vrsqrt.f32 %v692_v27  ;;  %vm712_vm10 = vmor %vm710_vm9, %vm711_vm7  ;;  %vm720_vm12 = vweird.f32 %v692_v27 }
 0x255   :  { %v703_v33 = vsel %vm702_vm5, %v1057_v17, %v699_v29  ;;  %v706_v34 = vmul.f32 %v1059_v26, %v705_v30 }
 0x256   :  { %v734_v37 = vmul.f32 %v703_v33, %v1472_v43  ;;  %v735_v38 = vmul.f32 %v703_v33, %v1475_v47 }
 0x257   :  { %v707_v39 = vmul.f32 0.5, %v706_v34  ;;  %v685_v40 = vpop.xlane.xlu1 %684 }
 0x258   :  { %v748_v41 = vmul.f32 %v1521_v31, %v734_v37  ;;  %v749_v44 = vmul.f32 %v1523_v32, %v735_v38  ;;  %v689_v46 = vmul.f32 %v685_v40, %v1469_v45 }
 0x259   :  { %v708_v42 = vsub.f32 1.5, %v707_v39 }
 0x25a   :  { %v1061_v48 = vpop.eup %1060  ;;  %v762_v49 = vadd.f32 %v1525_v35, %v748_v41  ;;  %v763_v50 = vadd.f32 %v1527_v36, %v749_v44  ;;  %v693_v51 = vadd.f32 1e-05, %v689_v46 }
 0x25b   :  { %v709_v47 = vmul.f32 %v1059_v26, %v708_v42  ;;  %v715_v52 = vmul.f32 %v1061_v48, %v692_v27  ;;  %vm721_vm11 = vweird.f32 %v1061_v48 }
 0x25c   :  { %v770_v53 = vpack.c.bf16 %v763_v50, %v762_v49  ;;  %1062 = vrsqrt.f32 %v693_v51  ;;  %vm722_vm13 = vmor %vm720_vm12, %vm721_vm11  ;;  %vm730_vm15 = vweird.f32 %v693_v51 }
 0x25d   :  { %v713_v45 = vsel %vm712_vm10, %v1059_v26, %v709_v47  ;;  %v716_v56 = vmul.f32 %v1061_v48, %v715_v52 }
 0x25e   :  { %776 = vst.msk [vmem:[%s1586_s7] sm:$0xff] %vm1537_vm8, %v770_v53  ;;  %v736_v57 = vmul.f32 %v713_v45, %v1483_v54  ;;  %v737_v58 = vmul.f32 %v713_v45, %v1485_v55 }
 0x25f   :  { %v717_v59 = vmul.f32 0.5, %v716_v56 }
 0x260   :  { %v750_v60 = vmul.f32 %v1521_v31, %v736_v57  ;;  %v751_v61 = vmul.f32 %v1523_v32, %v737_v58 }
 0x261   :  { %v718_v0 = vsub.f32 1.5, %v717_v59 }
 0x262   :  { %v1063_v1 = vpop.eup %1062  ;;  %v764_v2 = vadd.f32 %v1525_v35, %v750_v60  ;;  %v765_v3 = vadd.f32 %v1527_v36, %v751_v61 }
 0x263   :  { %v719_v4 = vmul.f32 %v1061_v48, %v718_v0  ;;  %v725_v5 = vmul.f32 %v1063_v1, %v693_v51  ;;  %vm731_vm14 = vweird.f32 %v1063_v1 }
 0x264   :  { %v771_v8 = vpack.c.bf16 %v765_v3, %v764_v2  ;;  %vm732_vm0 = vmor %vm730_vm15, %vm731_vm14 }
 0x265   :  { %v723_v54 = vsel %vm722_vm13, %v1061_v48, %v719_v4  ;;  %v726_v9 = vmul.f32 %v1063_v1, %v725_v5 }
 0x266   :  { %777 = vst.msk [vmem:[%s1586_s7 + $0x8] sm:$0xff] %vm1537_vm8, %v771_v8  ;;  %v738_v55 = vmul.f32 %v723_v54, %v1493_v62  ;;  %v739_v10 = vmul.f32 %v723_v54, %v1495_v63 }
 0x267   :  { %v727_v11 = vmul.f32 0.5, %v726_v9 }
 0x268   :  { %v752_v12 = vmul.f32 %v1521_v31, %v738_v55  ;;  %v753_v13 = vmul.f32 %v1523_v32, %v739_v10 }
 0x269   :  { %v728_v14 = vsub.f32 1.5, %v727_v11 }
 0x26a   :  { %v766_v15 = vadd.f32 %v1525_v35, %v752_v12  ;;  %v767_v16 = vadd.f32 %v1527_v36, %v753_v13 }
 0x26b   :  { %v729_v17 = vmul.f32 %v1063_v1, %v728_v14 }
 0x26c   :  { %v772_v18 = vpack.c.bf16 %v767_v16, %v766_v15 }
 0x26d   :  { %v733_v19 = vsel %vm732_vm0, %v1063_v1, %v729_v17 }
 0x26e   :  { %778 = vst.msk [vmem:[%s1586_s7 + $0x10] sm:$0xff] %vm1537_vm8, %v772_v18  ;;  %v740_v62 = vmul.f32 %v733_v19, %v1503_v6  ;;  %v741_v63 = vmul.f32 %v733_v19, %v1505_v7 }
 0x270   :  { %v754_v20 = vmul.f32 %v1521_v31, %v740_v62  ;;  %v755_v21 = vmul.f32 %v1523_v32, %v741_v63 }
 0x272   :  { %v768_v22 = vadd.f32 %v1525_v35, %v754_v20  ;;  %v769_v23 = vadd.f32 %v1527_v36, %v755_v21 }
 0x274   :  { %v773_v24 = vpack.c.bf16 %v769_v23, %v768_v22 }
 0x276   :  { %779 = vst.msk [vmem:[%s1586_s7 + $0x18] sm:$0xff] %vm1537_vm8, %v773_v24 }

// kernel: transformer_forward.17
= control target key start
LH: loop header
LB: loop body
LE: loop exit
PB: predicated region body
PF: predicated region fallthrough
CT: control target
= control target key end

     0   :  { %vm148_vm0 = vcmask 1043456   ;;  %vm141_vm1 = vcmask 588800   ;;  %s392_s1 = inlined_call_operand.vmem [shape: bf16[200,128], index: 1, kind: input, shape index: {}]   ;;  %s393_s2 = inlined_call_operand.vmem [shape: f32[1,128], index: 2, kind: input, shape index: {}]   ;;  %s394_s0 = inlined_call_operand.vmem [shape: bf16[32,200], index: 0, kind: input, shape index: {}]   ;;  %s395_s3 = inlined_call_operand.vmem [shape: f32[32,128], index: 3, kind: output, shape index: {}]  }
   0x1   :  { %v275_v0 = vld [vmem:[%s392_s1 + $0x38] sm:$0xff]  ;;  %v43_v1 = vld [vmem:[%s392_s1 + $0x60] sm:$0xf]  ;;  %v274_v3 = vld [vmem:[%s392_s1 + $0x30] sm:$0xff] }
   0x2   :  { %v115_v2 = vunpack.c.l.b16 %v43_v1  ;;  %152 = vmatpush.bf16.msra.mxu0 %v275_v0  ;;  %280 = vmatpush.bf16.msra.mxu2 %v275_v0  ;;  %v273_v6 = vld [vmem:[%s392_s1 + $0x28] sm:$0xff]  ;;  %v279_v7 = vld [vmem:[%s392_s1 + $0x58] sm:$0xff]  ;;  %v272_v8 = vld [vmem:[%s392_s1 + $0x20] sm:$0xff] }
   0x3   :  { %v278_v9 = vld [vmem:[%s392_s1 + $0x50] sm:$0xff]  ;;  %v271_v10 = vld [vmem:[%s392_s1 + $0x18] sm:$0xff]  ;;  %v277_v11 = vld [vmem:[%s392_s1 + $0x48] sm:$0xff] }
   0x4   :  { %v128_v4 = vpack.c.b16 %v115_v2, %v115_v2  ;;  %v270_v12 = vld [vmem:[%s392_s1 + $0x10] sm:$0xff]  ;;  %v276_v13 = vld [vmem:[%s392_s1 + $0x40] sm:$0xff]  ;;  %v210_v15 = vld [vmem:[%s394_s0 + $0x18] sm:$0xf0] }
   0x5   :  { %v266_v14 = vld [vmem:[%s394_s0 + $0x14] sm:$0xf]  ;;  %v264_v16 = vld [vmem:[%s394_s0 + $0x4] sm:$0xf]  ;;  %v202_v17 = vld [vmem:[%s394_s0 + $0x8] sm:$0xf0] }
   0x6   :  { %v150_v5 = vsel %vm148_vm0, %v128_v4, 0  ;;  %153 = vmatpush.bf16.msra.mxu0 %v274_v3  ;;  %281 = vmatpush.bf16.msra.mxu2 %v274_v3  ;;  %v269_v18 = vld [vmem:[%s392_s1 + $0x8] sm:$0xff]  ;;  %v213_v19 = vor.u32 %v266_v14, %v210_v15  ;;  %v205_v20 = vor.u32 %v264_v16, %v202_v17  ;;  %v268_v21 = vld [vmem:[%s392_s1] sm:$0xff]  ;;  %v208_v24 = vld [vmem:[%s394_s0 + $0x10] sm:$0xf] }
   0x7   :  { %288 = vmatpush.bf16.msra.mxu3 %v150_v5  ;;  %174 = vmatpush.bf16.msra.mxu1 %v150_v5  ;;  %v200_v22 = vld [vmem:[%s394_s0] sm:$0xf]  ;;  %v265_v23 = vld [vmem:[%s394_s0 + $0x4] sm:$0xf0]  ;;  %v267_v25 = vld [vmem:[%s394_s0 + $0x14] sm:$0xf0] }
   0x8   :  { %v201_v26 = vor.u32 %v265_v23, %v200_v22  ;;  %v209_v27 = vor.u32 %v267_v25, %v208_v24  ;;  %v293_v28 = vld [vmem:[%s393_s2] ss:$0 sm:$0xff] }
   0xa   :  { %154 = vmatpush.bf16.msra.mxu0 %v273_v6  ;;  %282 = vmatpush.bf16.msra.mxu2 %v273_v6 }
   0xb   :  { %289 = vmatpush.bf16.msra.mxu3 %v279_v7  ;;  %175 = vmatpush.bf16.msra.mxu1 %v279_v7 }
   0xe   :  { %155 = vmatpush.bf16.msra.mxu0 %v272_v8  ;;  %283 = vmatpush.bf16.msra.mxu2 %v272_v8 }
   0xf   :  { %290 = vmatpush.bf16.msra.mxu3 %v278_v9  ;;  %176 = vmatpush.bf16.msra.mxu1 %v278_v9 }
  0x12   :  { %156 = vmatpush.bf16.msra.mxu0 %v271_v10  ;;  %284 = vmatpush.bf16.msra.mxu2 %v271_v10 }
  0x13   :  { %291 = vmatpush.bf16.msra.mxu3 %v277_v11  ;;  %177 = vmatpush.bf16.msra.mxu1 %v277_v11 }
  0x16   :  { %157 = vmatpush.bf16.msra.mxu0 %v270_v12  ;;  %285 = vmatpush.bf16.msra.mxu2 %v270_v12 }
  0x17   :  { %292 = vmatpush.bf16.msra.mxu3 %v276_v13  ;;  %178 = vmatpush.bf16.msra.mxu1 %v276_v13 }
  0x1a   :  { %158 = vmatpush.bf16.msra.mxu0 %v269_v18  ;;  %286 = vmatpush.bf16.msra.mxu2 %v269_v18 }
  0x1b   :  { %263 = vmatmul.msk.bf16.vlgmr.msra.gmra.mxu3 %vm141_vm1, %v213_v19  ;;  %262 = vmatmul.msk.bf16.vlgmr.msra.gmra.mxu1 %vm141_vm1, %v205_v20 }
  0x1e   :  { %159 = vmatpush.bf16.msra.mxu0 %v268_v21  ;;  %287 = vmatpush.bf16.msra.mxu2 %v268_v21 }
  0x21   :  { %160 = vmatmul.bf16.vlgmr.msra.gmra.mxu0 %v201_v26  ;;  %165 = vmatmul.bf16.vlgmr.msra.gmra.mxu2 %v209_v27 }
  0x98   :  { %v180_v30 = vpop.f32.mrf.mxu1 }
  0x9e   :  { %v161_v29 = vpop.f32.mrf.mxu0  ;;  %v185_v33 = vpop.f32.mrf.mxu3 }
  0x9f   :  { %v162_v31 = vadd.f32 %v293_v28, %v161_v29 }
  0xa0   :  { %v182_v39 = vpop.f32.mrf.mxu1 }
  0xa1   :  { %v181_v32 = vadd.f32 %v180_v30, %v162_v31 }
  0xa3   :  { %190 = vst [vmem:[%s395_s3] sm:$0xff] %v181_v32 }
  0xa4   :  { %v166_v34 = vpop.f32.mrf.mxu2 }
  0xa5   :  { %v167_v35 = vadd.f32 %v293_v28, %v166_v34 }
  0xa6   :  { %v163_v36 = vpop.f32.mrf.mxu0  ;;  %v187_v43 = vpop.f32.mrf.mxu3 }
  0xa7   :  { %v186_v37 = vadd.f32 %v185_v33, %v167_v35  ;;  %v164_v38 = vadd.f32 %v293_v28, %v163_v36 }
  0xa9   :  { %192 = vst [vmem:[%s395_s3 + $0x10] sm:$0xff] %v186_v37  ;;  %v183_v40 = vadd.f32 %v182_v39, %v164_v38 }
  0xab   :  { %191 = vst [vmem:[%s395_s3 + $0x8] sm:$0xff] %v183_v40 }
  0xac   :  { %v168_v41 = vpop.f32.mrf.mxu2 }
  0xad   :  { %v169_v42 = vadd.f32 %v293_v28, %v168_v41 }
  0xaf   :  { %v188_v44 = vadd.f32 %v187_v43, %v169_v42 }
  0xb1   :  { %193 = vst [vmem:[%s395_s3 + $0x18] sm:$0xff] %v188_v44 }

</bundles_post_ra>
